<compile_context>
chip_gen: v7x
topology: tpu7x:2x2x1
jax: 0.10.0
libtpu: 0.0.40
codegen_flags: <defaults>
</compile_context>

<pallas_src>
import functools

import jax
import jax.numpy as jnp
from jax.experimental import pallas as pl
from jax.experimental.pallas import tpu as pltpu


_VMEM_LIMIT = 48 * 1024 * 1024   # per-step need is ~12-20 MiB; safe on v5e/v6e/v7x
_TN_CAP = 2048                   # bf16 (1024, 2048) weight tile = 4 MiB (x2 buffers)


# ---------------------------------------------------------------------------
# Kernel
# ---------------------------------------------------------------------------

def _leaky(y):
    return jnp.where(y > 0.0, y, 0.2 * y)


def _generator_kernel(n_valid_ref,
                      z_ref, w0_ref, b0_ref,
                      w1_ref, g1_ref, t1_ref,
                      w2_ref, g2_ref, t2_ref,
                      w3_ref, g3_ref, t3_ref,
                      w4_ref, b4_ref,
                      o_ref, h_ref, *, eps):
    """Fully fused Generator forward.

    Step 0: run the backbone (Lin+Leaky, 3x Lin+BN+Leaky) entirely in VMEM and
    park the (b_pad, 1024) hidden activation in the persistent scratch h_ref.
    Every step j: one (1024, tn) tile of the final Linear + Tanh.
    """
    @pl.when(pl.program_id(0) == 0)
    def _backbone():
        b_pad = z_ref.shape[0]
        n_valid = n_valid_ref[0]

        # Row mask for BatchNorm statistics over the REAL batch rows only.
        # Built once as a (b_pad, 1) column and reused by all three BN layers.
        row = jax.lax.broadcasted_iota(jnp.int32, (b_pad, 1), 0)
        m = (row < n_valid).astype(jnp.float32)
        inv_n = 1.0 / n_valid.astype(jnp.float32)

        # Layer 0: Linear + LeakyReLU (normalize=False block).
        x = jnp.dot(z_ref[...].astype(jnp.bfloat16), w0_ref[...],
                    preferred_element_type=jnp.float32)
        x = _leaky(x + b0_ref[...])

        # Layers 1-3: Linear (bias dropped -- cancels in training-mode BN)
        #             + BatchNorm1d(eps) + LeakyReLU(0.2).
        for w_ref, g_ref, t_ref in ((w1_ref, g1_ref, t1_ref),
                                    (w2_ref, g2_ref, t2_ref),
                                    (w3_ref, g3_ref, t3_ref)):
            y = jnp.dot(x.astype(jnp.bfloat16), w_ref[...],
                        preferred_element_type=jnp.float32)
            mean = jnp.sum(y * m, axis=0, keepdims=True) * inv_n
            diff = y - mean
            var = jnp.sum(diff * diff * m, axis=0, keepdims=True) * inv_n
            y_hat = diff * jax.lax.rsqrt(var + eps)
            x = _leaky(g_ref[...] * y_hat + t_ref[...])

        h_ref[...] = x.astype(h_ref.dtype)

    # Final layer, one output-feature tile: Linear(1024, tn) + Tanh.
    y = jnp.dot(h_ref[...], w4_ref[...], preferred_element_type=jnp.float32)
    o_ref[...] = jnp.tanh(y + b4_ref[...])


# ---------------------------------------------------------------------------
# Wrapper
# ---------------------------------------------------------------------------

def _pick_tile(n_pad):
    # n_pad is always a multiple of 1024; cap at 2048 (VMEM-safe on v7x too).
    return _TN_CAP if n_pad % _TN_CAP == 0 else 1024


def generator_forward(params, z, img_shape, eps=0.8):
    c, hh, ww = img_shape
    n_out = c * hh * ww
    batch = z.shape[0]

    # Pad batch to a multiple of 16 (bf16 packs 16 rows / vreg). BN statistics
    # use only the real rows (masked in-kernel), so results are unchanged.
    b_pad = max(16, -(-batch // 16) * 16)
    z_pad = jnp.pad(z, ((0, b_pad - batch), (0, 0))) if b_pad != batch else z

    # Pad final feature axis to a multiple of 1024 so the weight tile never
    # degrades to tiny lane-fragmented blocks; extra zero columns are sliced
    # off at the end.
    n_pad = -(-n_out // 1024) * 1024
    w4, b4 = params["w4"], params["b4"]
    if n_pad != n_out:
        w4 = jnp.pad(w4, ((0, 0), (0, n_pad - n_out)))
        b4 = jnp.pad(b4, ((0, 0), (0, n_pad - n_out)))

    tn = _pick_tile(n_pad)
    grid = (n_pad // tn,)

    n_valid = jnp.array([batch], jnp.int32)   # scalar-prefetch (SMEM)

    def full(shape):
        # Whole array as one block; constant block index across the grid, so
        # it is DMA'd once and not re-fetched per step.
        return pl.BlockSpec(shape, lambda j, nv: tuple(0 for _ in shape))

    args = (z_pad,
            params["w0"], params["b0"],
            params["w1"], params["gamma1"], params["beta1"],
            params["w2"], params["gamma2"], params["beta2"],
            params["w3"], params["gamma3"], params["beta3"])

    out = pl.pallas_call(
        functools.partial(_generator_kernel, eps=eps),
        out_shape=jax.ShapeDtypeStruct((b_pad, n_pad), jnp.float32),
        grid_spec=pltpu.PrefetchScalarGridSpec(
            num_scalar_prefetch=1,
            grid=grid,
            in_specs=[full(a.shape) for a in args] + [
                pl.BlockSpec((1024, tn), lambda j, nv: (0, j)),   # w4 tile
                pl.BlockSpec((1, tn), lambda j, nv: (0, j)),      # b4 tile
            ],
            out_specs=pl.BlockSpec((b_pad, tn), lambda j, nv: (0, j)),
            scratch_shapes=[pltpu.VMEM((b_pad, 1024), jnp.bfloat16)]),
        compiler_params=pltpu.CompilerParams(
            dimension_semantics=("arbitrary",),   # scratch carries state
            vmem_limit_bytes=_VMEM_LIMIT),
    )(n_valid, *args, w4, b4)

    # Drop padding, reshape to NCHW like img.view(B, C, H, W).
    return out[:batch, :n_out].reshape(batch, c, hh, ww)


# ---------------------------------------------------------------------------
# Parameters
# ---------------------------------------------------------------------------

def init_generator_params(key, latent_dim, img_shape):
    """Synthetic parameters matching the module's shapes.

    Linear weights stored as (in_features, out_features) bf16 (MXU operand
    dtype); biases / gamma / beta stay f32.  Biases of the BN blocks
    (layers 1-3) are omitted: they cancel exactly in training-mode BatchNorm.
    """
    c, h, w = img_shape
    dims = [latent_dim, 128, 256, 512, 1024, c * h * w]
    params = {}
    keys = jax.random.split(key, len(dims) - 1)
    for i, (din, dout) in enumerate(zip(dims[:-1], dims[1:])):
        k_w, k_b = jax.random.split(keys[i])
        scale = 1.0 / jnp.sqrt(jnp.float32(din))
        w_f32 = jax.random.uniform(k_w, (din, dout), jnp.float32, -scale, scale)
        params[f"w{i}"] = w_f32.astype(jnp.bfloat16)
        if i in (0, 4):
            params[f"b{i}"] = jax.random.uniform(
                k_b, (1, dout), jnp.float32, -scale, scale)
    for i, dout in zip((1, 2, 3), (256, 512, 1024)):
        params[f"gamma{i}"] = jnp.ones((1, dout), jnp.float32)
        params[f"beta{i}"] = jnp.zeros((1, dout), jnp.float32)
    return params


# ---------------------------------------------------------------------------

if __name__ == "__main__":
    batch = 2
    latent_dim = 16
    img_shape = (1, 8, 8)     # (channels, img_size, img_size)

    key = jax.random.PRNGKey(0)
    k_params, k_z = jax.random.split(key)
    params = init_generator_params(k_params, latent_dim, img_shape)
    z = jax.random.normal(k_z, (batch, latent_dim), jnp.float32)

    img = generator_forward(params, z, img_shape)
    img = jax.block_until_ready(img)

    assert img.shape == (batch,) + img_shape, img.shape
    assert img.dtype == jnp.float32
    assert bool(jnp.all(jnp.isfinite(img)))
    # Tanh output must be bounded.
    assert bool(jnp.all(jnp.abs(img) <= 1.0))

    print("KERNEL_OK")
</pallas_src>

<mosaic_0001>
module attributes {stable_mosaic.version = 11 : i64} {
  func.func @_generator_kernel(%arg0: i32, %arg1: memref<1xi32, #tpu.memory_space<smem>>, %arg2: memref<16x16xf32, #tpu.memory_space<vmem>>, %arg3: memref<16x128xbf16, #tpu.memory_space<vmem>>, %arg4: memref<1x128xf32, #tpu.memory_space<vmem>>, %arg5: memref<128x256xbf16, #tpu.memory_space<vmem>>, %arg6: memref<1x256xf32, #tpu.memory_space<vmem>>, %arg7: memref<1x256xf32, #tpu.memory_space<vmem>>, %arg8: memref<256x512xbf16, #tpu.memory_space<vmem>>, %arg9: memref<1x512xf32, #tpu.memory_space<vmem>>, %arg10: memref<1x512xf32, #tpu.memory_space<vmem>>, %arg11: memref<512x1024xbf16, #tpu.memory_space<vmem>>, %arg12: memref<1x1024xf32, #tpu.memory_space<vmem>>, %arg13: memref<1x1024xf32, #tpu.memory_space<vmem>>, %arg14: memref<1024x1024xbf16, #tpu.memory_space<vmem>>, %arg15: memref<1x1024xf32, #tpu.memory_space<vmem>>, %arg16: memref<16x1024xf32, #tpu.memory_space<vmem>>, %arg17: memref<16x1024xbf16, #tpu.memory_space<vmem>>) attributes {dimension_semantics = [#tpu.dimension_semantics<arbitrary>], iteration_bounds = array<i64: 1>, scalar_prefetch = 1 : i64, scratch_operands = 1 : i64, tpu.core_type = #tpu.core_type<tc>, window_params = [{pipeline_mode = #tpu.pipeline_mode<synchronous>, transform_indices = @transform_0, window_bounds = array<i64: 16, 16>}, {pipeline_mode = #tpu.pipeline_mode<synchronous>, transform_indices = @transform_1, window_bounds = array<i64: 16, 128>}, {pipeline_mode = #tpu.pipeline_mode<synchronous>, transform_indices = @transform_2, window_bounds = array<i64: 1, 128>}, {pipeline_mode = #tpu.pipeline_mode<synchronous>, transform_indices = @transform_3, window_bounds = array<i64: 128, 256>}, {pipeline_mode = #tpu.pipeline_mode<synchronous>, transform_indices = @transform_4, window_bounds = array<i64: 1, 256>}, {pipeline_mode = #tpu.pipeline_mode<synchronous>, transform_indices = @transform_5, window_bounds = array<i64: 1, 256>}, {pipeline_mode = #tpu.pipeline_mode<synchronous>, transform_indices = @transform_6, window_bounds = array<i64: 256, 512>}, {pipeline_mode = #tpu.pipeline_mode<synchronous>, transform_indices = @transform_7, window_bounds = array<i64: 1, 512>}, {pipeline_mode = #tpu.pipeline_mode<synchronous>, transform_indices = @transform_8, window_bounds = array<i64: 1, 512>}, {pipeline_mode = #tpu.pipeline_mode<synchronous>, transform_indices = @transform_9, window_bounds = array<i64: 512, 1024>}, {pipeline_mode = #tpu.pipeline_mode<synchronous>, transform_indices = @transform_10, window_bounds = array<i64: 1, 1024>}, {pipeline_mode = #tpu.pipeline_mode<synchronous>, transform_indices = @transform_11, window_bounds = array<i64: 1, 1024>}, {transform_indices = @transform_12, window_bounds = array<i64: 1024, 1024>}, {transform_indices = @transform_13, window_bounds = array<i64: 1, 1024>}, {transform_indices = @transform_14, window_bounds = array<i64: 16, 1024>}]} {
    %c0_i32 = arith.constant 0 : i32
    %0 = arith.cmpi eq, %arg0, %c0_i32 : i32
    %1 = arith.extui %0 : i1 to i32
    %c0_i32_0 = arith.constant 0 : i32
    %2 = arith.cmpi ne, %1, %c0_i32_0 : i32
    scf.if %2 {
      %c0_8 = arith.constant 0 : index
      %11 = memref.load %arg1[%c0_8] : memref<1xi32, #tpu.memory_space<smem>>
      %12 = tpu.iota {dimensions = array<i32: 0>} : vector<16x1xi32>
      %13 = vector.broadcast %11 : i32 to vector<16x1xi32>
      %14 = arith.cmpi slt, %12, %13 : vector<16x1xi32>
      %15 = arith.extui %14 : vector<16x1xi1> to vector<16x1xi32>
      %16 = arith.sitofp %15 : vector<16x1xi32> to vector<16x1xf32>
      %17 = arith.sitofp %11 : i32 to f32
      %cst_9 = arith.constant 1.000000e+00 : f32
      %18 = arith.divf %cst_9, %17 : f32
      %c0_10 = arith.constant 0 : index
      %c0_11 = arith.constant 0 : index
      %19 = vector.load %arg2[%c0_10, %c0_11] : memref<16x16xf32, #tpu.memory_space<vmem>>, vector<16x16xf32>
      %20 = arith.truncf %19 : vector<16x16xf32> to vector<16x16xbf16>
      %c0_12 = arith.constant 0 : index
      %c0_13 = arith.constant 0 : index
      %21 = vector.load %arg3[%c0_12, %c0_13] : memref<16x128xbf16, #tpu.memory_space<vmem>>, vector<16x128xbf16>
      %cst_14 = arith.constant dense<0.000000e+00> : vector<16x128xf32>
      %22 = tpu.matmul %20, %21, %cst_14 {dimension_numbers = #tpu.dot_dimension_numbers<[1], [0], [0], [1], [0, 0, 1, 1], [], []>} : vector<16x16xbf16>, vector<16x128xbf16>, vector<16x128xf32> -> vector<16x128xf32>
      %c0_15 = arith.constant 0 : index
      %c0_16 = arith.constant 0 : index
      %23 = vector.load %arg4[%c0_15, %c0_16] : memref<1x128xf32, #tpu.memory_space<vmem>>, vector<1x128xf32>
      %24 = vector.broadcast %23 : vector<1x128xf32> to vector<16x128xf32>
      %25 = arith.addf %22, %24 : vector<16x128xf32>
      %cst_17 = arith.constant 0.000000e+00 : f32
      %26 = vector.broadcast %cst_17 : f32 to vector<16x128xf32>
      %27 = arith.cmpf ogt, %25, %26 : vector<16x128xf32>
      %cst_18 = arith.constant 2.000000e-01 : f32
      %28 = vector.broadcast %cst_18 : f32 to vector<16x128xf32>
      %29 = arith.mulf %28, %25 : vector<16x128xf32>
      %30 = arith.select %27, %25, %29 : vector<16x128xi1>, vector<16x128xf32>
      %31 = arith.truncf %30 : vector<16x128xf32> to vector<16x128xbf16>
      %c0_19 = arith.constant 0 : index
      %c0_20 = arith.constant 0 : index
      %32 = vector.load %arg5[%c0_19, %c0_20] : memref<128x256xbf16, #tpu.memory_space<vmem>>, vector<128x256xbf16>
      %cst_21 = arith.constant dense<0.000000e+00> : vector<16x256xf32>
      %33 = tpu.matmul %31, %32, %cst_21 {dimension_numbers = #tpu.dot_dimension_numbers<[1], [0], [0], [1], [0, 0, 1, 1], [], []>} : vector<16x128xbf16>, vector<128x256xbf16>, vector<16x256xf32> -> vector<16x256xf32>
      %34 = vector.broadcast %16 : vector<16x1xf32> to vector<16x256xf32>
      %35 = arith.mulf %33, %34 : vector<16x256xf32>
      %cst_22 = arith.constant dense<0.000000e+00> : vector<256xf32>
      %36 = vector.multi_reduction <add>, %35, %cst_22 [0] : vector<16x256xf32> to vector<256xf32>
      %37 = vector.shape_cast %36 : vector<256xf32> to vector<1x256xf32>
      %38 = vector.broadcast %18 : f32 to vector<1x256xf32>
      %39 = arith.mulf %37, %38 : vector<1x256xf32>
      %40 = vector.broadcast %39 : vector<1x256xf32> to vector<16x256xf32>
      %41 = arith.subf %33, %40 : vector<16x256xf32>
      %42 = arith.mulf %41, %41 : vector<16x256xf32>
      %43 = vector.broadcast %16 : vector<16x1xf32> to vector<16x256xf32>
      %44 = arith.mulf %42, %43 : vector<16x256xf32>
      %cst_23 = arith.constant dense<0.000000e+00> : vector<256xf32>
      %45 = vector.multi_reduction <add>, %44, %cst_23 [0] : vector<16x256xf32> to vector<256xf32>
      %46 = vector.shape_cast %45 : vector<256xf32> to vector<1x256xf32>
      %47 = vector.broadcast %18 : f32 to vector<1x256xf32>
      %48 = arith.mulf %46, %47 : vector<1x256xf32>
      %cst_24 = arith.constant 8.000000e-01 : f32
      %49 = vector.broadcast %cst_24 : f32 to vector<1x256xf32>
      %50 = arith.addf %48, %49 : vector<1x256xf32>
      %51 = math.rsqrt %50 : vector<1x256xf32>
      %52 = vector.broadcast %51 : vector<1x256xf32> to vector<16x256xf32>
      %53 = arith.mulf %41, %52 : vector<16x256xf32>
      %c0_25 = arith.constant 0 : index
      %c0_26 = arith.constant 0 : index
      %54 = vector.load %arg6[%c0_25, %c0_26] : memref<1x256xf32, #tpu.memory_space<vmem>>, vector<1x256xf32>
      %55 = vector.broadcast %54 : vector<1x256xf32> to vector<16x256xf32>
      %56 = arith.mulf %55, %53 : vector<16x256xf32>
      %c0_27 = arith.constant 0 : index
      %c0_28 = arith.constant 0 : index
      %57 = vector.load %arg7[%c0_27, %c0_28] : memref<1x256xf32, #tpu.memory_space<vmem>>, vector<1x256xf32>
      %58 = vector.broadcast %57 : vector<1x256xf32> to vector<16x256xf32>
      %59 = arith.addf %56, %58 : vector<16x256xf32>
      %cst_29 = arith.constant 0.000000e+00 : f32
      %60 = vector.broadcast %cst_29 : f32 to vector<16x256xf32>
      %61 = arith.cmpf ogt, %59, %60 : vector<16x256xf32>
      %cst_30 = arith.constant 2.000000e-01 : f32
      %62 = vector.broadcast %cst_30 : f32 to vector<16x256xf32>
      %63 = arith.mulf %62, %59 : vector<16x256xf32>
      %64 = arith.select %61, %59, %63 : vector<16x256xi1>, vector<16x256xf32>
      %65 = arith.truncf %64 : vector<16x256xf32> to vector<16x256xbf16>
      %c0_31 = arith.constant 0 : index
      %c0_32 = arith.constant 0 : index
      %66 = vector.load %arg8[%c0_31, %c0_32] : memref<256x512xbf16, #tpu.memory_space<vmem>>, vector<256x512xbf16>
      %cst_33 = arith.constant dense<0.000000e+00> : vector<16x512xf32>
      %67 = tpu.matmul %65, %66, %cst_33 {dimension_numbers = #tpu.dot_dimension_numbers<[1], [0], [0], [1], [0, 0, 1, 1], [], []>} : vector<16x256xbf16>, vector<256x512xbf16>, vector<16x512xf32> -> vector<16x512xf32>
      %68 = vector.broadcast %16 : vector<16x1xf32> to vector<16x512xf32>
      %69 = arith.mulf %67, %68 : vector<16x512xf32>
      %cst_34 = arith.constant dense<0.000000e+00> : vector<512xf32>
      %70 = vector.multi_reduction <add>, %69, %cst_34 [0] : vector<16x512xf32> to vector<512xf32>
      %71 = vector.shape_cast %70 : vector<512xf32> to vector<1x512xf32>
      %72 = vector.broadcast %18 : f32 to vector<1x512xf32>
      %73 = arith.mulf %71, %72 : vector<1x512xf32>
      %74 = vector.broadcast %73 : vector<1x512xf32> to vector<16x512xf32>
      %75 = arith.subf %67, %74 : vector<16x512xf32>
      %76 = arith.mulf %75, %75 : vector<16x512xf32>
      %77 = vector.broadcast %16 : vector<16x1xf32> to vector<16x512xf32>
      %78 = arith.mulf %76, %77 : vector<16x512xf32>
      %cst_35 = arith.constant dense<0.000000e+00> : vector<512xf32>
      %79 = vector.multi_reduction <add>, %78, %cst_35 [0] : vector<16x512xf32> to vector<512xf32>
      %80 = vector.shape_cast %79 : vector<512xf32> to vector<1x512xf32>
      %81 = vector.broadcast %18 : f32 to vector<1x512xf32>
      %82 = arith.mulf %80, %81 : vector<1x512xf32>
      %cst_36 = arith.constant 8.000000e-01 : f32
      %83 = vector.broadcast %cst_36 : f32 to vector<1x512xf32>
      %84 = arith.addf %82, %83 : vector<1x512xf32>
      %85 = math.rsqrt %84 : vector<1x512xf32>
      %86 = vector.broadcast %85 : vector<1x512xf32> to vector<16x512xf32>
      %87 = arith.mulf %75, %86 : vector<16x512xf32>
      %c0_37 = arith.constant 0 : index
      %c0_38 = arith.constant 0 : index
      %88 = vector.load %arg9[%c0_37, %c0_38] : memref<1x512xf32, #tpu.memory_space<vmem>>, vector<1x512xf32>
      %89 = vector.broadcast %88 : vector<1x512xf32> to vector<16x512xf32>
      %90 = arith.mulf %89, %87 : vector<16x512xf32>
      %c0_39 = arith.constant 0 : index
      %c0_40 = arith.constant 0 : index
      %91 = vector.load %arg10[%c0_39, %c0_40] : memref<1x512xf32, #tpu.memory_space<vmem>>, vector<1x512xf32>
      %92 = vector.broadcast %91 : vector<1x512xf32> to vector<16x512xf32>
      %93 = arith.addf %90, %92 : vector<16x512xf32>
      %cst_41 = arith.constant 0.000000e+00 : f32
      %94 = vector.broadcast %cst_41 : f32 to vector<16x512xf32>
      %95 = arith.cmpf ogt, %93, %94 : vector<16x512xf32>
      %cst_42 = arith.constant 2.000000e-01 : f32
      %96 = vector.broadcast %cst_42 : f32 to vector<16x512xf32>
      %97 = arith.mulf %96, %93 : vector<16x512xf32>
      %98 = arith.select %95, %93, %97 : vector<16x512xi1>, vector<16x512xf32>
      %99 = arith.truncf %98 : vector<16x512xf32> to vector<16x512xbf16>
      %c0_43 = arith.constant 0 : index
      %c0_44 = arith.constant 0 : index
      %100 = vector.load %arg11[%c0_43, %c0_44] : memref<512x1024xbf16, #tpu.memory_space<vmem>>, vector<512x1024xbf16>
      %cst_45 = arith.constant dense<0.000000e+00> : vector<16x1024xf32>
      %101 = tpu.matmul %99, %100, %cst_45 {dimension_numbers = #tpu.dot_dimension_numbers<[1], [0], [0], [1], [0, 0, 1, 1], [], []>} : vector<16x512xbf16>, vector<512x1024xbf16>, vector<16x1024xf32> -> vector<16x1024xf32>
      %102 = vector.broadcast %16 : vector<16x1xf32> to vector<16x1024xf32>
      %103 = arith.mulf %101, %102 : vector<16x1024xf32>
      %cst_46 = arith.constant dense<0.000000e+00> : vector<1024xf32>
      %104 = vector.multi_reduction <add>, %103, %cst_46 [0] : vector<16x1024xf32> to vector<1024xf32>
      %105 = vector.shape_cast %104 : vector<1024xf32> to vector<1x1024xf32>
      %106 = vector.broadcast %18 : f32 to vector<1x1024xf32>
      %107 = arith.mulf %105, %106 : vector<1x1024xf32>
      %108 = vector.broadcast %107 : vector<1x1024xf32> to vector<16x1024xf32>
      %109 = arith.subf %101, %108 : vector<16x1024xf32>
      %110 = arith.mulf %109, %109 : vector<16x1024xf32>
      %111 = vector.broadcast %16 : vector<16x1xf32> to vector<16x1024xf32>
      %112 = arith.mulf %110, %111 : vector<16x1024xf32>
      %cst_47 = arith.constant dense<0.000000e+00> : vector<1024xf32>
      %113 = vector.multi_reduction <add>, %112, %cst_47 [0] : vector<16x1024xf32> to vector<1024xf32>
      %114 = vector.shape_cast %113 : vector<1024xf32> to vector<1x1024xf32>
      %115 = vector.broadcast %18 : f32 to vector<1x1024xf32>
      %116 = arith.mulf %114, %115 : vector<1x1024xf32>
      %cst_48 = arith.constant 8.000000e-01 : f32
      %117 = vector.broadcast %cst_48 : f32 to vector<1x1024xf32>
      %118 = arith.addf %116, %117 : vector<1x1024xf32>
      %119 = math.rsqrt %118 : vector<1x1024xf32>
      %120 = vector.broadcast %119 : vector<1x1024xf32> to vector<16x1024xf32>
      %121 = arith.mulf %109, %120 : vector<16x1024xf32>
      %c0_49 = arith.constant 0 : index
      %c0_50 = arith.constant 0 : index
      %122 = vector.load %arg12[%c0_49, %c0_50] : memref<1x1024xf32, #tpu.memory_space<vmem>>, vector<1x1024xf32>
      %123 = vector.broadcast %122 : vector<1x1024xf32> to vector<16x1024xf32>
      %124 = arith.mulf %123, %121 : vector<16x1024xf32>
      %c0_51 = arith.constant 0 : index
      %c0_52 = arith.constant 0 : index
      %125 = vector.load %arg13[%c0_51, %c0_52] : memref<1x1024xf32, #tpu.memory_space<vmem>>, vector<1x1024xf32>
      %126 = vector.broadcast %125 : vector<1x1024xf32> to vector<16x1024xf32>
      %127 = arith.addf %124, %126 : vector<16x1024xf32>
      %cst_53 = arith.constant 0.000000e+00 : f32
      %128 = vector.broadcast %cst_53 : f32 to vector<16x1024xf32>
      %129 = arith.cmpf ogt, %127, %128 : vector<16x1024xf32>
      %cst_54 = arith.constant 2.000000e-01 : f32
      %130 = vector.broadcast %cst_54 : f32 to vector<16x1024xf32>
      %131 = arith.mulf %130, %127 : vector<16x1024xf32>
      %132 = arith.select %129, %127, %131 : vector<16x1024xi1>, vector<16x1024xf32>
      %133 = arith.truncf %132 : vector<16x1024xf32> to vector<16x1024xbf16>
      %c0_55 = arith.constant 0 : index
      %c0_56 = arith.constant 0 : index
      %134 = vector.load %arg17[%c0_55, %c0_56] : memref<16x1024xbf16, #tpu.memory_space<vmem>>, vector<16x1024xbf16>
      tpu.vector_store %arg17[%c0_55, %c0_56], %133 {strides = array<i32>} : memref<16x1024xbf16, #tpu.memory_space<vmem>>, vector<16x1024xbf16>,
    } else {
    }
    %c0 = arith.constant 0 : index
    %c0_1 = arith.constant 0 : index
    %3 = vector.load %arg17[%c0, %c0_1] : memref<16x1024xbf16, #tpu.memory_space<vmem>>, vector<16x1024xbf16>
    %c0_2 = arith.constant 0 : index
    %c0_3 = arith.constant 0 : index
    %4 = vector.load %arg14[%c0_2, %c0_3] : memref<1024x1024xbf16, #tpu.memory_space<vmem>>, vector<1024x1024xbf16>
    %cst = arith.constant dense<0.000000e+00> : vector<16x1024xf32>
    %5 = tpu.matmul %3, %4, %cst {dimension_numbers = #tpu.dot_dimension_numbers<[1], [0], [0], [1], [0, 0, 1, 1], [], []>} : vector<16x1024xbf16>, vector<1024x1024xbf16>, vector<16x1024xf32> -> vector<16x1024xf32>
    %c0_4 = arith.constant 0 : index
    %c0_5 = arith.constant 0 : index
    %6 = vector.load %arg15[%c0_4, %c0_5] : memref<1x1024xf32, #tpu.memory_space<vmem>>, vector<1x1024xf32>
    %7 = vector.broadcast %6 : vector<1x1024xf32> to vector<16x1024xf32>
    %8 = arith.addf %5, %7 : vector<16x1024xf32>
    %9 = math.tanh %8 : vector<16x1024xf32>
    %c0_6 = arith.constant 0 : index
    %c0_7 = arith.constant 0 : index
    %10 = vector.load %arg16[%c0_6, %c0_7] : memref<16x1024xf32, #tpu.memory_space<vmem>>, vector<16x1024xf32>
    tpu.vector_store %arg16[%c0_6, %c0_7], %9 {strides = array<i32>} : memref<16x1024xf32, #tpu.memory_space<vmem>>, vector<16x1024xf32>,
    return
  }
  func.func @transform_0(%arg0: i32, %arg1: memref<1xi32, #tpu.memory_space<smem>>) -> (i32, i32) {
    %c0_i32 = arith.constant 0 : i32
    %c0_i32_0 = arith.constant 0 : i32
    %c0_i32_1 = arith.constant 0 : i32
    return %c0_i32, %c0_i32_0 : i32, i32
  }
  func.func @transform_1(%arg0: i32, %arg1: memref<1xi32, #tpu.memory_space<smem>>) -> (i32, i32) {
    %c0_i32 = arith.constant 0 : i32
    %c0_i32_0 = arith.constant 0 : i32
    %c0_i32_1 = arith.constant 0 : i32
    return %c0_i32, %c0_i32_0 : i32, i32
  }
  func.func @transform_2(%arg0: i32, %arg1: memref<1xi32, #tpu.memory_space<smem>>) -> (i32, i32) {
    %c0_i32 = arith.constant 0 : i32
    %c0_i32_0 = arith.constant 0 : i32
    %c0_i32_1 = arith.constant 0 : i32
    return %c0_i32, %c0_i32_0 : i32, i32
  }
  func.func @transform_3(%arg0: i32, %arg1: memref<1xi32, #tpu.memory_space<smem>>) -> (i32, i32) {
    %c0_i32 = arith.constant 0 : i32
    %c0_i32_0 = arith.constant 0 : i32
    %c0_i32_1 = arith.constant 0 : i32
    return %c0_i32, %c0_i32_0 : i32, i32
  }
  func.func @transform_4(%arg0: i32, %arg1: memref<1xi32, #tpu.memory_space<smem>>) -> (i32, i32) {
    %c0_i32 = arith.constant 0 : i32
    %c0_i32_0 = arith.constant 0 : i32
    %c0_i32_1 = arith.constant 0 : i32
    return %c0_i32, %c0_i32_0 : i32, i32
  }
  func.func @transform_5(%arg0: i32, %arg1: memref<1xi32, #tpu.memory_space<smem>>) -> (i32, i32) {
    %c0_i32 = arith.constant 0 : i32
    %c0_i32_0 = arith.constant 0 : i32
    %c0_i32_1 = arith.constant 0 : i32
    return %c0_i32, %c0_i32_0 : i32, i32
  }
  func.func @transform_6(%arg0: i32, %arg1: memref<1xi32, #tpu.memory_space<smem>>) -> (i32, i32) {
    %c0_i32 = arith.constant 0 : i32
    %c0_i32_0 = arith.constant 0 : i32
    %c0_i32_1 = arith.constant 0 : i32
    return %c0_i32, %c0_i32_0 : i32, i32
  }
  func.func @transform_7(%arg0: i32, %arg1: memref<1xi32, #tpu.memory_space<smem>>) -> (i32, i32) {
    %c0_i32 = arith.constant 0 : i32
    %c0_i32_0 = arith.constant 0 : i32
    %c0_i32_1 = arith.constant 0 : i32
    return %c0_i32, %c0_i32_0 : i32, i32
  }
  func.func @transform_8(%arg0: i32, %arg1: memref<1xi32, #tpu.memory_space<smem>>) -> (i32, i32) {
    %c0_i32 = arith.constant 0 : i32
    %c0_i32_0 = arith.constant 0 : i32
    %c0_i32_1 = arith.constant 0 : i32
    return %c0_i32, %c0_i32_0 : i32, i32
  }
  func.func @transform_9(%arg0: i32, %arg1: memref<1xi32, #tpu.memory_space<smem>>) -> (i32, i32) {
    %c0_i32 = arith.constant 0 : i32
    %c0_i32_0 = arith.constant 0 : i32
    %c0_i32_1 = arith.constant 0 : i32
    return %c0_i32, %c0_i32_0 : i32, i32
  }
  func.func @transform_10(%arg0: i32, %arg1: memref<1xi32, #tpu.memory_space<smem>>) -> (i32, i32) {
    %c0_i32 = arith.constant 0 : i32
    %c0_i32_0 = arith.constant 0 : i32
    %c0_i32_1 = arith.constant 0 : i32
    return %c0_i32, %c0_i32_0 : i32, i32
  }
  func.func @transform_11(%arg0: i32, %arg1: memref<1xi32, #tpu.memory_space<smem>>) -> (i32, i32) {
    %c0_i32 = arith.constant 0 : i32
    %c0_i32_0 = arith.constant 0 : i32
    %c0_i32_1 = arith.constant 0 : i32
    return %c0_i32, %c0_i32_0 : i32, i32
  }
  func.func @transform_12(%arg0: i32, %arg1: memref<1xi32, #tpu.memory_space<smem>>) -> (i32, i32) {
    %c0_i32 = arith.constant 0 : i32
    %c0_i32_0 = arith.constant 0 : i32
    return %c0_i32, %arg0 : i32, i32
  }
  func.func @transform_13(%arg0: i32, %arg1: memref<1xi32, #tpu.memory_space<smem>>) -> (i32, i32) {
    %c0_i32 = arith.constant 0 : i32
    %c0_i32_0 = arith.constant 0 : i32
    return %c0_i32, %arg0 : i32, i32
  }
  func.func @transform_14(%arg0: i32, %arg1: memref<1xi32, #tpu.memory_space<smem>>) -> (i32, i32) {
    %c0_i32 = arith.constant 0 : i32
    %c0_i32_0 = arith.constant 0 : i32
    return %c0_i32, %arg0 : i32, i32
  }
}

</mosaic_0001>

<bundles_post_ra>
// kernel: tpu_custom_call.1
= control target key start
LH: loop header
LB: loop body
LE: loop exit
PB: predicated region body
PF: predicated region fallthrough
CT: control target
= control target key end

     0   :  { %s9775_s0 = inlined_call_operand.<no memory space> [shape: s32[1], index: 0, kind: input, shape index: {}]   ;;  %s9776_s1 = inlined_call_operand.hbm [shape: f32[16,16], index: 1, kind: input, shape index: {}]   ;;  %s9777_s2 = inlined_call_operand.hbm [shape: bf16[16,128], index: 2, kind: input, shape index: {}]   ;;  %s9778_s3 = inlined_call_operand.hbm [shape: f32[1,128], index: 3, kind: input, shape index: {}]   ;;  %s9779_s4 = inlined_call_operand.hbm [shape: bf16[128,256], index: 4, kind: input, shape index: {}]   ;;  %s9780_s5 = inlined_call_operand.hbm [shape: f32[1,256], index: 5, kind: input, shape index: {}]   ;;  %s9781_s6 = inlined_call_operand.hbm [shape: f32[1,256], index: 6, kind: input, shape index: {}]   ;;  %s9782_s7 = inlined_call_operand.hbm [shape: bf16[256,512], index: 7, kind: input, shape index: {}]   ;;  %s9783_s8 = inlined_call_operand.hbm [shape: f32[1,512], index: 8, kind: input, shape index: {}]   ;;  %s9784_s9 = inlined_call_operand.hbm [shape: f32[1,512], index: 9, kind: input, shape index: {}]   ;;  %s9785_s10 = inlined_call_operand.hbm [shape: bf16[512,1024], index: 10, kind: input, shape index: {}]   ;;  %s9786_s11 = inlined_call_operand.hbm [shape: f32[1,1024], index: 11, kind: input, shape index: {}]   ;;  %s9787_s12 = inlined_call_operand.hbm [shape: f32[1,1024], index: 12, kind: input, shape index: {}]   ;;  %s9788_s13 = inlined_call_operand.hbm [shape: bf16[1024,1024], index: 13, kind: input, shape index: {}]   ;;  %s9789_s14 = inlined_call_operand.hbm [shape: f32[1,1024], index: 14, kind: input, shape index: {}]   ;;  %s9790_s15 = inlined_call_operand.hbm [shape: f32[16,1024], index: 15, kind: output, shape index: {}]  }
   0x1   :  { %9792 = sst [smem:[#allocation38_spill]] %s9790_s15 }
   0x2   :  { %21 = vsyncpa [#allocation6], 0 }
   0x3   :  { %22 = vsyncpa [#allocation9], 0 }
   0x4   :  { %23 = vsyncpa [#allocation12], 0 }
   0x5   :  { %24 = vsyncpa [#allocation15], 0 }
   0x6   :  { %25 = vsyncpa [#allocation18], 0 }
   0x7   :  { %26 = vsyncpa [#allocation21], 0 }
   0x8   :  { %27 = vsyncpa [#allocation24], 0 }
   0x9   :  { %28 = vsyncpa [#allocation27], 0 }
   0xa   :  { %29 = vsyncpa [#allocation7], 0  ;;  %s8879_s18 = smov [#allocation8]   ;;  %s8531_s22 = scalar_lea.hbm %s9777_s2, 128 }
   0xb   :  { %s47_s19 = sshll.u32 %s8879_s18, 4  ;;  %p8532_p0 = scmp.ne.s32.totalorder %s9777_s2, %s8531_s22  ;;  %s48_s19 = int_to_ptr.vmem [resolvable:$true] %s47_s19 }
   0xc   :  { %p8535_p1 = scmp.lt.u32.totalorder %s8531_s22, %s9777_s2 }
   0xe   :  { %p8537_p2 = pnand %p8535_p1, %p8532_p0 }
  0x10   :  { %8540 = shalt.err (!%p8537_p2)
}
  0x11   :  { %s8541_s27 = scalar_lea.vmem %s48_s19, 128  ;;  %p8546_p4 = scmp.lt.s32.totalorder %s48_s19, %s48_s19 }
  0x12   :  { %p8542_p3 = scmp.ne.s32.totalorder %s48_s19, %s8541_s27  ;;  %p8547_p5 = scmp.lt.s32.totalorder %s8541_s27, %s8541_s27 }
  0x14   :  { %p8548_p6 = por %p8547_p5, %p8546_p4 }
  0x16   :  { %p8549_p7 = pnand %p8548_p6, %p8542_p3 }
  0x18   :  { %8552 = shalt.err (!%p8549_p7)
}
  0x19   :  { %s8880_s28 = smov 64   ;;  %s8881_s29 = smov 4  }
  0x1a   :  { %53 = dma.hbm_to_vmem [thread:$0]  %s9777_s2, 128, %s48_s19, [#allocation9], %s8880_s28, %s8880_s28, %s8881_s29  }
  0x1b   :  { %s8882_s17 = smov [#allocation11]   ;;  %s8883_s20 = smov [#allocation14]  }
  0x1c   :  { %s69_s18 = sshll.u32 %s8882_s17, 4  ;;  %s92_s21 = sshll.u32 %s8883_s20, 4  ;;  %s70_s18 = int_to_ptr.vmem [resolvable:$true] %s69_s18  ;;  %s93_s21 = int_to_ptr.vmem [resolvable:$true] %s92_s21 }
  0x1d   :  { %s8553_s24 = scalar_lea.hbm %s9779_s4, 2048 }
  0x1e   :  { %p8554_p8 = scmp.ne.s32.totalorder %s9779_s4, %s8553_s24  ;;  %p8557_p9 = scmp.lt.u32.totalorder %s8553_s24, %s9779_s4 }
  0x20   :  { %p8559_p10 = pnand %p8557_p9, %p8554_p8 }
  0x22   :  { %8562 = shalt.err (!%p8559_p10)
}
  0x23   :  { %s8563_s2 = scalar_lea.vmem %s70_s18, 2048  ;;  %p8568_p12 = scmp.lt.s32.totalorder %s70_s18, %s70_s18 }
  0x24   :  { %p8564_p11 = scmp.ne.s32.totalorder %s70_s18, %s8563_s2  ;;  %p8569_p13 = scmp.lt.s32.totalorder %s8563_s2, %s8563_s2 }
  0x26   :  { %p8570_p0 = por %p8569_p13, %p8568_p12 }
  0x28   :  { %p8571_p1 = pnand %p8570_p0, %p8564_p11 }
  0x2a   :  { %8574 = shalt.err (!%p8571_p1)
}
  0x2b   :  { %s8884_s19 = smov 128   ;;  %s8885_s29 = smov 8  }
  0x2c   :  { %75 = dma.hbm_to_vmem [thread:$0]  %s9779_s4, 2048, %s70_s18, [#allocation12], %s8884_s19, %s8884_s19, %s8885_s29  }
  0x2d   :  { %s8575_s20 = scalar_lea.hbm %s9781_s6, 32 }
  0x2e   :  { %p8576_p2 = scmp.ne.s32.totalorder %s9781_s6, %s8575_s20  ;;  %p8579_p3 = scmp.lt.u32.totalorder %s8575_s20, %s9781_s6 }
  0x30   :  { %p8581_p4 = pnand %p8579_p3, %p8576_p2 }
  0x32   :  { %8584 = shalt.err (!%p8581_p4)
}
  0x33   :  { %s8585_s26 = scalar_lea.vmem %s93_s21, 32  ;;  %p8590_p6 = scmp.lt.s32.totalorder %s93_s21, %s93_s21 }
  0x34   :  { %p8586_p5 = scmp.ne.s32.totalorder %s93_s21, %s8585_s26  ;;  %p8591_p7 = scmp.lt.s32.totalorder %s8585_s26, %s8585_s26 }
  0x36   :  { %p8592_p8 = por %p8591_p7, %p8590_p6 }
  0x38   :  { %p8593_p9 = pnand %p8592_p8, %p8586_p5 }
  0x3a   :  { %8596 = shalt.err (!%p8593_p9)
}
  0x3b   :  { %95 = dma.hbm_to_vmem [thread:$0]  %s9781_s6, 32, %s93_s21, [#allocation15]  }
  0x3c   :  { %s8886_s27 = smov [#allocation17]   ;;  %s8887_s30 = smov [#allocation20]  }
  0x3d   :  { %s114_s2 = sshll.u32 %s8886_s27, 4  ;;  %s133_s16 = sshll.u32 %s8887_s30, 4  ;;  %s115_s2 = int_to_ptr.vmem [resolvable:$true] %s114_s2  ;;  %s134_s16 = int_to_ptr.vmem [resolvable:$true] %s133_s16 }
  0x3e   :  { %s8597_s20 = scalar_lea.hbm %s9783_s8, 64 }
  0x3f   :  { %p8598_p10 = scmp.ne.s32.totalorder %s9783_s8, %s8597_s20  ;;  %p8601_p11 = scmp.lt.u32.totalorder %s8597_s20, %s9783_s8 }
  0x41   :  { %p8603_p12 = pnand %p8601_p11, %p8598_p10 }
  0x43   :  { %8606 = shalt.err (!%p8603_p12)
}
  0x44   :  { %s8607_s6 = scalar_lea.vmem %s115_s2, 64  ;;  %p8612_p0 = scmp.lt.s32.totalorder %s115_s2, %s115_s2 }
  0x45   :  { %p8608_p13 = scmp.ne.s32.totalorder %s115_s2, %s8607_s6  ;;  %p8613_p1 = scmp.lt.s32.totalorder %s8607_s6, %s8607_s6 }
  0x47   :  { %p8614_p2 = por %p8613_p1, %p8612_p0 }
  0x49   :  { %p8615_p3 = pnand %p8614_p2, %p8608_p13 }
  0x4b   :  { %8618 = shalt.err (!%p8615_p3)
}
  0x4c   :  { %117 = dma.hbm_to_vmem [thread:$0]  %s9783_s8, 64, %s115_s2, [#allocation18]  }
  0x4d   :  { %s8619_s27 = scalar_lea.hbm %s9785_s10, 32768 }
  0x4e   :  { %p8620_p4 = scmp.ne.s32.totalorder %s9785_s10, %s8619_s27  ;;  %p8623_p5 = scmp.lt.u32.totalorder %s8619_s27, %s9785_s10 }
  0x50   :  { %p8625_p6 = pnand %p8623_p5, %p8620_p4 }
  0x52   :  { %8628 = shalt.err (!%p8625_p6)
}
  0x53   :  { %s8629_s22 = scalar_lea.vmem %s134_s16, 32768  ;;  %p8634_p8 = scmp.lt.s32.totalorder %s134_s16, %s134_s16 }
  0x54   :  { %p8630_p7 = scmp.ne.s32.totalorder %s134_s16, %s8629_s22  ;;  %p8635_p9 = scmp.lt.s32.totalorder %s8629_s22, %s8629_s22 }
  0x56   :  { %p8636_p10 = por %p8635_p9, %p8634_p8 }
  0x58   :  { %p8637_p11 = pnand %p8636_p10, %p8630_p7 }
  0x5a   :  { %8640 = shalt.err (!%p8637_p11)
}
  0x5b   :  { %s8888_s8 = smov 512   ;;  %s8889_s2 = smov 32  }
  0x5c   :  { %139 = dma.hbm_to_vmem [thread:$0]  %s9785_s10, 32768, %s134_s16, [#allocation21], %s8888_s8, %s8888_s8, %s8889_s2  }
  0x5d   :  { %s8890_s25 = smov [#allocation23]   ;;  %s8891_s21 = smov [#allocation5]  }
  0x5e   :  { %s156_s6 = sshll.u32 %s8890_s25, 4  ;;  %s35_s26 = sshll.u32 %s8891_s21, 4  ;;  %s157_s6 = int_to_ptr.vmem [resolvable:$true] %s156_s6  ;;  %s36_s26 = int_to_ptr.vmem [resolvable:$true] %s35_s26 }
  0x5f   :  { %s8641_s27 = scalar_lea.hbm %s9787_s12, 128 }
  0x60   :  { %p8642_p12 = scmp.ne.s32.totalorder %s9787_s12, %s8641_s27  ;;  %p8645_p13 = scmp.lt.u32.totalorder %s8641_s27, %s9787_s12 }
  0x62   :  { %p8647_p0 = pnand %p8645_p13, %p8642_p12 }
  0x64   :  { %8650 = shalt.err (!%p8647_p0)
}
  0x65   :  { %s8651_s10 = scalar_lea.vmem %s157_s6, 128  ;;  %p8656_p2 = scmp.lt.s32.totalorder %s157_s6, %s157_s6 }
  0x66   :  { %p8652_p1 = scmp.ne.s32.totalorder %s157_s6, %s8651_s10  ;;  %p8657_p3 = scmp.lt.s32.totalorder %s8651_s10, %s8651_s10 }
  0x68   :  { %p8658_p4 = por %p8657_p3, %p8656_p2 }
  0x6a   :  { %p8659_p5 = pnand %p8658_p4, %p8652_p1 }
  0x6c   :  { %8662 = shalt.err (!%p8659_p5)
}
  0x6d   :  { %159 = dma.hbm_to_vmem [thread:$0]  %s9787_s12, 128, %s157_s6, [#allocation24]  }
  0x6e   :  { %s8663_s25 = scalar_lea.hbm %s9776_s1, 256 }
  0x6f   :  { %p8664_p6 = scmp.ne.s32.totalorder %s9776_s1, %s8663_s25  ;;  %p8667_p7 = scmp.lt.u32.totalorder %s8663_s25, %s9776_s1 }
  0x71   :  { %p8669_p8 = pnand %p8667_p7, %p8664_p6 }
  0x73   :  { %8672 = shalt.err (!%p8669_p8)
}
  0x74   :  { %s8673_s30 = scalar_lea.vmem %s36_s26, 256  ;;  %p8678_p10 = scmp.lt.s32.totalorder %s36_s26, %s36_s26 }
  0x75   :  { %p8674_p9 = scmp.ne.s32.totalorder %s36_s26, %s8673_s30  ;;  %p8679_p11 = scmp.lt.s32.totalorder %s8673_s30, %s8673_s30 }
  0x77   :  { %p8680_p12 = por %p8679_p11, %p8678_p10 }
  0x79   :  { %p8681_p13 = pnand %p8680_p12, %p8674_p9 }
  0x7b   :  { %8684 = shalt.err (!%p8681_p13)
}
  0x7c   :  { %41 = dma.hbm_to_vmem [thread:$0]  %s9776_s1, 256, %s36_s26, [#allocation6], %s8884_s19, %s8884_s19, %s8885_s29  }
  0x7d   :  { %s8892_s15 = smov [#allocation10]   ;;  %s8893_s20 = smov [#allocation13]  }
  0x7e   :  { %s60_s17 = sshll.u32 %s8892_s15, 4  ;;  %s82_s10 = sshll.u32 %s8893_s20, 4  ;;  %s61_s17 = int_to_ptr.vmem [resolvable:$true] %s60_s17  ;;  %s83_s10 = int_to_ptr.vmem [resolvable:$true] %s82_s10 }
  0x7f   :  { %s8685_s23 = scalar_lea.hbm %s9778_s3, 16 }
  0x80   :  { %p8686_p0 = scmp.ne.s32.totalorder %s9778_s3, %s8685_s23  ;;  %p8689_p1 = scmp.lt.u32.totalorder %s8685_s23, %s9778_s3 }
  0x82   :  { %p8691_p2 = pnand %p8689_p1, %p8686_p0 }
  0x84   :  { %8694 = shalt.err (!%p8691_p2)
}
  0x85   :  { %s8695_s1 = scalar_lea.vmem %s61_s17, 16  ;;  %s8699_s19 = scalar_lea.vmem %s61_s17, 32 }
  0x86   :  { %p8696_p3 = scmp.ne.s32.totalorder %s61_s17, %s8695_s1  ;;  %p8700_p4 = scmp.lt.s32.totalorder %s61_s17, %s61_s17 }
  0x87   :  { %p8701_p5 = scmp.lt.s32.totalorder %s8699_s19, %s8695_s1 }
  0x89   :  { %p8702_p6 = por %p8701_p5, %p8700_p4 }
  0x8b   :  { %p8703_p7 = pnand %p8702_p6, %p8696_p3 }
  0x8d   :  { %8706 = shalt.err (!%p8703_p7)
}
  0x8e   :  { %63 = dma.hbm_to_vmem [thread:$0]  %s9778_s3, 16, %s61_s17, [#allocation9]  }
  0x8f   :  { %s8707_s30 = scalar_lea.hbm %s9780_s5, 32 }
  0x90   :  { %p8708_p8 = scmp.ne.s32.totalorder %s9780_s5, %s8707_s30  ;;  %p8711_p9 = scmp.lt.u32.totalorder %s8707_s30, %s9780_s5 }
  0x92   :  { %p8713_p10 = pnand %p8711_p9, %p8708_p8 }
  0x94   :  { %8716 = shalt.err (!%p8713_p10)
}
  0x95   :  { %s8717_s16 = scalar_lea.vmem %s83_s10, 32  ;;  %p8722_p12 = scmp.lt.s32.totalorder %s83_s10, %s83_s10 }
  0x96   :  { %p8718_p11 = scmp.ne.s32.totalorder %s83_s10, %s8717_s16  ;;  %p8723_p13 = scmp.lt.s32.totalorder %s8717_s16, %s8717_s16 }
  0x98   :  { %p8724_p0 = por %p8723_p13, %p8722_p12 }
  0x9a   :  { %p8725_p1 = pnand %p8724_p0, %p8718_p11 }
  0x9c   :  { %8728 = shalt.err (!%p8725_p1)
}
  0x9d   :  { %85 = dma.hbm_to_vmem [thread:$0]  %s9780_s5, 32, %s83_s10, [#allocation12]  }
  0x9e   :  { %s8894_s22 = smov [#allocation16]   ;;  %s8729_s21 = scalar_lea.hbm %s9782_s7, 8192 }
  0x9f   :  { %s101_s23 = sshll.u32 %s8894_s22, 4  ;;  %p8730_p2 = scmp.ne.s32.totalorder %s9782_s7, %s8729_s21  ;;  %s102_s23 = int_to_ptr.vmem [resolvable:$true] %s101_s23 }
  0xa0   :  { %p8733_p3 = scmp.lt.u32.totalorder %s8729_s21, %s9782_s7 }
  0xa2   :  { %p8735_p4 = pnand %p8733_p3, %p8730_p2 }
  0xa4   :  { %8738 = shalt.err (!%p8735_p4)
}
  0xa5   :  { %s8739_s26 = scalar_lea.vmem %s102_s23, 8192  ;;  %p8744_p6 = scmp.lt.s32.totalorder %s102_s23, %s102_s23 }
  0xa6   :  { %p8740_p5 = scmp.ne.s32.totalorder %s102_s23, %s8739_s26  ;;  %p8745_p7 = scmp.lt.s32.totalorder %s8739_s26, %s8739_s26 }
  0xa8   :  { %p8746_p8 = por %p8745_p7, %p8744_p6 }
  0xaa   :  { %p8747_p9 = pnand %p8746_p8, %p8740_p5 }
  0xac   :  { %8750 = shalt.err (!%p8747_p9)
}
  0xad   :  { %s8895_s5 = smov 256   ;;  %s8896_s10 = smov 16  }
  0xae   :  { %107 = dma.hbm_to_vmem [thread:$0]  %s9782_s7, 8192, %s102_s23, [#allocation15], %s8895_s5, %s8895_s5, %s8896_s10  }
  0xaf   :  { %s8897_s30 = smov [#allocation19]   ;;  %s8898_s6 = smov [#allocation22]  }
  0xb0   :  { %s124_s12 = sshll.u32 %s8897_s30, 4  ;;  %s146_s15 = sshll.u32 %s8898_s6, 4  ;;  %s125_s12 = int_to_ptr.vmem [resolvable:$true] %s124_s12  ;;  %s147_s15 = int_to_ptr.vmem [resolvable:$true] %s146_s15 }
  0xb1   :  { %s8751_s3 = scalar_lea.hbm %s9784_s9, 64 }
  0xb2   :  { %p8752_p10 = scmp.ne.s32.totalorder %s9784_s9, %s8751_s3  ;;  %p8755_p11 = scmp.lt.u32.totalorder %s8751_s3, %s9784_s9 }
  0xb4   :  { %p8757_p12 = pnand %p8755_p11, %p8752_p10 }
  0xb6   :  { %8760 = shalt.err (!%p8757_p12)
}
  0xb7   :  { %s8761_s7 = scalar_lea.vmem %s125_s12, 64  ;;  %p8766_p0 = scmp.lt.s32.totalorder %s125_s12, %s125_s12 }
  0xb8   :  { %p8762_p13 = scmp.ne.s32.totalorder %s125_s12, %s8761_s7  ;;  %p8767_p1 = scmp.lt.s32.totalorder %s8761_s7, %s8761_s7 }
  0xba   :  { %p8768_p2 = por %p8767_p1, %p8766_p0 }
  0xbc   :  { %p8769_p3 = pnand %p8768_p2, %p8762_p13 }
  0xbe   :  { %8772 = shalt.err (!%p8769_p3)
}
  0xbf   :  { %127 = dma.hbm_to_vmem [thread:$0]  %s9784_s9, 64, %s125_s12, [#allocation18]  }
  0xc0   :  { %s8773_s19 = scalar_lea.hbm %s9786_s11, 128 }
  0xc1   :  { %p8774_p4 = scmp.ne.s32.totalorder %s9786_s11, %s8773_s19  ;;  %p8777_p5 = scmp.lt.u32.totalorder %s8773_s19, %s9786_s11 }
  0xc3   :  { %p8779_p6 = pnand %p8777_p5, %p8774_p4 }
  0xc5   :  { %8782 = shalt.err (!%p8779_p6)
}
  0xc6   :  { %s8783_s18 = scalar_lea.vmem %s147_s15, 128  ;;  %p8788_p8 = scmp.lt.s32.totalorder %s147_s15, %s147_s15 }
  0xc7   :  { %p8784_p7 = scmp.ne.s32.totalorder %s147_s15, %s8783_s18  ;;  %p8789_p9 = scmp.lt.s32.totalorder %s8783_s18, %s8783_s18 }
  0xc9   :  { %p8790_p10 = por %p8789_p9, %p8788_p8 }
  0xcb   :  { %p8791_p11 = pnand %p8790_p10, %p8784_p7 }
  0xcd   :  { %8794 = shalt.err (!%p8791_p11)
}
  0xce   :  { %149 = dma.hbm_to_vmem [thread:$0]  %s9786_s11, 128, %s147_s15, [#allocation21]  }
  0xcf   :  { %s8899_s30 = smov [#allocation25]   ;;  %s8900_s6 = smov [#allocation26]  }
  0xd0   :  { %s165_s12 = sshll.u32 %s8899_s30, 4  ;;  %s178_s20 = sshll.u32 %s8900_s6, 4  ;;  %s166_s12 = int_to_ptr.vmem [resolvable:$true] %s165_s12  ;;  %s179_s20 = int_to_ptr.vmem [resolvable:$true] %s178_s20 }
  0xd1   :  { %s8795_s17 = scalar_lea.hbm %s9788_s13, 65536 }
  0xd2   :  { %p8796_p12 = scmp.ne.s32.totalorder %s9788_s13, %s8795_s17  ;;  %p8799_p13 = scmp.lt.u32.totalorder %s8795_s17, %s9788_s13 }
  0xd4   :  { %p8801_p0 = pnand %p8799_p13, %p8796_p12 }
  0xd6   :  { %8804 = shalt.err (!%p8801_p0)
}
  0xd7   :  { %s8805_s11 = scalar_lea.vmem %s166_s12, 65536  ;;  %p8810_p2 = scmp.lt.s32.totalorder %s166_s12, %s166_s12 }
  0xd8   :  { %p8806_p1 = scmp.ne.s32.totalorder %s166_s12, %s8805_s11  ;;  %p8811_p3 = scmp.lt.s32.totalorder %s8805_s11, %s8805_s11 }
  0xda   :  { %p8812_p4 = por %p8811_p3, %p8810_p2 }
  0xdc   :  { %p8813_p5 = pnand %p8812_p4, %p8806_p1 }
  0xde   :  { %8816 = shalt.err (!%p8813_p5)
}
  0xdf   :  { %171 = dma.hbm_to_vmem [thread:$0]  %s9788_s13, 65536, %s166_s12, [#allocation24], %s8888_s8, %s8888_s8, %s8889_s2  }
  0xe0   :  { %s8817_s1 = scalar_lea.hbm %s9789_s14, 128 }
  0xe1   :  { %p8818_p6 = scmp.ne.s32.totalorder %s9789_s14, %s8817_s1  ;;  %p8821_p7 = scmp.lt.u32.totalorder %s8817_s1, %s9789_s14 }
  0xe3   :  { %p8823_p8 = pnand %p8821_p7, %p8818_p6 }
  0xe5   :  { %8826 = shalt.err (!%p8823_p8)
}
  0xe6   :  { %s8827_s10 = scalar_lea.vmem %s179_s20, 128  ;;  %p8832_p10 = scmp.lt.s32.totalorder %s179_s20, %s179_s20 }
  0xe7   :  { %p8828_p9 = scmp.ne.s32.totalorder %s179_s20, %s8827_s10  ;;  %p8833_p11 = scmp.lt.s32.totalorder %s8827_s10, %s8827_s10 }
  0xe9   :  { %p8834_p12 = por %p8833_p11, %p8832_p10 }
  0xeb   :  { %p8835_p13 = pnand %p8834_p12, %p8828_p9 }
  0xed   :  { %8838 = shalt.err (!%p8835_p13)
}
  0xee   :  { %181 = dma.hbm_to_vmem [thread:$0]  %s9789_s14, 128, %s179_s20, [#allocation27]  }
  0xef   :  { %8861 = dma.done.wait [#allocation6], 256  }
  0xf0   :  { %8862 = vsyncadd [#allocation6], 4294967040 }
  0xf1   :  { %8863 = dma.done.wait [#allocation9], 144  }
  0xf2   :  { %8864 = vsyncadd [#allocation9], 4294967152 }
  0xf3   :  { %8865 = dma.done.wait [#allocation12], 2080  }
  0xf4   :  { %8866 = vsyncadd [#allocation12], 4294965216 }
  0xf5   :  { %8867 = dma.done.wait [#allocation15], 8224  }
  0xf6   :  { %8868 = vsyncadd [#allocation15], 4294959072 }
  0xf7   :  { %8869 = dma.done.wait [#allocation18], 128  }
  0xf8   :  { %8870 = vsyncadd [#allocation18], 4294967168 }
  0xf9   :  { %8871 = dma.done.wait [#allocation21], 32896  }
  0xfa   :  { %8872 = vsyncadd [#allocation21], 4294934400 }
  0xfb   :  { %8873 = dma.done.wait [#allocation24], 65664  }
  0xfc   :  { %8874 = vsyncadd [#allocation24], 4294901632 }
  0xfd   :  { %8875 = dma.done.wait [#allocation27], 128  }
  0xfe   :  { %8876 = vsyncadd [#allocation27], 4294967168  ;;  %v8901_v0 = vmov 0.0   ;;  %vm8902_vm0 = vmmov 0   ;;  %v8346_v1 = vld [vmem:[#allocation8] sm:$0xff]   ;;  %v244_v2 = vld [vmem:[#allocation5] sm:$0xff]  ;;  %s240_s18 = scvt.s32.f32 %s9775_s0 }
  0xff   :  { %8231 = vmatprep.subr.bf16.mxu0 %v8901_v0  ;;  %8233 = vmatprep.mubr.msk.bf16.mxu0 %vm8902_vm0, %v8901_v0  ;;  %v245_v3 = vld [vmem:[#allocation5 + $0x8] sm:$0xff]  ;;  %vm262_vm1 = vcmask 130048   ;;  %v8349_v6 = vld [vmem:[#allocation11] ss:$8 sps:$4 sm:$0xff]   ;;  %v8903_v21 = vmov 0   ;;  %s8904_s30 = smov [#allocation28]  }
 0x100   :  { %8232 = vmatpush3.bf16.msra.mxu0 %v8346_v1  ;;  %v246_v4 = vpack.c.bf16 %v245_v3, %v244_v2  ;;  %v8347_v5 = vld [vmem:[#allocation11 + $0x4] ss:$8 sps:$4 sm:$0xff]   ;;  %v8350_v7 = vld [vmem:[#allocation11 + $0x14] ss:$8 sps:$4 sm:$0xff]   ;;  %v8352_v8 = vld [vmem:[#allocation11 + $0x10] ss:$8 sps:$4 sm:$0xff]   ;;  %442 = vmatprep.mubr.bf16.mxu1 %v8903_v21  ;;  %v241_v22 = vstv %s240_s18 }
 0x101   :  { %410 = vmatprep.subr.bf16.mxu1 %v8347_v5  ;;  %v8353_v9 = vld [vmem:[#allocation11 + $0x24] ss:$8 sps:$4 sm:$0xff]   ;;  %v8355_v10 = vld [vmem:[#allocation11 + $0x20] ss:$8 sps:$4 sm:$0xff]   ;;  %v8356_v11 = vld [vmem:[#allocation11 + $0x34] ss:$8 sps:$4 sm:$0xff]   ;;  %8467 = vrcp.f32 %v241_v22 }
 0x102   :  { %411 = vmatpush1.bf16.msra.mxu1 %v8349_v6  ;;  %v8358_v12 = vld [vmem:[#allocation11 + $0x30] ss:$8 sps:$4 sm:$0xff]   ;;  %v8359_v13 = vld [vmem:[#allocation11 + $0x44] ss:$8 sps:$4 sm:$0xff]   ;;  %v8361_v14 = vld [vmem:[#allocation11 + $0x40] ss:$8 sps:$4 sm:$0xff]  }
 0x103   :  { %8234 = vmatmul.mubr.msk.bf16.vlgmr.msra.gmra.mrb[0].mxu0 %vm262_vm1, %v246_v4  ;;  %412 = vmatprep.subr.bf16.mxu1 %v8350_v7  ;;  %v8362_v15 = vld [vmem:[#allocation11 + $0x54] ss:$8 sps:$4 sm:$0xff]   ;;  %v8364_v16 = vld [vmem:[#allocation11 + $0x50] ss:$8 sps:$4 sm:$0xff]   ;;  %v8365_v17 = vld [vmem:[#allocation11 + $0x64] ss:$8 sps:$4 sm:$0xff]  }
 0x104   :  { %v8367_v18 = vld [vmem:[#allocation11 + $0x60] ss:$8 sps:$4 sm:$0xff]   ;;  %v8368_v19 = vld [vmem:[#allocation11 + $0x74] ss:$8 sps:$4 sm:$0xff]   ;;  %v8370_v20 = vld [vmem:[#allocation11 + $0x70] ss:$8 sps:$4 sm:$0xff]  }
 0x105   :  { %v7378_v24 = vld [vmem:[#allocation10] ss:$0 sm:$0xff]  ;;  %v8373_v36 = vld [vmem:[#allocation16 + $0x4] ss:$16 sps:$4 sm:$0xff]   ;;  %v8376_v37 = vld [vmem:[#allocation16 + $0xc] ss:$16 sps:$4 sm:$0xff]  }
 0x106   :  { %413 = vmatpush1.bf16.msra.mxu1 %v8352_v8  ;;  %v8371_v38 = vld [vmem:[#allocation16] ss:$16 sps:$4 sm:$0xff]   ;;  %v8374_v39 = vld [vmem:[#allocation16 + $0x8] ss:$16 sps:$4 sm:$0xff]   ;;  %940 = vmatprep.subr.bf16.mxu0 %v8373_v36  ;;  %v8379_v40 = vld [vmem:[#allocation16 + $0x24] ss:$16 sps:$4 sm:$0xff]  }
 0x107   :  { %414 = vmatprep.subr.bf16.mxu1 %v8353_v9  ;;  %941 = vmatpush1.bf16.msra.mxu0 %v8371_v38  ;;  %v8382_v41 = vld [vmem:[#allocation16 + $0x2c] ss:$16 sps:$4 sm:$0xff]   ;;  %v8377_v42 = vld [vmem:[#allocation16 + $0x20] ss:$16 sps:$4 sm:$0xff]   ;;  %v8380_v43 = vld [vmem:[#allocation16 + $0x28] ss:$16 sps:$4 sm:$0xff]  }
 0x108   :  { %942 = vmatprep.subr.bf16.mxu0 %v8379_v40  ;;  %v8385_v44 = vld [vmem:[#allocation16 + $0x44] ss:$16 sps:$4 sm:$0xff]   ;;  %v8388_v45 = vld [vmem:[#allocation16 + $0x4c] ss:$16 sps:$4 sm:$0xff]   ;;  %v8383_v46 = vld [vmem:[#allocation16 + $0x40] ss:$16 sps:$4 sm:$0xff]   ;;  %v233_v40 = vstv %s9775_s0 }
 0x109   :  { %v8386_v47 = vld [vmem:[#allocation16 + $0x48] ss:$16 sps:$4 sm:$0xff]   ;;  %v8391_v48 = vld [vmem:[#allocation16 + $0x64] ss:$16 sps:$4 sm:$0xff]   ;;  %v8394_v49 = vld [vmem:[#allocation16 + $0x6c] ss:$16 sps:$4 sm:$0xff]  }
 0x10a   :  { %415 = vmatpush1.bf16.msra.mxu1 %v8355_v10  ;;  %v8389_v50 = vld [vmem:[#allocation16 + $0x60] ss:$16 sps:$4 sm:$0xff]   ;;  %v8392_v51 = vld [vmem:[#allocation16 + $0x68] ss:$16 sps:$4 sm:$0xff]   ;;  %v8397_v53 = vld [vmem:[#allocation16 + $0x84] ss:$16 sps:$4 sm:$0xff]  }
 0x10b   :  { %416 = vmatprep.subr.bf16.mxu1 %v8356_v11  ;;  %v8468_v23 = vpop.eup %8467  ;;  %943 = vmatpush1.bf16.msra.mxu0 %v8377_v42  ;;  %v8395_v52 = vld [vmem:[#allocation16 + $0x80] ss:$16 sps:$4 sm:$0xff]   ;;  %v8398_v54 = vld [vmem:[#allocation16 + $0x88] ss:$16 sps:$4 sm:$0xff]   ;;  %v8400_v55 = vld [vmem:[#allocation16 + $0x8c] ss:$16 sps:$4 sm:$0xff]  }
 0x10c   :  { %8317 = vpush %v8468_v23  ;;  %944 = vmatprep.subr.bf16.mxu0 %v8385_v44  ;;  %v8403_v56 = vld [vmem:[#allocation16 + $0xa4] ss:$16 sps:$4 sm:$0xff]   ;;  %v8406_v57 = vld [vmem:[#allocation16 + $0xac] ss:$16 sps:$4 sm:$0xff]   ;;  %v8401_v58 = vld [vmem:[#allocation16 + $0xa0] ss:$16 sps:$4 sm:$0xff]  }
 0x10d   :  { %v8404_v59 = vld [vmem:[#allocation16 + $0xa8] ss:$16 sps:$4 sm:$0xff]   ;;  %v8409_v60 = vld [vmem:[#allocation16 + $0xc4] ss:$16 sps:$4 sm:$0xff]   ;;  %v8412_v61 = vld [vmem:[#allocation16 + $0xcc] ss:$16 sps:$4 sm:$0xff]  }
 0x10e   :  { %417 = vmatpush1.bf16.msra.mxu1 %v8358_v12  ;;  %v8407_v62 = vld [vmem:[#allocation16 + $0xc0] ss:$16 sps:$4 sm:$0xff]   ;;  %v8410_v63 = vld [vmem:[#allocation16 + $0xc8] ss:$16 sps:$4 sm:$0xff]   ;;  %v8415_v1 = vld [vmem:[#allocation16 + $0xe4] ss:$16 sps:$4 sm:$0xff]  }
 0x10f   :  { %418 = vmatprep.subr.bf16.mxu1 %v8359_v13  ;;  %945 = vmatpush1.bf16.msra.mxu0 %v8383_v46  ;;  %v8418_v2 = vld [vmem:[#allocation16 + $0xec] ss:$16 sps:$4 sm:$0xff]   ;;  %v8413_v3 = vld [vmem:[#allocation16 + $0xe0] ss:$16 sps:$4 sm:$0xff]   ;;  %v8416_v4 = vld [vmem:[#allocation16 + $0xe8] ss:$16 sps:$4 sm:$0xff]  }
 0x110   :  { %946 = vmatprep.subr.bf16.mxu0 %v8391_v48  ;;  %v8421_v5 = vld [vmem:[#allocation16 + $0x104] ss:$16 sps:$4 sm:$0xff]   ;;  %v8424_v6 = vld [vmem:[#allocation16 + $0x10c] ss:$16 sps:$4 sm:$0xff]   ;;  %v8419_v7 = vld [vmem:[#allocation16 + $0x100] ss:$16 sps:$4 sm:$0xff]  }
 0x111   :  { %v8422_v8 = vld [vmem:[#allocation16 + $0x108] ss:$16 sps:$4 sm:$0xff]   ;;  %v8427_v9 = vld [vmem:[#allocation16 + $0x124] ss:$16 sps:$4 sm:$0xff]   ;;  %v8430_v10 = vld [vmem:[#allocation16 + $0x12c] ss:$16 sps:$4 sm:$0xff]  }
 0x112   :  { %419 = vmatpush1.bf16.msra.mxu1 %v8361_v14  ;;  %v8425_v11 = vld [vmem:[#allocation16 + $0x120] ss:$16 sps:$4 sm:$0xff]   ;;  %v8428_v12 = vld [vmem:[#allocation16 + $0x128] ss:$16 sps:$4 sm:$0xff]   ;;  %v8433_v13 = vld [vmem:[#allocation16 + $0x144] ss:$16 sps:$4 sm:$0xff]  }
 0x113   :  { %420 = vmatprep.subr.bf16.mxu1 %v8362_v15  ;;  %947 = vmatpush1.bf16.msra.mxu0 %v8389_v50  ;;  %v8436_v14 = vld [vmem:[#allocation16 + $0x14c] ss:$16 sps:$4 sm:$0xff]   ;;  %v8431_v15 = vld [vmem:[#allocation16 + $0x140] ss:$16 sps:$4 sm:$0xff]   ;;  %v8445_v21 = vld [vmem:[#allocation16 + $0x184] ss:$16 sps:$4 sm:$0xff]  }
 0x114   :  { %948 = vmatprep.subr.bf16.mxu0 %v8397_v53  ;;  %v8448_v22 = vld [vmem:[#allocation16 + $0x18c] ss:$16 sps:$4 sm:$0xff]   ;;  %v8443_v23 = vld [vmem:[#allocation16 + $0x180] ss:$16 sps:$4 sm:$0xff]   ;;  %v8464_v36 = vld [vmem:[#allocation16 + $0x1e8] ss:$16 sps:$4 sm:$0xff]  }
 0x115   :  { %s7357_s12 = sshll.u32 %s8904_s30, 4  ;;  %s7358_s12 = int_to_ptr.vmem [resolvable:$true] %s7357_s12 }
 0x116   :  { %421 = vmatpush1.bf16.msra.mxu1 %v8364_v16  ;;  %v8434_v16 = vld [vmem:[#allocation16 + $0x148] ss:$16 sps:$4 sm:$0xff]   ;;  %s8839_s6 = scalar_lea.vmem %s7358_s12, 2048  ;;  %p8844_p1 = scmp.lt.s32.totalorder %s7358_s12, %s7358_s12 }
 0x117   :  { %422 = vmatprep.subr.bf16.mxu1 %v8365_v17  ;;  %949 = vmatpush1.bf16.msra.mxu0 %v8395_v52  ;;  %v8439_v17 = vld [vmem:[#allocation16 + $0x164] ss:$16 sps:$4 sm:$0xff]   ;;  %p8840_p0 = scmp.ne.s32.totalorder %s7358_s12, %s8839_s6  ;;  %p8845_p2 = scmp.lt.s32.totalorder %s8839_s6, %s8839_s6 }
 0x118   :  { %950 = vmatprep.subr.bf16.mxu0 %v8403_v56 }
 0x119   :  { %p8846_p3 = por %p8845_p2, %p8844_p1 }
 0x11a   :  { %423 = vmatpush1.bf16.msra.mxu1 %v8367_v18  ;;  %v8442_v18 = vld [vmem:[#allocation16 + $0x16c] ss:$16 sps:$4 sm:$0xff]  }
 0x11b   :  { %424 = vmatprep.subr.bf16.mxu1 %v8368_v19  ;;  %951 = vmatpush1.bf16.msra.mxu0 %v8401_v58  ;;  %v8437_v19 = vld [vmem:[#allocation16 + $0x160] ss:$16 sps:$4 sm:$0xff]   ;;  %p8847_p4 = pnand %p8846_p3, %p8840_p0 }
 0x11c   :  { %952 = vmatprep.subr.bf16.mxu0 %v8409_v60 }
 0x11e   :  { %425 = vmatpush1.bf16.msra.mxu1 %v8370_v20  ;;  %v8440_v20 = vld [vmem:[#allocation16 + $0x168] ss:$16 sps:$4 sm:$0xff]  }
 0x11f   :  { %983 = vmatprep.subr.bf16.mxu1 %v8376_v37  ;;  %953 = vmatpush1.bf16.msra.mxu0 %v8407_v62  ;;  %v230_v37 = vlaneseq }
 0x120   :  { %954 = vmatprep.subr.bf16.mxu0 %v8415_v1 }
 0x121   :  { %v9173_v38 = vshrl.u32 %v230_v37, 7  ;;  %v526_v37 = vld [vmem:[#allocation14] sm:$0x3] }
 0x123   :  { %955 = vmatpush1.bf16.msra.mxu0 %v8413_v3  ;;  %vm234_vm4 = vcmp.lt.s32.totalorder %v9173_v38, %v233_v40 }
 0x124   :  { %956 = vmatprep.subr.bf16.mxu0 %v8421_v5 }
 0x127   :  { %957 = vmatpush1.bf16.msra.mxu0 %v8419_v7 }
 0x128   :  { %958 = vmatprep.subr.bf16.mxu0 %v8427_v9 }
 0x12b   :  { %959 = vmatpush1.bf16.msra.mxu0 %v8425_v11 }
 0x12c   :  { %960 = vmatprep.subr.bf16.mxu0 %v8433_v13 }
 0x12f   :  { %961 = vmatpush1.bf16.msra.mxu0 %v8431_v15 }
 0x130   :  { %962 = vmatprep.subr.bf16.mxu0 %v8439_v17 }
 0x133   :  { %963 = vmatpush1.bf16.msra.mxu0 %v8437_v19 }
 0x134   :  { %964 = vmatprep.subr.bf16.mxu0 %v8445_v21 }
 0x137   :  { %965 = vmatpush1.bf16.msra.mxu0 %v8443_v23 }
 0x13d   :  { %s8318_s0 = spop %8317 }
 0x13e   :  { %v9190_v62 = vstv %s8318_s0 }
 0x1d6   :  { %v300_v25 = vpop.f32.mrb[0].mxu0 }
 0x1d7   :  { %v301_v26 = vadd.f32 %v7378_v24, %v300_v25  ;;  %v8235_v27 = vpop.f32.mrb[1].mxu0  ;;  %v8451_v25 = vld [vmem:[#allocation16 + $0x1a4] ss:$16 sps:$4 sm:$0xff]  }
 0x1d8   :  { %v303_v28 = vpop.f32.mrb[2].mxu0  ;;  %v8449_v27 = vld [vmem:[#allocation16 + $0x1a0] ss:$16 sps:$4 sm:$0xff]   ;;  %966 = vmatprep.subr.bf16.mxu0 %v8451_v25 }
 0x1d9   :  { %v309_v29 = vmul.f32 0.2, %v301_v26  ;;  %v304_v30 = vadd.f32 %v7378_v24, %v303_v28  ;;  %v8236_v31 = vpop.f32.mrb[3].mxu0  ;;  %vm307_vm2 = vcmp.gt.f32.partialorder %v301_v26, 0.0  ;;  %v8446_v24 = vld [vmem:[#allocation16 + $0x188] ss:$16 sps:$4 sm:$0xff]   ;;  %967 = vmatpush1.bf16.msra.mxu0 %v8449_v27 }
 0x1da   :  { %v8452_v28 = vld [vmem:[#allocation16 + $0x1a8] ss:$16 sps:$4 sm:$0xff]   ;;  %v8455_v31 = vld [vmem:[#allocation16 + $0x1c0] ss:$16 sps:$4 sm:$0xff]  }
 0x1db   :  { %vm308_vm3 = vcmp.gt.f32.partialorder %v304_v30, 0.0  ;;  %v310_v32 = vmul.f32 0.2, %v304_v30  ;;  %v311_v33 = vsel %vm307_vm2, %v301_v26, %v309_v29  ;;  %v8454_v26 = vld [vmem:[#allocation16 + $0x1ac] ss:$16 sps:$4 sm:$0xff]  }
 0x1dc   :  { %v8457_v29 = vld [vmem:[#allocation16 + $0x1c4] ss:$16 sps:$4 sm:$0xff]  }
 0x1dd   :  { %v312_v34 = vsel %vm308_vm3, %v304_v30, %v310_v32  ;;  %v8460_v30 = vld [vmem:[#allocation16 + $0x1cc] ss:$16 sps:$4 sm:$0xff]   ;;  %v8458_v32 = vld [vmem:[#allocation16 + $0x1c8] ss:$16 sps:$4 sm:$0xff]   ;;  %968 = vmatprep.subr.bf16.mxu0 %v8457_v29 }
 0x1de   :  { %v313_v35 = vpack.c.bf16 %v312_v34, %v311_v33  ;;  %v8463_v33 = vld [vmem:[#allocation16 + $0x1e4] ss:$16 sps:$4 sm:$0xff]   ;;  %v8466_v34 = vld [vmem:[#allocation16 + $0x1ec] ss:$16 sps:$4 sm:$0xff]   ;;  %969 = vmatpush1.bf16.msra.mxu0 %v8455_v31 }
 0x1df   :  { %970 = vmatprep.subr.bf16.mxu0 %v8463_v33 }
 0x1e0   :  { %443 = vmatmul.mubr.bf16.vlgmr.msra.gmra.mrb[0].mxu1 %v313_v35  ;;  %v8461_v35 = vld [vmem:[#allocation16 + $0x1e0] ss:$16 sps:$4 sm:$0xff]  }
 0x1e1   :  { %984 = vmatpush1.bf16.msra.mxu1 %v8374_v39  ;;  %v232_v39 = vadd.s32 8, %v9173_v38 }
 0x1e2   :  { %985 = vmatprep.subr.bf16.mxu1 %v8382_v41  ;;  %971 = vmatpush1.bf16.msra.mxu0 %v8461_v35  ;;  %v9181_v41 = vsel %vm234_vm4, 1.0, %v8901_v0  ;;  %v510_v35 = vld [vmem:[#allocation13] sm:$0x3] }
 0x1e3   :  { %vm235_vm5 = vcmp.lt.s32.totalorder %v232_v39, %v233_v40 }
 0x1e4   :  { %v9184_v42 = vsel %vm235_vm5, 1.0, %v8901_v0 }
 0x1e5   :  { %986 = vmatpush1.bf16.msra.mxu1 %v8380_v43 }
 0x1e6   :  { %987 = vmatprep.subr.bf16.mxu1 %v8388_v45 }
 0x1e9   :  { %988 = vmatpush1.bf16.msra.mxu1 %v8386_v47 }
 0x1ea   :  { %989 = vmatprep.subr.bf16.mxu1 %v8394_v49 }
 0x1ed   :  { %990 = vmatpush1.bf16.msra.mxu1 %v8392_v51 }
 0x1ee   :  { %991 = vmatprep.subr.bf16.mxu1 %v8400_v55 }
 0x1f1   :  { %992 = vmatpush1.bf16.msra.mxu1 %v8398_v54 }
 0x1f2   :  { %993 = vmatprep.subr.bf16.mxu1 %v8406_v57 }
 0x1f5   :  { %994 = vmatpush1.bf16.msra.mxu1 %v8404_v59 }
 0x1f6   :  { %995 = vmatprep.subr.bf16.mxu1 %v8412_v61 }
 0x1f9   :  { %996 = vmatpush1.bf16.msra.mxu1 %v8410_v63 }
 0x1fa   :  { %997 = vmatprep.subr.bf16.mxu1 %v8418_v2 }
 0x1fd   :  { %998 = vmatpush1.bf16.msra.mxu1 %v8416_v4 }
 0x1fe   :  { %999 = vmatprep.subr.bf16.mxu1 %v8424_v6 }
 0x201   :  { %1000 = vmatpush1.bf16.msra.mxu1 %v8422_v8 }
 0x202   :  { %1001 = vmatprep.subr.bf16.mxu1 %v8430_v10 }
 0x205   :  { %1002 = vmatpush1.bf16.msra.mxu1 %v8428_v12 }
 0x206   :  { %1003 = vmatprep.subr.bf16.mxu1 %v8436_v14 }
 0x209   :  { %1004 = vmatpush1.bf16.msra.mxu1 %v8434_v16 }
 0x20a   :  { %1005 = vmatprep.subr.bf16.mxu1 %v8442_v18 }
 0x20d   :  { %1006 = vmatpush1.bf16.msra.mxu1 %v8440_v20 }
 0x20e   :  { %1007 = vmatprep.subr.bf16.mxu1 %v8448_v22 }
 0x211   :  { %1008 = vmatpush1.bf16.msra.mxu1 %v8446_v24 }
 0x212   :  { %1009 = vmatprep.subr.bf16.mxu1 %v8454_v26 }
 0x215   :  { %1010 = vmatpush1.bf16.msra.mxu1 %v8452_v28 }
 0x216   :  { %1011 = vmatprep.subr.bf16.mxu1 %v8460_v30 }
 0x219   :  { %1012 = vmatpush1.bf16.msra.mxu1 %v8458_v32 }
 0x21a   :  { %1013 = vmatprep.subr.bf16.mxu1 %v8466_v34  ;;  %v9201_v34 = vsub.s32 0, %v9173_v38 }
 0x21c   :  { %v515_v39 = vrot.slane %v510_v35, %v9201_v34 }
 0x21d   :  { %1014 = vmatpush1.bf16.msra.mxu1 %v8464_v36  ;;  %v9204_v36 = vsub.s32 1, %v9173_v38 }
 0x2b3   :  { %v444_v43 = vpop.f32.mrb[0].mxu1 }
 0x2b4   :  { %v446_v44 = vpop.f32.mrb[1].mxu1  ;;  %v453_v46 = vmul.f32 %v9181_v41, %v444_v43 }
 0x2b5   :  { %v448_v45 = vpop.f32.mrb[2].mxu1  ;;  %v454_v49 = vmul.f32 %v9181_v41, %v446_v44 }
 0x2b6   :  { %v455_v47 = vmul.f32 %v9184_v42, %v448_v45  ;;  %v450_v48 = vpop.f32.mrb[3].mxu1 }
 0x2b7   :  { %v456_v50 = vmul.f32 %v9184_v42, %v450_v48 }
 0x2b8   :  { %v457_v51 = vadd.f32 %v455_v47, %v453_v46 }
 0x2b9   :  { %v464_v52 = vadd.f32 %v456_v50, %v454_v49  ;;  %v535_v50 = vrot.slane %v526_v37, %v9204_v36 }
 0x2ba   :  { %v458_v53 = vrot.slane %v457_v51, 4 }
 0x2bb   :  { %v465_v54 = vrot.slane %v464_v52, 4 }
 0x2bc   :  { %v459_v55 = vadd.f32 %v458_v53, %v457_v51 }
 0x2bd   :  { %v466_v56 = vadd.f32 %v465_v54, %v464_v52 }
 0x2be   :  { %v460_v0 = vrot.slane %v459_v55, 2 }
 0x2bf   :  { %v467_v57 = vrot.slane %v466_v56, 2 }
 0x2c0   :  { %v461_v58 = vadd.f32 %v460_v0, %v459_v55 }
 0x2c1   :  { %v468_v59 = vadd.f32 %v467_v57, %v466_v56 }
 0x2c2   :  { %v462_v60 = vrot.slane %v461_v58, 1 }
 0x2c3   :  { %v469_v61 = vrot.slane %v468_v59, 1 }
 0x2c4   :  { %v463_v63 = vadd.f32 %v462_v60, %v461_v58 }
 0x2c5   :  { %v470_v1 = vadd.f32 %v469_v61, %v468_v59 }
 0x2c6   :  { %v472_v2 = vmul.f32 %v9190_v62, %v463_v63 }
 0x2c7   :  { %v473_v3 = vmul.f32 %v9190_v62, %v470_v1 }
 0x2c8   :  { %v474_v4 = vsub.f32 %v444_v43, %v472_v2  ;;  %v476_v5 = vsub.f32 %v448_v45, %v472_v2  ;;  %v519_v43 = vrot.slane %v510_v35, %v9204_v36  ;;  %v531_v45 = vrot.slane %v526_v37, %v9201_v34  ;;  %v1255_v35 = vld [vmem:[#allocation20 + $0xe8] sm:$0xff] }
 0x2c9   :  { %v475_v6 = vsub.f32 %v446_v44, %v473_v3  ;;  %v477_v7 = vsub.f32 %v450_v48, %v473_v3 }
 0x2ca   :  { %v478_v8 = vmul.f32 %v474_v4, %v474_v4  ;;  %v480_v9 = vmul.f32 %v476_v5, %v476_v5 }
 0x2cb   :  { %v479_v10 = vmul.f32 %v475_v6, %v475_v6  ;;  %v481_v11 = vmul.f32 %v477_v7, %v477_v7 }
 0x2cc   :  { %v482_v12 = vmul.f32 %v9181_v41, %v478_v8  ;;  %v484_v13 = vmul.f32 %v9184_v42, %v480_v9  ;;  %v1227_v8 = vld [vmem:[#allocation20 + $0x8] sm:$0xff] }
 0x2cd   :  { %v483_v14 = vmul.f32 %v9181_v41, %v479_v10  ;;  %v485_v15 = vmul.f32 %v9184_v42, %v481_v11  ;;  %v1231_v10 = vld [vmem:[#allocation20 + $0x28] sm:$0xff] }
 0x2ce   :  { %v486_v16 = vadd.f32 %v484_v13, %v482_v12  ;;  %v7463_v12 = vcombine.low %v1227_v8, %v1231_v10  ;;  %v7464_v13 = vcombine.high %v1227_v8, %v1231_v10  ;;  %v1287_v8 = vld [vmem:[#allocation20 + $0x1e8] sm:$0xff] }
 0x2cf   :  { %v493_v17 = vadd.f32 %v485_v15, %v483_v14  ;;  %v1234_v14 = vld [vmem:[#allocation20 + $0x40] sm:$0xff] }
 0x2d0   :  { %v487_v18 = vrot.slane %v486_v16, 4  ;;  %2848 = vmatprep.subr.bf16.mxu1 %v7464_v13  ;;  %v1238_v15 = vld [vmem:[#allocation20 + $0x60] sm:$0xff] }
 0x2d1   :  { %v494_v19 = vrot.slane %v493_v17, 4  ;;  %v1294_v13 = vld [vmem:[#allocation20 + $0x220] sm:$0xff] }
 0x2d2   :  { %v488_v20 = vadd.f32 %v487_v18, %v486_v16  ;;  %v1235_v16 = vld [vmem:[#allocation20 + $0x48] sm:$0xff] }
 0x2d3   :  { %v495_v21 = vadd.f32 %v494_v19, %v493_v17  ;;  %v7470_v17 = vcombine.high %v1234_v14, %v1238_v15  ;;  %v1239_v18 = vld [vmem:[#allocation20 + $0x68] sm:$0xff]  ;;  %v7469_v19 = vcombine.low %v1234_v14, %v1238_v15 }
 0x2d4   :  { %v489_v22 = vrot.slane %v488_v20, 2  ;;  %v1291_v14 = vld [vmem:[#allocation20 + $0x208] sm:$0xff] }
 0x2d5   :  { %v496_v23 = vrot.slane %v495_v21, 2 }
 0x2d6   :  { %v490_v24 = vadd.f32 %v489_v22, %v488_v20  ;;  %v7471_v20 = vcombine.low %v1235_v16, %v1239_v18  ;;  %v1242_v22 = vld [vmem:[#allocation20 + $0x80] sm:$0xff] }
 0x2d7   :  { %v497_v25 = vadd.f32 %v496_v23, %v495_v21  ;;  %v7472_v21 = vcombine.high %v1235_v16, %v1239_v18  ;;  %v1246_v23 = vld [vmem:[#allocation20 + $0xa0] sm:$0xff]  ;;  %v1295_v16 = vld [vmem:[#allocation20 + $0x228] sm:$0xff] }
 0x2d8   :  { %v491_v26 = vrot.slane %v490_v24, 1  ;;  %v7527_v18 = vcombine.low %v1291_v14, %v1295_v16 }
 0x2d9   :  { %v498_v27 = vrot.slane %v497_v25, 1 }
 0x2da   :  { %v492_v28 = vadd.f32 %v491_v26, %v490_v24  ;;  %v1243_v24 = vld [vmem:[#allocation20 + $0x88] sm:$0xff] }
 0x2db   :  { %v499_v29 = vadd.f32 %v498_v27, %v497_v25  ;;  %v7478_v25 = vcombine.high %v1242_v22, %v1246_v23  ;;  %v1247_v26 = vld [vmem:[#allocation20 + $0xa8] sm:$0xff]  ;;  %v7477_v27 = vcombine.low %v1242_v22, %v1246_v23 }
 0x2dc   :  { %v500_v30 = vmul.f32 %v492_v28, %v9190_v62  ;;  %v7479_v28 = vcombine.low %v1243_v24, %v1247_v26  ;;  %v1299_v22 = vld [vmem:[#allocation20 + $0x248] sm:$0xff] }
 0x2dd   :  { %v501_v31 = vmul.f32 %v499_v29, %v9190_v62  ;;  %v7480_v29 = vcombine.high %v1243_v24, %v1247_v26  ;;  %v1303_v24 = vld [vmem:[#allocation20 + $0x268] sm:$0xff] }
 0x2de   :  { %v502_v32 = vadd.f32 0.8, %v500_v30  ;;  %v1250_v30 = vld [vmem:[#allocation20 + $0xc0] sm:$0xff]  ;;  %v7535_v26 = vcombine.low %v1299_v22, %v1303_v24 }
 0x2df   :  { %v503_v33 = vadd.f32 0.8, %v501_v31  ;;  %v1254_v31 = vld [vmem:[#allocation20 + $0xe0] sm:$0xff] }
 0x2e0   :  { %8469 = vrsqrt.f32 %v502_v32  ;;  %v1251_v32 = vld [vmem:[#allocation20 + $0xc8] sm:$0xff]  ;;  %v7485_v37 = vcombine.low %v1250_v30, %v1254_v31 }
 0x2e1   :  { %8471 = vrsqrt.f32 %v503_v33  ;;  %v7486_v33 = vcombine.high %v1250_v30, %v1254_v31  ;;  %v1307_v30 = vld [vmem:[#allocation20 + $0x288] sm:$0xff] }
 0x2ea   :  { %v8470_v40 = vpop.eup %8469 }
 0x2eb   :  { %v8472_v44 = vpop.eup %8471  ;;  %v506_v46 = vmul.f32 %v8470_v40, %v474_v4  ;;  %v508_v47 = vmul.f32 %v8470_v40, %v476_v5  ;;  %v7488_v40 = vcombine.high %v1251_v32, %v1255_v35 }
 0x2ec   :  { %v507_v48 = vmul.f32 %v8472_v44, %v475_v6  ;;  %v509_v49 = vmul.f32 %v8472_v44, %v477_v7  ;;  %v1226_v6 = vld [vmem:[#allocation20] sm:$0xff] }
 0x2ed   :  { %v522_v51 = vmul.f32 %v515_v39, %v506_v46  ;;  %v524_v52 = vmul.f32 %v515_v39, %v508_v47  ;;  %v1230_v7 = vld [vmem:[#allocation20 + $0x20] sm:$0xff]  ;;  %v7487_v39 = vcombine.low %v1251_v32, %v1255_v35  ;;  %v1263_v47 = vld [vmem:[#allocation20 + $0x128] sm:$0xff] }
 0x2ee   :  { %v523_v53 = vmul.f32 %v519_v43, %v507_v48  ;;  %v525_v54 = vmul.f32 %v519_v43, %v509_v49  ;;  %v7462_v9 = vcombine.high %v1226_v6, %v1230_v7  ;;  %v7461_v11 = vcombine.low %v1226_v6, %v1230_v7  ;;  %v1258_v43 = vld [vmem:[#allocation20 + $0x100] sm:$0xff]  ;;  %v1283_v6 = vld [vmem:[#allocation20 + $0x1c8] sm:$0xff] }
 0x2ef   :  { %v538_v55 = vadd.f32 %v531_v45, %v522_v51  ;;  %v540_v56 = vadd.f32 %v531_v45, %v524_v52  ;;  %v1262_v44 = vld [vmem:[#allocation20 + $0x120] sm:$0xff]  ;;  %v1259_v45 = vld [vmem:[#allocation20 + $0x108] sm:$0xff]  ;;  %v7519_v10 = vcombine.low %v1283_v6, %v1287_v8 }
 0x2f0   :  { %v539_v0 = vadd.f32 %v535_v50, %v523_v53  ;;  %v541_v57 = vadd.f32 %v535_v50, %v525_v54  ;;  %2762 = vmatprep.subr.bf16.mxu0 %v7462_v9  ;;  %v7494_v46 = vcombine.high %v1258_v43, %v1262_v44  ;;  %v7493_v48 = vcombine.low %v1258_v43, %v1262_v44  ;;  %v1266_v51 = vld [vmem:[#allocation20 + $0x140] sm:$0xff]  ;;  %v1267_v53 = vld [vmem:[#allocation20 + $0x148] sm:$0xff] }
 0x2f1   :  { %vm542_vm6 = vcmp.gt.f32.partialorder %v538_v55, 0.0  ;;  %vm544_vm7 = vcmp.gt.f32.partialorder %v540_v56, 0.0  ;;  %v546_v58 = vmul.f32 0.2, %v538_v55  ;;  %v548_v59 = vmul.f32 0.2, %v540_v56 }
 0x2f2   :  { %vm543_vm8 = vcmp.gt.f32.partialorder %v539_v0, 0.0  ;;  %vm545_vm9 = vcmp.gt.f32.partialorder %v541_v57, 0.0  ;;  %v547_v60 = vmul.f32 0.2, %v539_v0  ;;  %v549_v61 = vmul.f32 0.2, %v541_v57 }
 0x2f3   :  { %v550_v63 = vsel %vm542_vm6, %v538_v55, %v546_v58  ;;  %v552_v1 = vsel %vm544_vm7, %v540_v56, %v548_v59  ;;  %v7495_v49 = vcombine.low %v1259_v45, %v1263_v47  ;;  %v7496_v50 = vcombine.high %v1259_v45, %v1263_v47  ;;  %v1270_v52 = vld [vmem:[#allocation20 + $0x160] sm:$0xff]  ;;  %v1271_v55 = vld [vmem:[#allocation20 + $0x168] sm:$0xff] }
 0x2f4   :  { %v551_v2 = vsel %vm543_vm8, %v539_v0, %v547_v60  ;;  %v553_v3 = vsel %vm545_vm9, %v541_v57, %v549_v61  ;;  %v554_v4 = vpack.c.bf16 %v552_v1, %v550_v63  ;;  %v7502_v54 = vcombine.high %v1266_v51, %v1270_v52  ;;  %v1274_v58 = vld [vmem:[#allocation20 + $0x180] sm:$0xff]  ;;  %v1275_v60 = vld [vmem:[#allocation20 + $0x188] sm:$0xff] }
 0x2f5   :  { %v555_v5 = vpack.c.bf16 %v553_v3, %v551_v2  ;;  %v7501_v56 = vcombine.low %v1266_v51, %v1270_v52  ;;  %v7503_v0 = vcombine.low %v1267_v53, %v1271_v55  ;;  %v7504_v57 = vcombine.high %v1267_v53, %v1271_v55  ;;  %v1278_v59 = vld [vmem:[#allocation20 + $0x1a0] sm:$0xff]  ;;  %v1279_v63 = vld [vmem:[#allocation20 + $0x1a8] sm:$0xff] }
 0x2f6   :  { %v7510_v61 = vcombine.high %v1274_v58, %v1278_v59  ;;  %v7509_v1 = vcombine.low %v1274_v58, %v1278_v59  ;;  %v7511_v2 = vcombine.low %v1275_v60, %v1279_v63  ;;  %v7512_v3 = vcombine.high %v1275_v60, %v1279_v63  ;;  %v1311_v32 = vld [vmem:[#allocation20 + $0x2a8] sm:$0xff] }
 0x2f7   :  { %972 = vmatprep.mubr.bf16.mxu0 %v555_v5  ;;  %1015 = vmatprep.mubr.bf16.mxu1 %v555_v5  ;;  %v1286_v5 = vld [vmem:[#allocation20 + $0x1e0] sm:$0xff]  ;;  %v7543_v35 = vcombine.low %v1307_v30, %v1311_v32  ;;  %v1315_v43 = vld [vmem:[#allocation20 + $0x2c8] sm:$0xff] }
 0x2f8   :  { %973 = vmatmul.mubr.bf16.vlgmr.msra.gmra.mrb[4].mxu0 %v554_v4  ;;  %1016 = vmatmul.mubr.bf16.vlgmr.msra.gmra.mrb[4].mxu1 %v554_v4  ;;  %v1282_v4 = vld [vmem:[#allocation20 + $0x1c0] sm:$0xff]  ;;  %v1319_v45 = vld [vmem:[#allocation20 + $0x2e8] sm:$0xff] }
 0x2f9   :  { %2763 = vmatpush1.bf16.msra.mxu0 %v7461_v11  ;;  %2849 = vmatpush1.bf16.msra.mxu1 %v7463_v12  ;;  %v7518_v7 = vcombine.high %v1282_v4, %v1286_v5  ;;  %v7517_v9 = vcombine.low %v1282_v4, %v1286_v5  ;;  %v7520_v11 = vcombine.high %v1283_v6, %v1287_v8  ;;  %v1290_v12 = vld [vmem:[#allocation20 + $0x200] sm:$0xff]  ;;  %v1323_v51 = vld [vmem:[#allocation20 + $0x308] sm:$0xff] }
 0x2fa   :  { %2764 = vmatprep.subr.bf16.mxu0 %v7470_v17  ;;  %2850 = vmatprep.subr.bf16.mxu1 %v7472_v21  ;;  %v7526_v15 = vcombine.high %v1290_v12, %v1294_v13  ;;  %v7525_v17 = vcombine.low %v1290_v12, %v1294_v13  ;;  %v1302_v21 = vld [vmem:[#allocation20 + $0x260] sm:$0xff]  ;;  %v7551_v47 = vcombine.low %v1315_v43, %v1319_v45  ;;  %v1327_v53 = vld [vmem:[#allocation20 + $0x328] sm:$0xff] }
 0x2fb   :  { %v7559_v55 = vcombine.low %v1323_v51, %v1327_v53  ;;  %v1331_v59 = vld [vmem:[#allocation20 + $0x348] sm:$0xff] }
 0x2fc   :  { %v1335_v60 = vld [vmem:[#allocation20 + $0x368] sm:$0xff] }
 0x2fd   :  { %2765 = vmatpush1.bf16.msra.mxu0 %v7469_v19  ;;  %2851 = vmatpush1.bf16.msra.mxu1 %v7471_v20  ;;  %v7528_v19 = vcombine.high %v1291_v14, %v1295_v16  ;;  %v1298_v20 = vld [vmem:[#allocation20 + $0x240] sm:$0xff]  ;;  %v7567_v63 = vcombine.low %v1331_v59, %v1335_v60  ;;  %v1339_v4 = vld [vmem:[#allocation20 + $0x388] sm:$0xff] }
 0x2fe   :  { %2766 = vmatprep.subr.bf16.mxu0 %v7478_v25  ;;  %2852 = vmatprep.subr.bf16.mxu1 %v7480_v29  ;;  %v7534_v23 = vcombine.high %v1298_v20, %v1302_v21  ;;  %v7533_v25 = vcombine.low %v1298_v20, %v1302_v21  ;;  %v1310_v29 = vld [vmem:[#allocation20 + $0x2a0] sm:$0xff]  ;;  %v1343_v6 = vld [vmem:[#allocation20 + $0x3a8] sm:$0xff] }
 0x2ff   :  { %v7575_v8 = vcombine.low %v1339_v4, %v1343_v6  ;;  %v1347_v12 = vld [vmem:[#allocation20 + $0x3c8] sm:$0xff] }
 0x300   :  { %v1351_v14 = vld [vmem:[#allocation20 + $0x3e8] sm:$0xff] }
 0x301   :  { %2767 = vmatpush1.bf16.msra.mxu0 %v7477_v27  ;;  %2853 = vmatpush1.bf16.msra.mxu1 %v7479_v28  ;;  %v7536_v27 = vcombine.high %v1299_v22, %v1303_v24  ;;  %v1306_v28 = vld [vmem:[#allocation20 + $0x280] sm:$0xff]  ;;  %v7583_v16 = vcombine.low %v1347_v12, %v1351_v14  ;;  %v9214_v20 = vld [vmem:[#allocation20 + $0x408] sm:$0xff] }
 0x302   :  { %2768 = vmatprep.subr.bf16.mxu0 %v7486_v33  ;;  %2854 = vmatprep.subr.bf16.mxu1 %v7488_v40  ;;  %v7542_v31 = vcombine.high %v1306_v28, %v1310_v29  ;;  %v7541_v33 = vcombine.low %v1306_v28, %v1310_v29  ;;  %v1318_v40 = vld [vmem:[#allocation20 + $0x2e0] sm:$0xff]  ;;  %v9218_v22 = vld [vmem:[#allocation20 + $0x428] sm:$0xff] }
 0x303   :  { %v7591_v24 = vcombine.low %v9214_v20, %v9218_v22 }
 0x305   :  { %2769 = vmatpush1.bf16.msra.mxu0 %v7485_v37  ;;  %2855 = vmatpush1.bf16.msra.mxu1 %v7487_v39  ;;  %v7544_v37 = vcombine.high %v1307_v30, %v1311_v32  ;;  %v1314_v39 = vld [vmem:[#allocation20 + $0x2c0] sm:$0xff] }
 0x306   :  { %2770 = vmatprep.subr.bf16.mxu0 %v7494_v46  ;;  %2856 = vmatprep.subr.bf16.mxu1 %v7496_v50  ;;  %v7550_v44 = vcombine.high %v1314_v39, %v1318_v40  ;;  %v7549_v46 = vcombine.low %v1314_v39, %v1318_v40  ;;  %v1326_v50 = vld [vmem:[#allocation20 + $0x320] sm:$0xff] }
 0x309   :  { %2771 = vmatpush1.bf16.msra.mxu0 %v7493_v48  ;;  %2857 = vmatpush1.bf16.msra.mxu1 %v7495_v49  ;;  %v7552_v48 = vcombine.high %v1315_v43, %v1319_v45  ;;  %v1322_v49 = vld [vmem:[#allocation20 + $0x300] sm:$0xff] }
 0x30a   :  { %2772 = vmatprep.subr.bf16.mxu0 %v7502_v54  ;;  %2858 = vmatprep.subr.bf16.mxu1 %v7504_v57  ;;  %v7558_v52 = vcombine.high %v1322_v49, %v1326_v50  ;;  %v7557_v54 = vcombine.low %v1322_v49, %v1326_v50  ;;  %v1334_v57 = vld [vmem:[#allocation20 + $0x360] sm:$0xff] }
 0x30d   :  { %2773 = vmatpush1.bf16.msra.mxu0 %v7501_v56  ;;  %2859 = vmatpush1.bf16.msra.mxu1 %v7503_v0  ;;  %v7560_v56 = vcombine.high %v1323_v51, %v1327_v53  ;;  %v1330_v0 = vld [vmem:[#allocation20 + $0x340] sm:$0xff] }
 0x30e   :  { %2774 = vmatprep.subr.bf16.mxu0 %v7510_v61  ;;  %2860 = vmatprep.subr.bf16.mxu1 %v7512_v3  ;;  %v7566_v58 = vcombine.high %v1330_v0, %v1334_v57  ;;  %v7565_v61 = vcombine.low %v1330_v0, %v1334_v57  ;;  %v1342_v3 = vld [vmem:[#allocation20 + $0x3a0] sm:$0xff] }
 0x311   :  { %2775 = vmatpush1.bf16.msra.mxu0 %v7509_v1  ;;  %2861 = vmatpush1.bf16.msra.mxu1 %v7511_v2  ;;  %v7568_v1 = vcombine.high %v1331_v59, %v1335_v60  ;;  %v1338_v2 = vld [vmem:[#allocation20 + $0x380] sm:$0xff] }
 0x312   :  { %2776 = vmatprep.subr.bf16.mxu0 %v7518_v7  ;;  %2862 = vmatprep.subr.bf16.mxu1 %v7520_v11  ;;  %v7574_v5 = vcombine.high %v1338_v2, %v1342_v3  ;;  %v7573_v7 = vcombine.low %v1338_v2, %v1342_v3  ;;  %v1350_v11 = vld [vmem:[#allocation20 + $0x3e0] sm:$0xff] }
 0x315   :  { %2777 = vmatpush1.bf16.msra.mxu0 %v7517_v9  ;;  %2863 = vmatpush1.bf16.msra.mxu1 %v7519_v10  ;;  %v7576_v9 = vcombine.high %v1339_v4, %v1343_v6  ;;  %v1346_v10 = vld [vmem:[#allocation20 + $0x3c0] sm:$0xff] }
 0x316   :  { %2778 = vmatprep.subr.bf16.mxu0 %v7526_v15  ;;  %2864 = vmatprep.subr.bf16.mxu1 %v7528_v19  ;;  %v7582_v13 = vcombine.high %v1346_v10, %v1350_v11  ;;  %v7581_v15 = vcombine.low %v1346_v10, %v1350_v11  ;;  %v9212_v19 = vld [vmem:[#allocation20 + $0x420] sm:$0xff] }
 0x319   :  { %2779 = vmatpush1.bf16.msra.mxu0 %v7525_v17  ;;  %2865 = vmatpush1.bf16.msra.mxu1 %v7527_v18  ;;  %v7584_v17 = vcombine.high %v1347_v12, %v1351_v14  ;;  %v9210_v18 = vld [vmem:[#allocation20 + $0x400] sm:$0xff] }
 0x31a   :  { %2780 = vmatprep.subr.bf16.mxu0 %v7534_v23  ;;  %2866 = vmatprep.subr.bf16.mxu1 %v7536_v27  ;;  %v7590_v21 = vcombine.high %v9210_v18, %v9212_v19  ;;  %v7589_v23 = vcombine.low %v9210_v18, %v9212_v19  ;;  %v1382_v18 = vld [vmem:[#allocation20 + $0x4e0] sm:$0xff]  ;;  %v1379_v19 = vld [vmem:[#allocation20 + $0x4c8] sm:$0xff] }
 0x31d   :  { %2781 = vmatpush1.bf16.msra.mxu0 %v7533_v25  ;;  %2867 = vmatpush1.bf16.msra.mxu1 %v7535_v26  ;;  %v7592_v25 = vcombine.high %v9214_v20, %v9218_v22  ;;  %v1383_v20 = vld [vmem:[#allocation20 + $0x4e8] sm:$0xff] }
 0x31e   :  { %2782 = vmatprep.subr.bf16.mxu0 %v7542_v31  ;;  %2868 = vmatprep.subr.bf16.mxu1 %v7544_v37 }
 0x321   :  { %2783 = vmatpush1.bf16.msra.mxu0 %v7541_v33  ;;  %2869 = vmatpush1.bf16.msra.mxu1 %v7543_v35 }
 0x322   :  { %2784 = vmatprep.subr.bf16.mxu0 %v7550_v44  ;;  %2870 = vmatprep.subr.bf16.mxu1 %v7552_v48 }
 0x325   :  { %2785 = vmatpush1.bf16.msra.mxu0 %v7549_v46  ;;  %2871 = vmatpush1.bf16.msra.mxu1 %v7551_v47 }
 0x326   :  { %2786 = vmatprep.subr.bf16.mxu0 %v7558_v52  ;;  %2872 = vmatprep.subr.bf16.mxu1 %v7560_v56 }
 0x329   :  { %2787 = vmatpush1.bf16.msra.mxu0 %v7557_v54  ;;  %2873 = vmatpush1.bf16.msra.mxu1 %v7559_v55 }
 0x32a   :  { %2788 = vmatprep.subr.bf16.mxu0 %v7566_v58  ;;  %2874 = vmatprep.subr.bf16.mxu1 %v7568_v1 }
 0x32d   :  { %2789 = vmatpush1.bf16.msra.mxu0 %v7565_v61  ;;  %2875 = vmatpush1.bf16.msra.mxu1 %v7567_v63 }
 0x32e   :  { %2790 = vmatprep.subr.bf16.mxu0 %v7574_v5  ;;  %2876 = vmatprep.subr.bf16.mxu1 %v7576_v9 }
 0x331   :  { %2791 = vmatpush1.bf16.msra.mxu0 %v7573_v7  ;;  %2877 = vmatpush1.bf16.msra.mxu1 %v7575_v8 }
 0x332   :  { %2792 = vmatprep.subr.bf16.mxu0 %v7582_v13  ;;  %2878 = vmatprep.subr.bf16.mxu1 %v7584_v17 }
 0x335   :  { %2793 = vmatpush1.bf16.msra.mxu0 %v7581_v15  ;;  %2879 = vmatpush1.bf16.msra.mxu1 %v7583_v16 }
 0x336   :  { %2805 = vmatprep.subr.bf16.mxu0 %v7590_v21  ;;  %2891 = vmatprep.subr.bf16.mxu1 %v7592_v25 }
 0x3cb   :  { %v974_v26 = vpop.f32.mrb[4].mxu0  ;;  %v1017_v27 = vpop.f32.mrb[4].mxu1 }
 0x3cc   :  { %v976_v28 = vpop.f32.mrb[5].mxu0  ;;  %v1019_v29 = vpop.f32.mrb[5].mxu1  ;;  %v1026_v32 = vmul.f32 %v9181_v41, %v974_v26  ;;  %v1028_v33 = vmul.f32 %v9181_v41, %v1017_v27 }
 0x3cd   :  { %v978_v30 = vpop.f32.mrb[6].mxu0  ;;  %v1021_v31 = vpop.f32.mrb[6].mxu1  ;;  %v1027_v43 = vmul.f32 %v9181_v41, %v976_v28  ;;  %v1029_v44 = vmul.f32 %v9181_v41, %v1019_v29 }
 0x3ce   :  { %v1030_v35 = vmul.f32 %v9184_v42, %v978_v30  ;;  %v1032_v37 = vmul.f32 %v9184_v42, %v1021_v31  ;;  %v980_v39 = vpop.f32.mrb[7].mxu0  ;;  %v1023_v40 = vpop.f32.mrb[7].mxu1 }
 0x3cf   :  { %v1031_v45 = vmul.f32 %v9184_v42, %v980_v39  ;;  %v1033_v46 = vmul.f32 %v9184_v42, %v1023_v40 }
 0x3d0   :  { %v1034_v47 = vadd.f32 %v1030_v35, %v1026_v32  ;;  %v1048_v48 = vadd.f32 %v1032_v37, %v1028_v33 }
 0x3d1   :  { %v1041_v49 = vadd.f32 %v1031_v45, %v1027_v43  ;;  %v1055_v50 = vadd.f32 %v1033_v46, %v1029_v44 }
 0x3d2   :  { %v1035_v51 = vrot.slane %v1034_v47, 4  ;;  %v1049_v52 = vrot.slane %v1048_v48, 4 }
 0x3d3   :  { %v1042_v53 = vrot.slane %v1041_v49, 4  ;;  %v1056_v54 = vrot.slane %v1055_v50, 4 }
 0x3d4   :  { %v1036_v55 = vadd.f32 %v1035_v51, %v1034_v47  ;;  %v1050_v56 = vadd.f32 %v1049_v52, %v1048_v48 }
 0x3d5   :  { %v1043_v0 = vadd.f32 %v1042_v53, %v1041_v49  ;;  %v1057_v57 = vadd.f32 %v1056_v54, %v1055_v50 }
 0x3d6   :  { %v1037_v58 = vrot.slane %v1036_v55, 2  ;;  %v1051_v59 = vrot.slane %v1050_v56, 2 }
 0x3d7   :  { %v1044_v60 = vrot.slane %v1043_v0, 2  ;;  %v1058_v61 = vrot.slane %v1057_v57, 2 }
 0x3d8   :  { %v1038_v63 = vadd.f32 %v1037_v58, %v1036_v55  ;;  %v1052_v1 = vadd.f32 %v1051_v59, %v1050_v56 }
 0x3d9   :  { %v1045_v2 = vadd.f32 %v1044_v60, %v1043_v0  ;;  %v1059_v3 = vadd.f32 %v1058_v61, %v1057_v57 }
 0x3da   :  { %v1039_v4 = vrot.slane %v1038_v63, 1  ;;  %v1053_v5 = vrot.slane %v1052_v1, 1 }
 0x3db   :  { %v1046_v6 = vrot.slane %v1045_v2, 1  ;;  %v1060_v7 = vrot.slane %v1059_v3, 1 }
 0x3dc   :  { %v1040_v8 = vadd.f32 %v1039_v4, %v1038_v63  ;;  %v1054_v9 = vadd.f32 %v1053_v5, %v1052_v1 }
 0x3dd   :  { %v1047_v10 = vadd.f32 %v1046_v6, %v1045_v2  ;;  %v1061_v11 = vadd.f32 %v1060_v7, %v1059_v3 }
 0x3de   :  { %v1062_v12 = vmul.f32 %v1040_v8, %v9190_v62  ;;  %v1064_v13 = vmul.f32 %v1054_v9, %v9190_v62 }
 0x3df   :  { %v1063_v14 = vmul.f32 %v1047_v10, %v9190_v62  ;;  %v1065_v15 = vmul.f32 %v1061_v11, %v9190_v62 }
 0x3e0   :  { %v9238_v16 = vsub.f32 %v974_v26, %v1062_v12  ;;  %v9240_v17 = vsub.f32 %v978_v30, %v1062_v12  ;;  %v9242_v21 = vsub.f32 %v1017_v27, %v1064_v13  ;;  %v9244_v25 = vsub.f32 %v1021_v31, %v1064_v13 }
 0x3e1   :  { %v9246_v32 = vsub.f32 %v976_v28, %v1063_v14  ;;  %v9248_v33 = vsub.f32 %v980_v39, %v1063_v14  ;;  %v9250_v35 = vsub.f32 %v1019_v29, %v1065_v15  ;;  %v9252_v37 = vsub.f32 %v1023_v40, %v1065_v15 }
 0x3e2   :  { %v1074_v43 = vmul.f32 %v9238_v16, %v9238_v16  ;;  %v1078_v26 = vmul.f32 %v9240_v17, %v9240_v17  ;;  %v1076_v27 = vmul.f32 %v9242_v21, %v9242_v21  ;;  %v1080_v30 = vmul.f32 %v9244_v25, %v9244_v25 }
 0x3e3   :  { %v1075_v28 = vmul.f32 %v9246_v32, %v9246_v32  ;;  %v1079_v29 = vmul.f32 %v9248_v33, %v9248_v33  ;;  %v1077_v31 = vmul.f32 %v9250_v35, %v9250_v35  ;;  %v1081_v39 = vmul.f32 %v9252_v37, %v9252_v37 }
 0x3e4   :  { %v1082_v40 = vmul.f32 %v9181_v41, %v1074_v43  ;;  %v1086_v44 = vmul.f32 %v9184_v42, %v1078_v26  ;;  %v1084_v45 = vmul.f32 %v9181_v41, %v1076_v27  ;;  %v1088_v46 = vmul.f32 %v9184_v42, %v1080_v30 }
 0x3e5   :  { %v1083_v47 = vmul.f32 %v9181_v41, %v1075_v28  ;;  %v1087_v48 = vmul.f32 %v9184_v42, %v1079_v29  ;;  %v1085_v49 = vmul.f32 %v9181_v41, %v1077_v31  ;;  %v1089_v50 = vmul.f32 %v9184_v42, %v1081_v39 }
 0x3e6   :  { %v1090_v51 = vadd.f32 %v1086_v44, %v1082_v40  ;;  %v1104_v52 = vadd.f32 %v1088_v46, %v1084_v45  ;;  %v1138_v40 = vld [vmem:[#allocation17] sm:$0xf]  ;;  %v9283_v44 = vsub.s32 2, %v9173_v38  ;;  %v1168_v45 = vld [vmem:[#allocation19] sm:$0xf]  ;;  %v9286_v46 = vsub.s32 3, %v9173_v38 }
 0x3e7   :  { %v1097_v53 = vadd.f32 %v1087_v48, %v1083_v47  ;;  %v1111_v54 = vadd.f32 %v1089_v50, %v1085_v49  ;;  %v1143_v47 = vrot.slane %v1138_v40, %v9201_v34  ;;  %v9289_v48 = vld [vmem:[#allocation20 + $0x440] sm:$0xff] }
 0x3e8   :  { %v1091_v55 = vrot.slane %v1090_v51, 4  ;;  %v1105_v56 = vrot.slane %v1104_v52, 4  ;;  %v9291_v49 = vld [vmem:[#allocation20 + $0x460] sm:$0xff] }
 0x3e9   :  { %v1098_v0 = vrot.slane %v1097_v53, 4  ;;  %v1112_v57 = vrot.slane %v1111_v54, 4 }
 0x3ea   :  { %v1092_v58 = vadd.f32 %v1091_v55, %v1090_v51  ;;  %v1106_v59 = vadd.f32 %v1105_v56, %v1104_v52  ;;  %v1173_v51 = vrot.slane %v1168_v45, %v9201_v34  ;;  %v1151_v52 = vrot.slane %v1138_v40, %v9283_v44 }
 0x3eb   :  { %v1099_v60 = vadd.f32 %v1098_v0, %v1097_v53  ;;  %v1113_v61 = vadd.f32 %v1112_v57, %v1111_v54  ;;  %v1181_v53 = vrot.slane %v1168_v45, %v9283_v44  ;;  %v1147_v54 = vrot.slane %v1138_v40, %v9204_v36 }
 0x3ec   :  { %v1093_v63 = vrot.slane %v1092_v58, 2  ;;  %v1107_v1 = vrot.slane %v1106_v59, 2  ;;  %v1177_v57 = vrot.slane %v1168_v45, %v9204_v36 }
 0x3ed   :  { %v1100_v2 = vrot.slane %v1099_v60, 2  ;;  %v1114_v3 = vrot.slane %v1113_v61, 2 }
 0x3ee   :  { %v1094_v4 = vadd.f32 %v1093_v63, %v1092_v58  ;;  %v1108_v5 = vadd.f32 %v1107_v1, %v1106_v59  ;;  %v1155_v58 = vrot.slane %v1138_v40, %v9286_v46  ;;  %v1185_v63 = vrot.slane %v1168_v45, %v9286_v46  ;;  %v1363_v45 = vld [vmem:[#allocation20 + $0x448] sm:$0xff] }
 0x3ef   :  { %v1101_v6 = vadd.f32 %v1100_v2, %v1099_v60  ;;  %v1115_v7 = vadd.f32 %v1114_v3, %v1113_v61  ;;  %v7598_v1 = vcombine.high %v9289_v48, %v9291_v49 }
 0x3f0   :  { %v1095_v8 = vrot.slane %v1094_v4, 1  ;;  %v1109_v9 = vrot.slane %v1108_v5, 1 }
 0x3f1   :  { %v1102_v10 = vrot.slane %v1101_v6, 1  ;;  %v1116_v11 = vrot.slane %v1115_v7, 1 }
 0x3f2   :  { %v1096_v12 = vadd.f32 %v1095_v8, %v1094_v4  ;;  %v1110_v13 = vadd.f32 %v1109_v9, %v1108_v5 }
 0x3f3   :  { %v1103_v14 = vadd.f32 %v1102_v10, %v1101_v6  ;;  %v1117_v15 = vadd.f32 %v1116_v11, %v1115_v7 }
 0x3f4   :  { %v1118_v43 = vmul.f32 %v1096_v12, %v9190_v62  ;;  %v1120_v26 = vmul.f32 %v1110_v13, %v9190_v62 }
 0x3f5   :  { %v1119_v27 = vmul.f32 %v1103_v14, %v9190_v62  ;;  %v1121_v30 = vmul.f32 %v1117_v15, %v9190_v62 }
 0x3f6   :  { %v1122_v28 = vadd.f32 0.8, %v1118_v43  ;;  %v1124_v29 = vadd.f32 0.8, %v1120_v26 }
 0x3f7   :  { %v1123_v31 = vadd.f32 0.8, %v1119_v27  ;;  %v1125_v39 = vadd.f32 0.8, %v1121_v30 }
 0x3f8   :  { %8473 = vrsqrt.f32 %v1122_v28 }
 0x3f9   :  { %8475 = vrsqrt.f32 %v1124_v29 }
 0x3fa   :  { %8477 = vrsqrt.f32 %v1123_v31 }
 0x3fb   :  { %8479 = vrsqrt.f32 %v1125_v39 }
 0x402   :  { %v8474_v50 = vpop.eup %8473 }
 0x403   :  { %v8476_v55 = vpop.eup %8475  ;;  %v1130_v56 = vmul.f32 %v8474_v50, %v9238_v16  ;;  %v1134_v0 = vmul.f32 %v8474_v50, %v9240_v17 }
 0x404   :  { %v8478_v59 = vpop.eup %8477  ;;  %v1132_v60 = vmul.f32 %v8476_v55, %v9242_v21  ;;  %v1136_v61 = vmul.f32 %v8476_v55, %v9244_v25  ;;  %v1370_v55 = vld [vmem:[#allocation20 + $0x480] sm:$0xff] }
 0x405   :  { %v8480_v2 = vpop.eup %8479  ;;  %v1160_v3 = vmul.f32 %v1143_v47, %v1130_v56  ;;  %v1164_v4 = vmul.f32 %v1143_v47, %v1134_v0  ;;  %v1131_v16 = vmul.f32 %v8478_v59, %v9246_v32  ;;  %v1135_v17 = vmul.f32 %v8478_v59, %v9248_v33  ;;  %v1367_v47 = vld [vmem:[#allocation20 + $0x468] sm:$0xff] }
 0x406   :  { %v1162_v5 = vmul.f32 %v1151_v52, %v1132_v60  ;;  %v1166_v6 = vmul.f32 %v1151_v52, %v1136_v61  ;;  %v1133_v7 = vmul.f32 %v8480_v2, %v9250_v35  ;;  %v1137_v21 = vmul.f32 %v8480_v2, %v9252_v37  ;;  %v1371_v59 = vld [vmem:[#allocation20 + $0x488] sm:$0xff] }
 0x407   :  { %v1190_v8 = vadd.f32 %v1173_v51, %v1160_v3  ;;  %v1194_v25 = vadd.f32 %v1173_v51, %v1164_v4  ;;  %v1161_v9 = vmul.f32 %v1147_v54, %v1131_v16  ;;  %v1165_v10 = vmul.f32 %v1147_v54, %v1135_v17  ;;  %v1375_v60 = vld [vmem:[#allocation20 + $0x4a8] sm:$0xff] }
 0x408   :  { %v1192_v11 = vadd.f32 %v1181_v53, %v1162_v5  ;;  %v1196_v12 = vadd.f32 %v1181_v53, %v1166_v6  ;;  %v1163_v13 = vmul.f32 %v1155_v58, %v1133_v7  ;;  %v1167_v14 = vmul.f32 %v1155_v58, %v1137_v21  ;;  %v1374_v58 = vld [vmem:[#allocation20 + $0x4a0] sm:$0xff] }
 0x409   :  { %v1210_v15 = vmul.f32 0.2, %v1194_v25  ;;  %v1191_v43 = vadd.f32 %v1177_v57, %v1161_v9  ;;  %v1195_v26 = vadd.f32 %v1177_v57, %v1165_v10  ;;  %vm1198_vm10 = vcmp.gt.f32.partialorder %v1190_v8, 0.0  ;;  %v1378_v5 = vld [vmem:[#allocation20 + $0x4c0] sm:$0xff] }
 0x40a   :  { %v1212_v32 = vmul.f32 0.2, %v1196_v12  ;;  %v1193_v33 = vadd.f32 %v1185_v63, %v1163_v13  ;;  %v1197_v27 = vadd.f32 %v1185_v63, %v1167_v14  ;;  %vm1202_vm11 = vcmp.gt.f32.partialorder %v1194_v25, 0.0  ;;  %v1386_v7 = vld [vmem:[#allocation20 + $0x500] sm:$0xff]  ;;  %v1399_v13 = vld [vmem:[#allocation20 + $0x568] sm:$0xff] }
 0x40b   :  { %v1211_v30 = vmul.f32 0.2, %v1195_v26  ;;  %vm1199_vm12 = vcmp.gt.f32.partialorder %v1191_v43, 0.0  ;;  %vm1203_vm13 = vcmp.gt.f32.partialorder %v1195_v26, 0.0  ;;  %v1207_v35 = vmul.f32 0.2, %v1191_v43 }
 0x40c   :  { %v1213_v37 = vmul.f32 0.2, %v1197_v27  ;;  %v1206_v28 = vmul.f32 0.2, %v1190_v8  ;;  %v1218_v29 = vsel %vm1202_vm11, %v1194_v25, %v1210_v15  ;;  %vm1201_vm14 = vcmp.gt.f32.partialorder %v1193_v33, 0.0  ;;  %v1390_v21 = vld [vmem:[#allocation20 + $0x520] sm:$0xff] }
 0x40d   :  { %v1215_v31 = vsel %vm1199_vm12, %v1191_v43, %v1207_v35  ;;  %v1219_v39 = vsel %vm1203_vm13, %v1195_v26, %v1211_v30  ;;  %vm1205_vm15 = vcmp.gt.f32.partialorder %v1197_v27, 0.0  ;;  %v1209_v40 = vmul.f32 0.2, %v1193_v33  ;;  %v1391_v25 = vld [vmem:[#allocation20 + $0x528] sm:$0xff]  ;;  %v1394_v10 = vld [vmem:[#allocation20 + $0x540] sm:$0xff] }
 0x40e   :  { %v9310_v50 = vpack.c.bf16 %v1219_v39, %v1215_v31  ;;  %v1214_v51 = vsel %vm1198_vm10, %v1190_v8, %v1206_v28  ;;  %v1221_v52 = vsel %vm1205_vm15, %v1197_v27, %v1213_v37  ;;  %vm1200_vm0 = vcmp.gt.f32.partialorder %v1192_v11, 0.0  ;;  %v1387_v8 = vld [vmem:[#allocation20 + $0x508] sm:$0xff]  ;;  %v1410_v31 = vld [vmem:[#allocation20 + $0x5c0] sm:$0xff] }
 0x40f   :  { %v9313_v53 = vpack.c.bf16 %v1218_v29, %v1214_v51  ;;  %v1217_v54 = vsel %vm1201_vm14, %v1193_v33, %v1209_v40  ;;  %vm1204_vm1 = vcmp.gt.f32.partialorder %v1196_v12, 0.0  ;;  %v1208_v56 = vmul.f32 0.2, %v1192_v11  ;;  %v1406_v33 = vld [vmem:[#allocation20 + $0x5a0] sm:$0xff]  ;;  %v1403_v27 = vld [vmem:[#allocation20 + $0x588] sm:$0xff] }
 0x410   :  { %2794 = vmatprep.mubr.bf16.mxu0 %v9310_v50  ;;  %2880 = vmatprep.mubr.bf16.mxu1 %v9310_v50  ;;  %v9317_v0 = vpack.c.bf16 %v1221_v52, %v1217_v54  ;;  %v7600_v57 = vcombine.high %v1363_v45, %v1367_v47  ;;  %v1220_v61 = vsel %vm1204_vm1, %v1196_v12, %v1212_v32  ;;  %v1395_v12 = vld [vmem:[#allocation20 + $0x548] sm:$0xff]  ;;  %v1402_v32 = vld [vmem:[#allocation20 + $0x580] sm:$0xff] }
 0x411   :  { %2795 = vmatmul.mubr.bf16.vlgmr.msra.gmra.mrb[8].mxu0 %v9313_v53  ;;  %2881 = vmatmul.mubr.bf16.vlgmr.msra.gmra.mrb[8].mxu1 %v9313_v53  ;;  %v1216_v63 = vsel %vm1200_vm0, %v1192_v11, %v1208_v56  ;;  %v7597_v2 = vcombine.low %v9289_v48, %v9291_v49  ;;  %v7599_v3 = vcombine.low %v1363_v45, %v1367_v47  ;;  %v1398_v11 = vld [vmem:[#allocation20 + $0x560] sm:$0xff]  ;;  %v1407_v30 = vld [vmem:[#allocation20 + $0x5a8] sm:$0xff] }
 0x412   :  { %2806 = vmatpush1.bf16.msra.mxu0 %v7589_v23  ;;  %2892 = vmatpush1.bf16.msra.mxu1 %v7591_v24  ;;  %v9330_v4 = vpack.c.bf16 %v1220_v61, %v1216_v63  ;;  %v7606_v16 = vcombine.high %v1370_v55, %v1374_v58  ;;  %v7608_v17 = vcombine.high %v1371_v59, %v1375_v60  ;;  %v1414_v39 = vld [vmem:[#allocation20 + $0x5e0] sm:$0xff]  ;;  %v1411_v40 = vld [vmem:[#allocation20 + $0x5c8] sm:$0xff] }
 0x413   :  { %2837 = vmatprep.mubr.bf16.mxu0 %v9317_v0  ;;  %2923 = vmatprep.mubr.bf16.mxu1 %v9317_v0  ;;  %v7605_v22 = vcombine.low %v1370_v55, %v1374_v58  ;;  %v7607_v23 = vcombine.low %v1371_v59, %v1375_v60  ;;  %v7614_v24 = vcombine.high %v1378_v5, %v1382_v18  ;;  %v1415_v45 = vld [vmem:[#allocation20 + $0x5e8] sm:$0xff]  ;;  %v1418_v55 = vld [vmem:[#allocation20 + $0x600] sm:$0xff] }
 0x414   :  { %2807 = vmatprep.subr.bf16.mxu0 %v7598_v1  ;;  %2893 = vmatprep.subr.bf16.mxu1 %v7600_v57  ;;  %v7616_v6 = vcombine.high %v1379_v19, %v1383_v20  ;;  %v7613_v48 = vcombine.low %v1378_v5, %v1382_v18  ;;  %v7615_v49 = vcombine.low %v1379_v19, %v1383_v20  ;;  %v1422_v56 = vld [vmem:[#allocation20 + $0x620] sm:$0xff]  ;;  %v1419_v57 = vld [vmem:[#allocation20 + $0x608] sm:$0xff] }
 0x415   :  { %v7622_v1 = vcombine.high %v1386_v7, %v1390_v21  ;;  %v7624_v9 = vcombine.high %v1387_v8, %v1391_v25  ;;  %v7621_v14 = vcombine.low %v1386_v7, %v1390_v21  ;;  %v7623_v15 = vcombine.low %v1387_v8, %v1391_v25  ;;  %v1423_v58 = vld [vmem:[#allocation20 + $0x628] sm:$0xff] }
 0x416   :  { %2808 = vmatpush1.bf16.msra.mxu0 %v7597_v2  ;;  %2894 = vmatpush1.bf16.msra.mxu1 %v7599_v3  ;;  %v7630_v43 = vcombine.high %v1394_v10, %v1398_v11  ;;  %v7632_v26 = vcombine.high %v1395_v12, %v1399_v13  ;;  %v7629_v35 = vcombine.low %v1394_v10, %v1398_v11  ;;  %v1426_v2 = vld [vmem:[#allocation20 + $0x640] sm:$0xff] }
 0x417   :  { %2809 = vmatprep.subr.bf16.mxu0 %v7606_v16  ;;  %2895 = vmatprep.subr.bf16.mxu1 %v7608_v17  ;;  %v7631_v37 = vcombine.low %v1395_v12, %v1399_v13  ;;  %v7638_v28 = vcombine.high %v1402_v32, %v1406_v33  ;;  %v7640_v29 = vcombine.high %v1403_v27, %v1407_v30  ;;  %v1430_v3 = vld [vmem:[#allocation20 + $0x660] sm:$0xff]  ;;  %v1427_v16 = vld [vmem:[#allocation20 + $0x648] sm:$0xff] }
 0x418   :  { %v7637_v47 = vcombine.low %v1402_v32, %v1406_v33  ;;  %v7639_v51 = vcombine.low %v1403_v27, %v1407_v30  ;;  %v7646_v52 = vcombine.high %v1410_v31, %v1414_v39  ;;  %v7648_v54 = vcombine.high %v1411_v40, %v1415_v45  ;;  %v1431_v17 = vld [vmem:[#allocation20 + $0x668] sm:$0xff] }
 0x419   :  { %v7645_v59 = vcombine.low %v1410_v31, %v1414_v39  ;;  %v7647_v60 = vcombine.low %v1411_v40, %v1415_v45  ;;  %v7654_v61 = vcombine.high %v1418_v55, %v1422_v56  ;;  %v7656_v63 = vcombine.high %v1419_v57, %v1423_v58 }
 0x41a   :  { %2810 = vmatpush1.bf16.msra.mxu0 %v7605_v22  ;;  %2896 = vmatpush1.bf16.msra.mxu1 %v7607_v23  ;;  %v7653_v5 = vcombine.low %v1418_v55, %v1422_v56  ;;  %v7655_v18 = vcombine.low %v1419_v57, %v1423_v58  ;;  %v7662_v19 = vcombine.high %v1426_v2, %v1430_v3  ;;  %v1434_v22 = vld [vmem:[#allocation20 + $0x680] sm:$0xff] }
 0x41b   :  { %2811 = vmatprep.subr.bf16.mxu0 %v7614_v24  ;;  %2897 = vmatprep.subr.bf16.mxu1 %v7616_v6  ;;  %v7664_v20 = vcombine.high %v1427_v16, %v1431_v17  ;;  %v1438_v23 = vld [vmem:[#allocation20 + $0x6a0] sm:$0xff]  ;;  %v1435_v24 = vld [vmem:[#allocation20 + $0x688] sm:$0xff]  ;;  %v7661_v7 = vcombine.low %v1426_v2, %v1430_v3  ;;  %v7663_v21 = vcombine.low %v1427_v16, %v1431_v17 }
 0x41c   :  { %v1439_v6 = vld [vmem:[#allocation20 + $0x6a8] sm:$0xff]  ;;  %v7670_v8 = vcombine.high %v1434_v22, %v1438_v23  ;;  %v7669_v10 = vcombine.low %v1434_v22, %v1438_v23 }
 0x41d   :  { %v7672_v25 = vcombine.high %v1435_v24, %v1439_v6  ;;  %v7671_v11 = vcombine.low %v1435_v24, %v1439_v6 }
 0x41e   :  { %2812 = vmatpush1.bf16.msra.mxu0 %v7613_v48  ;;  %2898 = vmatpush1.bf16.msra.mxu1 %v7615_v49  ;;  %v1442_v48 = vld [vmem:[#allocation20 + $0x6c0] sm:$0xff] }
 0x41f   :  { %2813 = vmatprep.subr.bf16.mxu0 %v7622_v1  ;;  %2899 = vmatprep.subr.bf16.mxu1 %v7624_v9  ;;  %v1446_v49 = vld [vmem:[#allocation20 + $0x6e0] sm:$0xff]  ;;  %v1443_v1 = vld [vmem:[#allocation20 + $0x6c8] sm:$0xff] }
 0x420   :  { %v1447_v9 = vld [vmem:[#allocation20 + $0x6e8] sm:$0xff]  ;;  %v7678_v12 = vcombine.high %v1442_v48, %v1446_v49  ;;  %v7677_v32 = vcombine.low %v1442_v48, %v1446_v49 }
 0x421   :  { %v7680_v13 = vcombine.high %v1443_v1, %v1447_v9  ;;  %v7679_v33 = vcombine.low %v1443_v1, %v1447_v9 }
 0x422   :  { %2814 = vmatpush1.bf16.msra.mxu0 %v7621_v14  ;;  %2900 = vmatpush1.bf16.msra.mxu1 %v7623_v15  ;;  %v1450_v14 = vld [vmem:[#allocation20 + $0x700] sm:$0xff] }
 0x423   :  { %2815 = vmatprep.subr.bf16.mxu0 %v7630_v43  ;;  %2901 = vmatprep.subr.bf16.mxu1 %v7632_v26  ;;  %v1454_v15 = vld [vmem:[#allocation20 + $0x720] sm:$0xff]  ;;  %v1451_v43 = vld [vmem:[#allocation20 + $0x708] sm:$0xff] }
 0x424   :  { %v1455_v26 = vld [vmem:[#allocation20 + $0x728] sm:$0xff]  ;;  %v7686_v27 = vcombine.high %v1450_v14, %v1454_v15  ;;  %v7685_v31 = vcombine.low %v1450_v14, %v1454_v15 }
 0x425   :  { %v7688_v30 = vcombine.high %v1451_v43, %v1455_v26  ;;  %v7687_v39 = vcombine.low %v1451_v43, %v1455_v26 }
 0x426   :  { %2816 = vmatpush1.bf16.msra.mxu0 %v7629_v35  ;;  %2902 = vmatpush1.bf16.msra.mxu1 %v7631_v37  ;;  %v1458_v35 = vld [vmem:[#allocation20 + $0x740] sm:$0xff] }
 0x427   :  { %2817 = vmatprep.subr.bf16.mxu0 %v7638_v28  ;;  %2903 = vmatprep.subr.bf16.mxu1 %v7640_v29  ;;  %v1462_v37 = vld [vmem:[#allocation20 + $0x760] sm:$0xff]  ;;  %v1459_v28 = vld [vmem:[#allocation20 + $0x748] sm:$0xff] }
 0x428   :  { %v1463_v29 = vld [vmem:[#allocation20 + $0x768] sm:$0xff]  ;;  %v7694_v40 = vcombine.high %v1458_v35, %v1462_v37  ;;  %v7693_v55 = vcombine.low %v1458_v35, %v1462_v37 }
 0x429   :  { %v7696_v45 = vcombine.high %v1459_v28, %v1463_v29  ;;  %v7695_v56 = vcombine.low %v1459_v28, %v1463_v29 }
 0x42a   :  { %2818 = vmatpush1.bf16.msra.mxu0 %v7637_v47  ;;  %2904 = vmatpush1.bf16.msra.mxu1 %v7639_v51  ;;  %v1466_v47 = vld [vmem:[#allocation20 + $0x780] sm:$0xff] }
 0x42b   :  { %2819 = vmatprep.subr.bf16.mxu0 %v7646_v52  ;;  %2905 = vmatprep.subr.bf16.mxu1 %v7648_v54  ;;  %v1470_v51 = vld [vmem:[#allocation20 + $0x7a0] sm:$0xff]  ;;  %v1467_v52 = vld [vmem:[#allocation20 + $0x788] sm:$0xff] }
 0x42c   :  { %v1471_v54 = vld [vmem:[#allocation20 + $0x7a8] sm:$0xff]  ;;  %v7702_v57 = vcombine.high %v1466_v47, %v1470_v51  ;;  %v7701_v2 = vcombine.low %v1466_v47, %v1470_v51 }
 0x42d   :  { %v7704_v58 = vcombine.high %v1467_v52, %v1471_v54  ;;  %v7703_v3 = vcombine.low %v1467_v52, %v1471_v54  ;;  %v1268_v54 = vld [vmem:[#allocation20 + $0x150] sm:$0xff] }
 0x42e   :  { %2820 = vmatpush1.bf16.msra.mxu0 %v7645_v59  ;;  %2906 = vmatpush1.bf16.msra.mxu1 %v7647_v60  ;;  %v1474_v59 = vld [vmem:[#allocation20 + $0x7c0] sm:$0xff] }
 0x42f   :  { %2821 = vmatprep.subr.bf16.mxu0 %v7654_v61  ;;  %2907 = vmatprep.subr.bf16.mxu1 %v7656_v63  ;;  %v1478_v60 = vld [vmem:[#allocation20 + $0x7e0] sm:$0xff]  ;;  %v1475_v61 = vld [vmem:[#allocation20 + $0x7c8] sm:$0xff] }
 0x430   :  { %v1479_v63 = vld [vmem:[#allocation20 + $0x7e8] sm:$0xff]  ;;  %v7710_v16 = vcombine.high %v1474_v59, %v1478_v60  ;;  %v7709_v22 = vcombine.low %v1474_v59, %v1478_v60 }
 0x431   :  { %v7712_v17 = vcombine.high %v1475_v61, %v1479_v63  ;;  %v7711_v23 = vcombine.low %v1475_v61, %v1479_v63  ;;  %v1276_v63 = vld [vmem:[#allocation20 + $0x190] sm:$0xff] }
 0x432   :  { %2822 = vmatpush1.bf16.msra.mxu0 %v7653_v5  ;;  %2908 = vmatpush1.bf16.msra.mxu1 %v7655_v18  ;;  %v1228_v5 = vld [vmem:[#allocation20 + $0x10] sm:$0xff] }
 0x433   :  { %2823 = vmatprep.subr.bf16.mxu0 %v7662_v19  ;;  %2909 = vmatprep.subr.bf16.mxu1 %v7664_v20  ;;  %v1232_v18 = vld [vmem:[#allocation20 + $0x30] sm:$0xff]  ;;  %v1229_v19 = vld [vmem:[#allocation20 + $0x18] sm:$0xff] }
 0x434   :  { %v1233_v20 = vld [vmem:[#allocation20 + $0x38] sm:$0xff]  ;;  %v7466_v24 = vcombine.high %v1228_v5, %v1232_v18  ;;  %v7465_v48 = vcombine.low %v1228_v5, %v1232_v18 }
 0x435   :  { %v7468_v6 = vcombine.high %v1229_v19, %v1233_v20  ;;  %v7467_v49 = vcombine.low %v1229_v19, %v1233_v20  ;;  %v1284_v20 = vld [vmem:[#allocation20 + $0x1d0] sm:$0xff] }
 0x436   :  { %2824 = vmatpush1.bf16.msra.mxu0 %v7661_v7  ;;  %2910 = vmatpush1.bf16.msra.mxu1 %v7663_v21  ;;  %v1236_v7 = vld [vmem:[#allocation20 + $0x50] sm:$0xff] }
 0x437   :  { %2825 = vmatprep.subr.bf16.mxu0 %v7670_v8  ;;  %2911 = vmatprep.subr.bf16.mxu1 %v7672_v25  ;;  %v1240_v21 = vld [vmem:[#allocation20 + $0x70] sm:$0xff]  ;;  %v1237_v8 = vld [vmem:[#allocation20 + $0x58] sm:$0xff] }
 0x438   :  { %v1241_v25 = vld [vmem:[#allocation20 + $0x78] sm:$0xff]  ;;  %v7474_v1 = vcombine.high %v1236_v7, %v1240_v21  ;;  %v7473_v14 = vcombine.low %v1236_v7, %v1240_v21 }
 0x439   :  { %v7476_v9 = vcombine.high %v1237_v8, %v1241_v25  ;;  %v7475_v15 = vcombine.low %v1237_v8, %v1241_v25  ;;  %v1292_v25 = vld [vmem:[#allocation20 + $0x210] sm:$0xff] }
 0x43a   :  { %2826 = vmatpush1.bf16.msra.mxu0 %v7669_v10  ;;  %2912 = vmatpush1.bf16.msra.mxu1 %v7671_v11  ;;  %v1244_v10 = vld [vmem:[#allocation20 + $0x90] sm:$0xff] }
 0x43b   :  { %2827 = vmatprep.subr.bf16.mxu0 %v7678_v12  ;;  %2913 = vmatprep.subr.bf16.mxu1 %v7680_v13  ;;  %v1248_v11 = vld [vmem:[#allocation20 + $0xb0] sm:$0xff]  ;;  %v1245_v12 = vld [vmem:[#allocation20 + $0x98] sm:$0xff] }
 0x43c   :  { %v1249_v13 = vld [vmem:[#allocation20 + $0xb8] sm:$0xff]  ;;  %v7482_v43 = vcombine.high %v1244_v10, %v1248_v11  ;;  %v7481_v35 = vcombine.low %v1244_v10, %v1248_v11 }
 0x43d   :  { %v7484_v26 = vcombine.high %v1245_v12, %v1249_v13  ;;  %v7483_v37 = vcombine.low %v1245_v12, %v1249_v13  ;;  %v1300_v13 = vld [vmem:[#allocation20 + $0x250] sm:$0xff] }
 0x43e   :  { %2828 = vmatpush1.bf16.msra.mxu0 %v7677_v32  ;;  %2914 = vmatpush1.bf16.msra.mxu1 %v7679_v33  ;;  %v1252_v32 = vld [vmem:[#allocation20 + $0xd0] sm:$0xff] }
 0x43f   :  { %2829 = vmatprep.subr.bf16.mxu0 %v7686_v27  ;;  %2915 = vmatprep.subr.bf16.mxu1 %v7688_v30  ;;  %v1256_v33 = vld [vmem:[#allocation20 + $0xf0] sm:$0xff]  ;;  %v1253_v27 = vld [vmem:[#allocation20 + $0xd8] sm:$0xff] }
 0x440   :  { %v1257_v30 = vld [vmem:[#allocation20 + $0xf8] sm:$0xff]  ;;  %v7490_v28 = vcombine.high %v1252_v32, %v1256_v33 }
 0x441   :  { %v7492_v29 = vcombine.high %v1253_v27, %v1257_v30  ;;  %v7491_v47 = vcombine.low %v1253_v27, %v1257_v30  ;;  %v1308_v30 = vld [vmem:[#allocation20 + $0x290] sm:$0xff] }
 0x442   :  { %2830 = vmatpush1.bf16.msra.mxu0 %v7685_v31  ;;  %2916 = vmatpush1.bf16.msra.mxu1 %v7687_v39  ;;  %v1260_v31 = vld [vmem:[#allocation20 + $0x110] sm:$0xff] }
 0x443   :  { %2831 = vmatprep.subr.bf16.mxu0 %v7694_v40  ;;  %2917 = vmatprep.subr.bf16.mxu1 %v7696_v45  ;;  %v1264_v39 = vld [vmem:[#allocation20 + $0x130] sm:$0xff]  ;;  %v1265_v40 = vld [vmem:[#allocation20 + $0x138] sm:$0xff]  ;;  %v7489_v45 = vcombine.low %v1252_v32, %v1256_v33 }
 0x444   :  { %v7498_v51 = vcombine.high %v1260_v31, %v1264_v39 }
 0x446   :  { %2832 = vmatpush1.bf16.msra.mxu0 %v7693_v55  ;;  %2918 = vmatpush1.bf16.msra.mxu1 %v7695_v56  ;;  %v1272_v55 = vld [vmem:[#allocation20 + $0x170] sm:$0xff]  ;;  %v1269_v56 = vld [vmem:[#allocation20 + $0x158] sm:$0xff] }
 0x447   :  { %2833 = vmatprep.subr.bf16.mxu0 %v7702_v57  ;;  %2919 = vmatprep.subr.bf16.mxu1 %v7704_v58  ;;  %v1273_v57 = vld [vmem:[#allocation20 + $0x178] sm:$0xff]  ;;  %v7497_v58 = vcombine.low %v1260_v31, %v1264_v39  ;;  %v7506_v60 = vcombine.high %v1268_v54, %v1272_v55 }
 0x448   :  { %v7508_v61 = vcombine.high %v1269_v56, %v1273_v57  ;;  %v7507_v5 = vcombine.low %v1269_v56, %v1273_v57  ;;  %v1324_v57 = vld [vmem:[#allocation20 + $0x310] sm:$0xff] }
 0x44a   :  { %2834 = vmatpush1.bf16.msra.mxu0 %v7701_v2  ;;  %2920 = vmatpush1.bf16.msra.mxu1 %v7703_v3  ;;  %v1280_v2 = vld [vmem:[#allocation20 + $0x1b0] sm:$0xff]  ;;  %v1277_v3 = vld [vmem:[#allocation20 + $0x198] sm:$0xff] }
 0x44b   :  { %2835 = vmatprep.subr.bf16.mxu0 %v7710_v16  ;;  %2921 = vmatprep.subr.bf16.mxu1 %v7712_v17  ;;  %v1281_v16 = vld [vmem:[#allocation20 + $0x1b8] sm:$0xff]  ;;  %v7505_v17 = vcombine.low %v1268_v54, %v1272_v55  ;;  %v7514_v18 = vcombine.high %v1276_v63, %v1280_v2 }
 0x44c   :  { %v7516_v19 = vcombine.high %v1277_v3, %v1281_v16  ;;  %v7515_v7 = vcombine.low %v1277_v3, %v1281_v16  ;;  %v1332_v16 = vld [vmem:[#allocation20 + $0x350] sm:$0xff] }
 0x44e   :  { %2836 = vmatpush1.bf16.msra.mxu0 %v7709_v22  ;;  %2922 = vmatpush1.bf16.msra.mxu1 %v7711_v23  ;;  %v1288_v22 = vld [vmem:[#allocation20 + $0x1f0] sm:$0xff]  ;;  %v1285_v23 = vld [vmem:[#allocation20 + $0x1d8] sm:$0xff] }
 0x44f   :  { %2934 = vmatprep.subr.bf16.mxu0 %v7466_v24  ;;  %3020 = vmatprep.subr.bf16.mxu1 %v7468_v6  ;;  %v1289_v24 = vld [vmem:[#allocation20 + $0x1f8] sm:$0xff]  ;;  %v7513_v6 = vcombine.low %v1276_v63, %v1280_v2  ;;  %v7522_v21 = vcombine.high %v1284_v20, %v1288_v22 }
 0x450   :  { %v7524_v8 = vcombine.high %v1285_v23, %v1289_v24  ;;  %v7523_v10 = vcombine.low %v1285_v23, %v1289_v24  ;;  %v1340_v24 = vld [vmem:[#allocation20 + $0x390] sm:$0xff] }
 0x451   :  { %2838 = vmatmul.mubr.bf16.vlgmr.msra.gmra.mrb[8].mxu0 %v9330_v4  ;;  %2924 = vmatmul.mubr.bf16.vlgmr.msra.gmra.mrb[8].mxu1 %v9330_v4 }
 0x452   :  { %2935 = vmatpush1.bf16.msra.mxu0 %v7465_v48  ;;  %2966 = vmatprep.mubr.bf16.mxu0 %v9310_v50  ;;  %v1296_v48 = vld [vmem:[#allocation20 + $0x230] sm:$0xff] }
 0x453   :  { %3021 = vmatpush1.bf16.msra.mxu1 %v7467_v49  ;;  %3052 = vmatprep.mubr.bf16.mxu1 %v9310_v50  ;;  %v1261_v50 = vld [vmem:[#allocation20 + $0x118] sm:$0xff]  ;;  %v7530_v11 = vcombine.high %v1292_v25, %v1296_v48 }
 0x454   :  { %2936 = vmatprep.subr.bf16.mxu0 %v7474_v1  ;;  %3022 = vmatprep.subr.bf16.mxu1 %v7476_v9  ;;  %v7500_v52 = vcombine.high %v1261_v50, %v1265_v40  ;;  %v7499_v59 = vcombine.low %v1261_v50, %v1265_v40  ;;  %v1293_v49 = vld [vmem:[#allocation20 + $0x218] sm:$0xff]  ;;  %v7521_v9 = vcombine.low %v1284_v20, %v1288_v22  ;;  %v1316_v40 = vld [vmem:[#allocation20 + $0x2d0] sm:$0xff] }
 0x455   :  { %v1297_v1 = vld [vmem:[#allocation20 + $0x238] sm:$0xff] }
 0x456   :  { %2937 = vmatpush1.bf16.msra.mxu0 %v7473_v14  ;;  %v7532_v12 = vcombine.high %v1293_v49, %v1297_v1  ;;  %v1304_v14 = vld [vmem:[#allocation20 + $0x270] sm:$0xff]  ;;  %v7531_v32 = vcombine.low %v1293_v49, %v1297_v1 }
 0x457   :  { %3023 = vmatpush1.bf16.msra.mxu1 %v7475_v15  ;;  %2938 = vmatprep.subr.bf16.mxu0 %v7482_v43  ;;  %v1301_v15 = vld [vmem:[#allocation20 + $0x258] sm:$0xff]  ;;  %v7538_v33 = vcombine.high %v1300_v13, %v1304_v14  ;;  %v1348_v1 = vld [vmem:[#allocation20 + $0x3d0] sm:$0xff] }
 0x458   :  { %3024 = vmatprep.subr.bf16.mxu1 %v7484_v26  ;;  %v1305_v43 = vld [vmem:[#allocation20 + $0x278] sm:$0xff]  ;;  %v7529_v26 = vcombine.low %v1292_v25, %v1296_v48 }
 0x459   :  { %v7540_v27 = vcombine.high %v1301_v15, %v1305_v43  ;;  %v7539_v31 = vcombine.low %v1301_v15, %v1305_v43  ;;  %v1356_v43 = vld [vmem:[#allocation20 + $0x410] sm:$0xff] }
 0x45a   :  { %2939 = vmatpush1.bf16.msra.mxu0 %v7481_v35  ;;  %v1312_v35 = vld [vmem:[#allocation20 + $0x2b0] sm:$0xff] }
 0x45b   :  { %3025 = vmatpush1.bf16.msra.mxu1 %v7483_v37  ;;  %2940 = vmatprep.subr.bf16.mxu0 %v7490_v28  ;;  %v1309_v37 = vld [vmem:[#allocation20 + $0x298] sm:$0xff]  ;;  %v7546_v39 = vcombine.high %v1308_v30, %v1312_v35 }
 0x45c   :  { %3026 = vmatprep.subr.bf16.mxu1 %v7492_v29  ;;  %v1313_v28 = vld [vmem:[#allocation20 + $0x2b8] sm:$0xff]  ;;  %v7537_v29 = vcombine.low %v1300_v13, %v1304_v14 }
 0x45d   :  { %v7548_v50 = vcombine.high %v1309_v37, %v1313_v28  ;;  %v7547_v54 = vcombine.low %v1309_v37, %v1313_v28  ;;  %v1364_v28 = vld [vmem:[#allocation20 + $0x450] sm:$0xff] }
 0x45e   :  { %2941 = vmatpush1.bf16.msra.mxu0 %v7489_v45  ;;  %v1320_v45 = vld [vmem:[#allocation20 + $0x2f0] sm:$0xff] }
 0x45f   :  { %3027 = vmatpush1.bf16.msra.mxu1 %v7491_v47  ;;  %2942 = vmatprep.subr.bf16.mxu0 %v7498_v51  ;;  %v1317_v47 = vld [vmem:[#allocation20 + $0x2d8] sm:$0xff]  ;;  %v7554_v55 = vcombine.high %v1316_v40, %v1320_v45 }
 0x460   :  { %3028 = vmatprep.subr.bf16.mxu1 %v7500_v52  ;;  %v1321_v51 = vld [vmem:[#allocation20 + $0x2f8] sm:$0xff]  ;;  %v7545_v52 = vcombine.low %v1308_v30, %v1312_v35 }
 0x461   :  { %v7556_v56 = vcombine.high %v1317_v47, %v1321_v51  ;;  %v7555_v63 = vcombine.low %v1317_v47, %v1321_v51  ;;  %v1372_v47 = vld [vmem:[#allocation20 + $0x490] sm:$0xff] }
 0x462   :  { %2943 = vmatpush1.bf16.msra.mxu0 %v7497_v58  ;;  %v1328_v58 = vld [vmem:[#allocation20 + $0x330] sm:$0xff] }
 0x463   :  { %3029 = vmatpush1.bf16.msra.mxu1 %v7499_v59  ;;  %2944 = vmatprep.subr.bf16.mxu0 %v7506_v60  ;;  %v1325_v59 = vld [vmem:[#allocation20 + $0x318] sm:$0xff]  ;;  %v7562_v2 = vcombine.high %v1324_v57, %v1328_v58  ;;  %v1376_v51 = vld [vmem:[#allocation20 + $0x4b0] sm:$0xff] }
 0x464   :  { %3030 = vmatprep.subr.bf16.mxu1 %v7508_v61  ;;  %v1329_v60 = vld [vmem:[#allocation20 + $0x338] sm:$0xff]  ;;  %v7553_v61 = vcombine.low %v1316_v40, %v1320_v45 }
 0x465   :  { %v7564_v3 = vcombine.high %v1325_v59, %v1329_v60  ;;  %v7563_v20 = vcombine.low %v1325_v59, %v1329_v60  ;;  %v1380_v60 = vld [vmem:[#allocation20 + $0x4d0] sm:$0xff] }
 0x466   :  { %2945 = vmatpush1.bf16.msra.mxu0 %v7505_v17  ;;  %v1336_v17 = vld [vmem:[#allocation20 + $0x370] sm:$0xff] }
 0x467   :  { %3031 = vmatpush1.bf16.msra.mxu1 %v7507_v5  ;;  %2946 = vmatprep.subr.bf16.mxu0 %v7514_v18  ;;  %v1333_v5 = vld [vmem:[#allocation20 + $0x358] sm:$0xff]  ;;  %v7570_v22 = vcombine.high %v1332_v16, %v1336_v17 }
 0x468   :  { %3032 = vmatprep.subr.bf16.mxu1 %v7516_v19  ;;  %v1337_v18 = vld [vmem:[#allocation20 + $0x378] sm:$0xff]  ;;  %v7561_v19 = vcombine.low %v1324_v57, %v1328_v58  ;;  %v7610_v58 = vcombine.high %v1372_v47, %v1376_v51 }
 0x469   :  { %v7572_v23 = vcombine.high %v1333_v5, %v1337_v18  ;;  %v7571_v25 = vcombine.low %v1333_v5, %v1337_v18  ;;  %v1388_v5 = vld [vmem:[#allocation20 + $0x510] sm:$0xff] }
 0x46a   :  { %2947 = vmatpush1.bf16.msra.mxu0 %v7513_v6  ;;  %v1344_v6 = vld [vmem:[#allocation20 + $0x3b0] sm:$0xff] }
 0x46b   :  { %3033 = vmatpush1.bf16.msra.mxu1 %v7515_v7  ;;  %2948 = vmatprep.subr.bf16.mxu0 %v7522_v21  ;;  %v1341_v7 = vld [vmem:[#allocation20 + $0x398] sm:$0xff]  ;;  %v7578_v48 = vcombine.high %v1340_v24, %v1344_v6  ;;  %v1392_v18 = vld [vmem:[#allocation20 + $0x530] sm:$0xff] }
 0x46c   :  { %3034 = vmatprep.subr.bf16.mxu1 %v7524_v8  ;;  %v1345_v21 = vld [vmem:[#allocation20 + $0x3b8] sm:$0xff]  ;;  %v7569_v8 = vcombine.low %v1332_v16, %v1336_v17 }
 0x46d   :  { %v7580_v49 = vcombine.high %v1341_v7, %v1345_v21  ;;  %v7579_v13 = vcombine.low %v1341_v7, %v1345_v21  ;;  %v1400_v7 = vld [vmem:[#allocation20 + $0x570] sm:$0xff]  ;;  %v1397_v21 = vld [vmem:[#allocation20 + $0x558] sm:$0xff] }
 0x46e   :  { %2949 = vmatpush1.bf16.msra.mxu0 %v7521_v9  ;;  %v1352_v9 = vld [vmem:[#allocation20 + $0x3f0] sm:$0xff] }
 0x46f   :  { %3035 = vmatpush1.bf16.msra.mxu1 %v7523_v10  ;;  %2950 = vmatprep.subr.bf16.mxu0 %v7530_v11  ;;  %v1349_v10 = vld [vmem:[#allocation20 + $0x3d8] sm:$0xff]  ;;  %v7586_v14 = vcombine.high %v1348_v1, %v1352_v9 }
 0x470   :  { %3036 = vmatprep.subr.bf16.mxu1 %v7532_v12  ;;  %v1353_v11 = vld [vmem:[#allocation20 + $0x3f8] sm:$0xff]  ;;  %v7577_v12 = vcombine.low %v1340_v24, %v1344_v6  ;;  %v1396_v6 = vld [vmem:[#allocation20 + $0x550] sm:$0xff] }
 0x471   :  { %v7588_v15 = vcombine.high %v1349_v10, %v1353_v11  ;;  %v7587_v30 = vcombine.low %v1349_v10, %v1353_v11  ;;  %v1408_v10 = vld [vmem:[#allocation20 + $0x5b0] sm:$0xff]  ;;  %v1405_v11 = vld [vmem:[#allocation20 + $0x598] sm:$0xff] }
 0x472   :  { %2951 = vmatpush1.bf16.msra.mxu0 %v7529_v26  ;;  %v1360_v26 = vld [vmem:[#allocation20 + $0x430] sm:$0xff] }
 0x473   :  { %3037 = vmatpush1.bf16.msra.mxu1 %v7531_v32  ;;  %2952 = vmatprep.subr.bf16.mxu0 %v7538_v33  ;;  %v1357_v32 = vld [vmem:[#allocation20 + $0x418] sm:$0xff]  ;;  %v7594_v35 = vcombine.high %v1356_v43, %v1360_v26 }
 0x474   :  { %3038 = vmatprep.subr.bf16.mxu1 %v7540_v27  ;;  %v1361_v33 = vld [vmem:[#allocation20 + $0x438] sm:$0xff]  ;;  %v7585_v27 = vcombine.low %v1348_v1, %v1352_v9  ;;  %v1404_v9 = vld [vmem:[#allocation20 + $0x590] sm:$0xff] }
 0x475   :  { %v7596_v37 = vcombine.high %v1357_v32, %v1361_v33  ;;  %v7595_v40 = vcombine.low %v1357_v32, %v1361_v33  ;;  %v1416_v32 = vld [vmem:[#allocation20 + $0x5f0] sm:$0xff]  ;;  %v1413_v33 = vld [vmem:[#allocation20 + $0x5d8] sm:$0xff] }
 0x476   :  { %2953 = vmatpush1.bf16.msra.mxu0 %v7537_v29  ;;  %v1368_v29 = vld [vmem:[#allocation20 + $0x470] sm:$0xff] }
 0x477   :  { %3039 = vmatpush1.bf16.msra.mxu1 %v7539_v31  ;;  %2954 = vmatprep.subr.bf16.mxu0 %v7546_v39  ;;  %v7593_v31 = vcombine.low %v1356_v43, %v1360_v26  ;;  %v1365_v39 = vld [vmem:[#allocation20 + $0x458] sm:$0xff]  ;;  %v7602_v45 = vcombine.high %v1364_v28, %v1368_v29  ;;  %v1412_v26 = vld [vmem:[#allocation20 + $0x5d0] sm:$0xff] }
 0x478   :  { %3040 = vmatprep.subr.bf16.mxu1 %v7548_v50  ;;  %v1369_v50 = vld [vmem:[#allocation20 + $0x478] sm:$0xff] }
 0x479   :  { %v7603_v57 = vcombine.low %v1365_v39, %v1369_v50 }
 0x47a   :  { %2955 = vmatpush1.bf16.msra.mxu0 %v7545_v52  ;;  %v7604_v52 = vcombine.high %v1365_v39, %v1369_v50  ;;  %v1421_v39 = vld [vmem:[#allocation20 + $0x618] sm:$0xff] }
 0x47b   :  { %3041 = vmatpush1.bf16.msra.mxu1 %v7547_v54  ;;  %2956 = vmatprep.subr.bf16.mxu0 %v7554_v55  ;;  %v1373_v54 = vld [vmem:[#allocation20 + $0x498] sm:$0xff] }
 0x47c   :  { %3042 = vmatprep.subr.bf16.mxu1 %v7556_v56  ;;  %v1377_v55 = vld [vmem:[#allocation20 + $0x4b8] sm:$0xff]  ;;  %v7601_v56 = vcombine.low %v1364_v28, %v1368_v29  ;;  %v1420_v29 = vld [vmem:[#allocation20 + $0x610] sm:$0xff] }
 0x47d   :  { %v7612_v59 = vcombine.high %v1373_v54, %v1377_v55  ;;  %v1425_v50 = vld [vmem:[#allocation20 + $0x638] sm:$0xff] }
 0x47e   :  { %2957 = vmatpush1.bf16.msra.mxu0 %v7553_v61  ;;  %v1384_v61 = vld [vmem:[#allocation20 + $0x4f0] sm:$0xff] }
 0x47f   :  { %3043 = vmatpush1.bf16.msra.mxu1 %v7555_v63  ;;  %2958 = vmatprep.subr.bf16.mxu0 %v7562_v2  ;;  %v1381_v63 = vld [vmem:[#allocation20 + $0x4d8] sm:$0xff]  ;;  %v7618_v16 = vcombine.high %v1380_v60, %v1384_v61 }
 0x480   :  { %3044 = vmatprep.subr.bf16.mxu1 %v7564_v3  ;;  %v1385_v2 = vld [vmem:[#allocation20 + $0x4f8] sm:$0xff]  ;;  %v7609_v3 = vcombine.low %v1372_v47, %v1376_v51  ;;  %v7660_v51 = vcombine.high %v1421_v39, %v1425_v50 }
 0x481   :  { %v7620_v17 = vcombine.high %v1381_v63, %v1385_v2 }
 0x482   :  { %2959 = vmatpush1.bf16.msra.mxu0 %v7561_v19  ;;  %v1389_v19 = vld [vmem:[#allocation20 + $0x518] sm:$0xff] }
 0x483   :  { %3045 = vmatpush1.bf16.msra.mxu1 %v7563_v20  ;;  %2960 = vmatprep.subr.bf16.mxu0 %v7570_v22  ;;  %v1393_v20 = vld [vmem:[#allocation20 + $0x538] sm:$0xff]  ;;  %v7619_v22 = vcombine.low %v1381_v63, %v1385_v2  ;;  %v1440_v63 = vld [vmem:[#allocation20 + $0x6b0] sm:$0xff] }
 0x484   :  { %3046 = vmatprep.subr.bf16.mxu1 %v7572_v23  ;;  %v7626_v23 = vcombine.high %v1388_v5, %v1392_v18  ;;  %v7628_v24 = vcombine.high %v1389_v19, %v1393_v20  ;;  %v1437_v2 = vld [vmem:[#allocation20 + $0x698] sm:$0xff] }
 0x486   :  { %2961 = vmatpush1.bf16.msra.mxu0 %v7569_v8  ;;  %v1401_v8 = vld [vmem:[#allocation20 + $0x578] sm:$0xff] }
 0x487   :  { %3047 = vmatpush1.bf16.msra.mxu1 %v7571_v25  ;;  %2962 = vmatprep.subr.bf16.mxu0 %v7578_v48  ;;  %v7625_v25 = vcombine.low %v1388_v5, %v1392_v18  ;;  %v7627_v48 = vcombine.low %v1389_v19, %v1393_v20  ;;  %v7636_v1 = vcombine.high %v1397_v21, %v1401_v8  ;;  %v1444_v18 = vld [vmem:[#allocation20 + $0x6d0] sm:$0xff]  ;;  %v1445_v20 = vld [vmem:[#allocation20 + $0x6d8] sm:$0xff] }
 0x488   :  { %3048 = vmatprep.subr.bf16.mxu1 %v7580_v49  ;;  %v7634_v49 = vcombine.high %v1396_v6, %v1400_v7  ;;  %v1448_v19 = vld [vmem:[#allocation20 + $0x6f0] sm:$0xff] }
 0x48a   :  { %2963 = vmatpush1.bf16.msra.mxu0 %v7577_v12  ;;  %v1409_v12 = vld [vmem:[#allocation20 + $0x5b8] sm:$0xff] }
 0x48b   :  { %3049 = vmatpush1.bf16.msra.mxu1 %v7579_v13  ;;  %2964 = vmatprep.subr.bf16.mxu0 %v7586_v14  ;;  %v7633_v13 = vcombine.low %v1396_v6, %v1400_v7  ;;  %v7635_v14 = vcombine.low %v1397_v21, %v1401_v8  ;;  %v7644_v43 = vcombine.high %v1405_v11, %v1409_v12  ;;  %v1452_v7 = vld [vmem:[#allocation20 + $0x710] sm:$0xff]  ;;  %v1453_v8 = vld [vmem:[#allocation20 + $0x718] sm:$0xff] }
 0x48c   :  { %3050 = vmatprep.subr.bf16.mxu1 %v7588_v15  ;;  %v7642_v15 = vcombine.high %v1404_v9, %v1408_v10  ;;  %v1456_v21 = vld [vmem:[#allocation20 + $0x730] sm:$0xff] }
 0x48e   :  { %2965 = vmatpush1.bf16.msra.mxu0 %v7585_v27  ;;  %v1417_v27 = vld [vmem:[#allocation20 + $0x5f8] sm:$0xff] }
 0x48f   :  { %3051 = vmatpush1.bf16.msra.mxu1 %v7587_v30  ;;  %2977 = vmatprep.subr.bf16.mxu0 %v7594_v35  ;;  %v7641_v30 = vcombine.low %v1404_v9, %v1408_v10  ;;  %v7643_v35 = vcombine.low %v1405_v11, %v1409_v12  ;;  %v7652_v28 = vcombine.high %v1413_v33, %v1417_v27  ;;  %v1460_v10 = vld [vmem:[#allocation20 + $0x750] sm:$0xff]  ;;  %v1461_v12 = vld [vmem:[#allocation20 + $0x758] sm:$0xff] }
 0x490   :  { %3063 = vmatprep.subr.bf16.mxu1 %v7596_v37  ;;  %v7650_v37 = vcombine.high %v1412_v26, %v1416_v32  ;;  %v1464_v11 = vld [vmem:[#allocation20 + $0x770] sm:$0xff] }
 0x491   :  { %2967 = vmatmul.mubr.bf16.vlgmr.msra.gmra.mrb[12].mxu0 %v9313_v53 }
 0x492   :  { %3053 = vmatmul.mubr.bf16.vlgmr.msra.gmra.mrb[12].mxu1 %v9313_v53  ;;  %2978 = vmatpush1.bf16.msra.mxu0 %v7593_v31  ;;  %v7611_v53 = vcombine.low %v1373_v54, %v1377_v55  ;;  %v1424_v31 = vld [vmem:[#allocation20 + $0x630] sm:$0xff]  ;;  %v1429_v55 = vld [vmem:[#allocation20 + $0x658] sm:$0xff] }
 0x493   :  { %3009 = vmatprep.mubr.bf16.mxu0 %v9317_v0  ;;  %3064 = vmatpush1.bf16.msra.mxu1 %v7595_v40  ;;  %v7649_v40 = vcombine.low %v1412_v26, %v1416_v32  ;;  %v7658_v47 = vcombine.high %v1420_v29, %v1424_v31  ;;  %v1432_v54 = vld [vmem:[#allocation20 + $0x670] sm:$0xff] }
 0x494   :  { %3095 = vmatprep.mubr.bf16.mxu1 %v9317_v0  ;;  %2979 = vmatprep.subr.bf16.mxu0 %v7602_v45  ;;  %v7617_v0 = vcombine.low %v1380_v60, %v1384_v61  ;;  %v7651_v45 = vcombine.low %v1413_v33, %v1417_v27  ;;  %v1436_v61 = vld [vmem:[#allocation20 + $0x690] sm:$0xff]  ;;  %v1469_v27 = vld [vmem:[#allocation20 + $0x798] sm:$0xff] }
 0x495   :  { %3065 = vmatprep.subr.bf16.mxu1 %v7604_v52  ;;  %v1428_v52 = vld [vmem:[#allocation20 + $0x650] sm:$0xff] }
 0x496   :  { %2980 = vmatpush1.bf16.msra.mxu0 %v7601_v56  ;;  %v1433_v56 = vld [vmem:[#allocation20 + $0x678] sm:$0xff]  ;;  %v1468_v32 = vld [vmem:[#allocation20 + $0x790] sm:$0xff] }
 0x497   :  { %3066 = vmatpush1.bf16.msra.mxu1 %v7603_v57  ;;  %2981 = vmatprep.subr.bf16.mxu0 %v7610_v58  ;;  %v7657_v57 = vcombine.low %v1420_v29, %v1424_v31  ;;  %v7659_v58 = vcombine.low %v1421_v39, %v1425_v50  ;;  %v7668_v60 = vcombine.high %v1429_v55, %v1433_v56  ;;  %v1472_v33 = vld [vmem:[#allocation20 + $0x7b0] sm:$0xff]  ;;  %v1477_v50 = vld [vmem:[#allocation20 + $0x7d8] sm:$0xff] }
 0x498   :  { %3067 = vmatprep.subr.bf16.mxu1 %v7612_v59  ;;  %v7666_v59 = vcombine.high %v1428_v52, %v1432_v54  ;;  %v1476_v31 = vld [vmem:[#allocation20 + $0x7d0] sm:$0xff] }
 0x499   :  { %v1480_v39 = vld [vmem:[#allocation20 + $0x7f0] sm:$0xff] }
 0x49a   :  { %2982 = vmatpush1.bf16.msra.mxu0 %v7609_v3  ;;  %v1441_v3 = vld [vmem:[#allocation20 + $0x6b8] sm:$0xff] }
 0x49b   :  { %3068 = vmatpush1.bf16.msra.mxu1 %v7611_v53  ;;  %2983 = vmatprep.subr.bf16.mxu0 %v7618_v16  ;;  %v7665_v53 = vcombine.low %v1428_v52, %v1432_v54  ;;  %v7667_v16 = vcombine.low %v1429_v55, %v1433_v56  ;;  %v7676_v5 = vcombine.high %v1437_v2, %v1441_v3  ;;  %v3518_v54 = vld [vmem:[#allocation25] sm:$0xff]  ;;  %v3519_v56 = vld [vmem:[#allocation25 + $0x8] sm:$0xff] }
 0x49c   :  { %3069 = vmatprep.subr.bf16.mxu1 %v7620_v17  ;;  %v7674_v17 = vcombine.high %v1436_v61, %v1440_v63  ;;  %v3522_v55 = vld [vmem:[#allocation25 + $0x20] sm:$0xff] }
 0x49e   :  { %2984 = vmatpush1.bf16.msra.mxu0 %v7617_v0  ;;  %v1449_v0 = vld [vmem:[#allocation20 + $0x6f8] sm:$0xff] }
 0x49f   :  { %3070 = vmatpush1.bf16.msra.mxu1 %v7619_v22  ;;  %2985 = vmatprep.subr.bf16.mxu0 %v7626_v23  ;;  %v7673_v22 = vcombine.low %v1436_v61, %v1440_v63  ;;  %v7675_v23 = vcombine.low %v1437_v2, %v1441_v3  ;;  %v7684_v6 = vcombine.high %v1445_v20, %v1449_v0  ;;  %v3526_v63 = vld [vmem:[#allocation25 + $0x40] sm:$0xff]  ;;  %v3527_v3 = vld [vmem:[#allocation25 + $0x48] sm:$0xff] }
 0x4a0   :  { %3071 = vmatprep.subr.bf16.mxu1 %v7628_v24  ;;  %v7682_v24 = vcombine.high %v1444_v18, %v1448_v19  ;;  %v3530_v2 = vld [vmem:[#allocation25 + $0x60] sm:$0xff] }
 0x4a2   :  { %2986 = vmatpush1.bf16.msra.mxu0 %v7625_v25  ;;  %v1457_v25 = vld [vmem:[#allocation20 + $0x738] sm:$0xff] }
 0x4a3   :  { %3072 = vmatpush1.bf16.msra.mxu1 %v7627_v48  ;;  %2987 = vmatprep.subr.bf16.mxu0 %v7634_v49  ;;  %v7681_v48 = vcombine.low %v1444_v18, %v1448_v19  ;;  %v7683_v49 = vcombine.low %v1445_v20, %v1449_v0  ;;  %v7692_v9 = vcombine.high %v1453_v8, %v1457_v25  ;;  %v3534_v19 = vld [vmem:[#allocation25 + $0x80] sm:$0xff]  ;;  %v3535_v0 = vld [vmem:[#allocation25 + $0x88] sm:$0xff] }
 0x4a4   :  { %3073 = vmatprep.subr.bf16.mxu1 %v7636_v1  ;;  %v7690_v1 = vcombine.high %v1452_v7, %v1456_v21  ;;  %v3538_v20 = vld [vmem:[#allocation25 + $0xa0] sm:$0xff] }
 0x4a6   :  { %2988 = vmatpush1.bf16.msra.mxu0 %v7633_v13  ;;  %v1465_v13 = vld [vmem:[#allocation20 + $0x778] sm:$0xff] }
 0x4a7   :  { %3074 = vmatpush1.bf16.msra.mxu1 %v7635_v14  ;;  %2989 = vmatprep.subr.bf16.mxu0 %v7642_v15  ;;  %v7689_v14 = vcombine.low %v1452_v7, %v1456_v21  ;;  %v7691_v15 = vcombine.low %v1453_v8, %v1457_v25  ;;  %v7700_v26 = vcombine.high %v1461_v12, %v1465_v13  ;;  %v3542_v21 = vld [vmem:[#allocation25 + $0xc0] sm:$0xff]  ;;  %v3543_v25 = vld [vmem:[#allocation25 + $0xc8] sm:$0xff] }
 0x4a8   :  { %3075 = vmatprep.subr.bf16.mxu1 %v7644_v43  ;;  %v7698_v43 = vcombine.high %v1460_v10, %v1464_v11  ;;  %v3546_v8 = vld [vmem:[#allocation25 + $0xe0] sm:$0xff] }
 0x4aa   :  { %2990 = vmatpush1.bf16.msra.mxu0 %v7641_v30  ;;  %v1473_v30 = vld [vmem:[#allocation20 + $0x7b8] sm:$0xff] }
 0x4ab   :  { %3076 = vmatpush1.bf16.msra.mxu1 %v7643_v35  ;;  %2991 = vmatprep.subr.bf16.mxu0 %v7650_v37  ;;  %v7697_v35 = vcombine.low %v1460_v10, %v1464_v11  ;;  %v7699_v37 = vcombine.low %v1461_v12, %v1465_v13  ;;  %v7708_v29 = vcombine.high %v1469_v27, %v1473_v30  ;;  %v3550_v10 = vld [vmem:[#allocation25 + $0x100] sm:$0xff]  ;;  %v3551_v12 = vld [vmem:[#allocation25 + $0x108] sm:$0xff] }
 0x4ac   :  { %3077 = vmatprep.subr.bf16.mxu1 %v7652_v28  ;;  %v7706_v28 = vcombine.high %v1468_v32, %v1472_v33  ;;  %v3554_v11 = vld [vmem:[#allocation25 + $0x120] sm:$0xff]  ;;  %v3555_v13 = vld [vmem:[#allocation25 + $0x128] sm:$0xff] }
 0x4ae   :  { %2992 = vmatpush1.bf16.msra.mxu0 %v7649_v40  ;;  %v1481_v40 = vld [vmem:[#allocation20 + $0x7f8] sm:$0xff] }
 0x4af   :  { %3078 = vmatpush1.bf16.msra.mxu1 %v7651_v45  ;;  %2993 = vmatprep.subr.bf16.mxu0 %v7658_v47  ;;  %v7705_v45 = vcombine.low %v1468_v32, %v1472_v33  ;;  %v7707_v47 = vcombine.low %v1469_v27, %v1473_v30  ;;  %v7716_v52 = vcombine.high %v1477_v50, %v1481_v40  ;;  %v3558_v32 = vld [vmem:[#allocation25 + $0x140] sm:$0xff]  ;;  %v3559_v27 = vld [vmem:[#allocation25 + $0x148] sm:$0xff] }
 0x4b0   :  { %3079 = vmatprep.subr.bf16.mxu1 %v7660_v51  ;;  %v7714_v51 = vcombine.high %v1476_v31, %v1480_v39  ;;  %v3562_v33 = vld [vmem:[#allocation25 + $0x160] sm:$0xff]  ;;  %v3563_v30 = vld [vmem:[#allocation25 + $0x168] sm:$0xff] }
 0x4b2   :  { %2994 = vmatpush1.bf16.msra.mxu0 %v7657_v57  ;;  %v3523_v57 = vld [vmem:[#allocation25 + $0x28] sm:$0xff] }
 0x4b3   :  { %3080 = vmatpush1.bf16.msra.mxu1 %v7659_v58  ;;  %2995 = vmatprep.subr.bf16.mxu0 %v7666_v59  ;;  %v7713_v58 = vcombine.low %v1476_v31, %v1480_v39  ;;  %v7715_v59 = vcombine.low %v1477_v50, %v1481_v40  ;;  %v7720_v61 = vcombine.high %v3519_v56, %v3523_v57  ;;  %v3566_v31 = vld [vmem:[#allocation25 + $0x180] sm:$0xff]  ;;  %v3567_v50 = vld [vmem:[#allocation25 + $0x188] sm:$0xff] }
 0x4b4   :  { %3081 = vmatprep.subr.bf16.mxu1 %v7668_v60  ;;  %v7718_v60 = vcombine.high %v3518_v54, %v3522_v55  ;;  %v3570_v39 = vld [vmem:[#allocation25 + $0x1a0] sm:$0xff]  ;;  %v3571_v40 = vld [vmem:[#allocation25 + $0x1a8] sm:$0xff] }
 0x4b6   :  { %2996 = vmatpush1.bf16.msra.mxu0 %v7665_v53  ;;  %v3531_v53 = vld [vmem:[#allocation25 + $0x68] sm:$0xff] }
 0x4b7   :  { %3082 = vmatpush1.bf16.msra.mxu1 %v7667_v16  ;;  %2997 = vmatprep.subr.bf16.mxu0 %v7674_v17  ;;  %v7717_v16 = vcombine.low %v3518_v54, %v3522_v55  ;;  %v7719_v17 = vcombine.low %v3519_v56, %v3523_v57  ;;  %v7728_v18 = vcombine.high %v3527_v3, %v3531_v53  ;;  %v3574_v54 = vld [vmem:[#allocation25 + $0x1c0] sm:$0xff]  ;;  %v3575_v56 = vld [vmem:[#allocation25 + $0x1c8] sm:$0xff] }
 0x4b8   :  { %3083 = vmatprep.subr.bf16.mxu1 %v7676_v5  ;;  %v7726_v5 = vcombine.high %v3526_v63, %v3530_v2  ;;  %v3578_v55 = vld [vmem:[#allocation25 + $0x1e0] sm:$0xff]  ;;  %v3579_v57 = vld [vmem:[#allocation25 + $0x1e8] sm:$0xff] }
 0x4ba   :  { %2998 = vmatpush1.bf16.msra.mxu0 %v7673_v22  ;;  %v3539_v22 = vld [vmem:[#allocation25 + $0xa8] sm:$0xff] }
 0x4bb   :  { %3084 = vmatpush1.bf16.msra.mxu1 %v7675_v23  ;;  %2999 = vmatprep.subr.bf16.mxu0 %v7682_v24  ;;  %v7725_v23 = vcombine.low %v3526_v63, %v3530_v2  ;;  %v7727_v24 = vcombine.low %v3527_v3, %v3531_v53  ;;  %v7736_v7 = vcombine.high %v3535_v0, %v3539_v22  ;;  %v3586_v2 = vld [vmem:[#allocation25 + $0x220] sm:$0xff]  ;;  %v3583_v3 = vld [vmem:[#allocation25 + $0x208] sm:$0xff] }
 0x4bc   :  { %3085 = vmatprep.subr.bf16.mxu1 %v7684_v6  ;;  %v7734_v6 = vcombine.high %v3534_v19, %v3538_v20  ;;  %v7776_v63 = vcombine.high %v3575_v56, %v3579_v57  ;;  %v3587_v53 = vld [vmem:[#allocation25 + $0x228] sm:$0xff] }
 0x4be   :  { %3000 = vmatpush1.bf16.msra.mxu0 %v7681_v48  ;;  %v3547_v48 = vld [vmem:[#allocation25 + $0xe8] sm:$0xff] }
 0x4bf   :  { %3086 = vmatpush1.bf16.msra.mxu1 %v7683_v49  ;;  %3001 = vmatprep.subr.bf16.mxu0 %v7690_v1  ;;  %v7733_v49 = vcombine.low %v3534_v19, %v3538_v20  ;;  %v7735_v1 = vcombine.low %v3535_v0, %v3539_v22  ;;  %v9355_v20 = vld [vmem:[#allocation25 + $0x428] sm:$0xff]  ;;  %v7775_v0 = vcombine.low %v3575_v56, %v3579_v57 }
 0x4c0   :  { %3087 = vmatprep.subr.bf16.mxu1 %v7692_v9  ;;  %v7742_v9 = vcombine.high %v3542_v21, %v3546_v8 }
 0x4c2   :  { %3002 = vmatpush1.bf16.msra.mxu0 %v7689_v14  ;;  %v7741_v14 = vcombine.low %v3542_v21, %v3546_v8  ;;  %v3591_v21 = vld [vmem:[#allocation25 + $0x248] sm:$0xff] }
 0x4c3   :  { %3088 = vmatpush1.bf16.msra.mxu1 %v7691_v15  ;;  %3003 = vmatprep.subr.bf16.mxu0 %v7698_v43  ;;  %v7743_v15 = vcombine.low %v3543_v25, %v3547_v48  ;;  %v7750_v43 = vcombine.high %v3550_v10, %v3554_v11  ;;  %v3595_v8 = vld [vmem:[#allocation25 + $0x268] sm:$0xff] }
 0x4c4   :  { %3089 = vmatprep.subr.bf16.mxu1 %v7700_v26  ;;  %v7752_v26 = vcombine.high %v3551_v12, %v3555_v13 }
 0x4c6   :  { %3004 = vmatpush1.bf16.msra.mxu0 %v7697_v35  ;;  %v7749_v35 = vcombine.low %v3550_v10, %v3554_v11  ;;  %v3599_v10 = vld [vmem:[#allocation25 + $0x288] sm:$0xff] }
 0x4c7   :  { %3090 = vmatpush1.bf16.msra.mxu1 %v7699_v37  ;;  %3005 = vmatprep.subr.bf16.mxu0 %v7706_v28  ;;  %v7751_v37 = vcombine.low %v3551_v12, %v3555_v13  ;;  %v7758_v28 = vcombine.high %v3558_v32, %v3562_v33  ;;  %v3603_v11 = vld [vmem:[#allocation25 + $0x2a8] sm:$0xff]  ;;  %v7791_v13 = vcombine.low %v3591_v21, %v3595_v8 }
 0x4c8   :  { %3091 = vmatprep.subr.bf16.mxu1 %v7708_v29  ;;  %v7760_v29 = vcombine.high %v3559_v27, %v3563_v30 }
 0x4ca   :  { %3006 = vmatpush1.bf16.msra.mxu0 %v7705_v45  ;;  %v7757_v45 = vcombine.low %v3558_v32, %v3562_v33  ;;  %v3607_v32 = vld [vmem:[#allocation25 + $0x2c8] sm:$0xff] }
 0x4cb   :  { %3092 = vmatpush1.bf16.msra.mxu1 %v7707_v47  ;;  %3007 = vmatprep.subr.bf16.mxu0 %v7714_v51  ;;  %v7759_v47 = vcombine.low %v3559_v27, %v3563_v30  ;;  %v7766_v51 = vcombine.high %v3566_v31, %v3570_v39  ;;  %v3611_v33 = vld [vmem:[#allocation25 + $0x2e8] sm:$0xff]  ;;  %v7799_v30 = vcombine.low %v3599_v10, %v3603_v11 }
 0x4cc   :  { %3093 = vmatprep.subr.bf16.mxu1 %v7716_v52  ;;  %v7768_v52 = vcombine.high %v3567_v50, %v3571_v40 }
 0x4ce   :  { %3008 = vmatpush1.bf16.msra.mxu0 %v7713_v58  ;;  %v7765_v58 = vcombine.low %v3566_v31, %v3570_v39  ;;  %v3615_v31 = vld [vmem:[#allocation25 + $0x308] sm:$0xff] }
 0x4cf   :  { %3094 = vmatpush1.bf16.msra.mxu1 %v7715_v59  ;;  %6632 = vmatprep.subr.bf16.mxu0 %v7718_v60  ;;  %v7767_v59 = vcombine.low %v3567_v50, %v3571_v40  ;;  %v7774_v60 = vcombine.high %v3574_v54, %v3578_v55  ;;  %v3619_v39 = vld [vmem:[#allocation25 + $0x328] sm:$0xff]  ;;  %v7807_v40 = vcombine.low %v3607_v32, %v3611_v33 }
 0x4d0   :  { %6804 = vmatprep.subr.bf16.mxu1 %v7720_v61  ;;  %v3582_v61 = vld [vmem:[#allocation25 + $0x200] sm:$0xff]  ;;  %v7815_v57 = vcombine.low %v3615_v31, %v3619_v39 }
 0x4d1   :  { %3010 = vmatmul.mubr.bf16.vlgmr.msra.gmra.mrb[12].mxu0 %v9330_v4  ;;  %v7782_v22 = vcombine.high %v3582_v61, %v3586_v2 }
 0x4d2   :  { %3096 = vmatmul.mubr.bf16.vlgmr.msra.gmra.mrb[12].mxu1 %v9330_v4  ;;  %6633 = vmatpush1.bf16.msra.mxu0 %v7717_v16  ;;  %v7744_v4 = vcombine.high %v3543_v25, %v3547_v48  ;;  %v9347_v16 = vld [vmem:[#allocation25 + $0x400] sm:$0xff]  ;;  %v7781_v25 = vcombine.low %v3582_v61, %v3586_v2  ;;  %v7783_v48 = vcombine.low %v3583_v3, %v3587_v53  ;;  %v3635_v2 = vld [vmem:[#allocation25 + $0x3a8] sm:$0xff] }
 0x4d3   :  { %6805 = vmatpush1.bf16.msra.mxu1 %v7719_v17  ;;  %6634 = vmatprep.subr.bf16.mxu0 %v7726_v5  ;;  %v9349_v17 = vld [vmem:[#allocation25 + $0x420] sm:$0xff]  ;;  %v9351_v5 = vld [vmem:[#allocation25 + $0x408] sm:$0xff] }
 0x4d4   :  { %6806 = vmatprep.subr.bf16.mxu1 %v7728_v18  ;;  %v7773_v18 = vcombine.low %v3574_v54, %v3578_v55  ;;  %v7845_v19 = vcombine.low %v9347_v16, %v9349_v17  ;;  %v3623_v54 = vld [vmem:[#allocation25 + $0x348] sm:$0xff]  ;;  %v3634_v61 = vld [vmem:[#allocation25 + $0x3a0] sm:$0xff] }
 0x4d5   :  { %v3627_v55 = vld [vmem:[#allocation25 + $0x368] sm:$0xff] }
 0x4d6   :  { %6635 = vmatpush1.bf16.msra.mxu0 %v7725_v23  ;;  %v7847_v23 = vcombine.low %v9351_v5, %v9355_v20 }
 0x4d7   :  { %6807 = vmatpush1.bf16.msra.mxu1 %v7727_v24  ;;  %6636 = vmatprep.subr.bf16.mxu0 %v7734_v6  ;;  %v7784_v24 = vcombine.high %v3583_v3, %v3587_v53  ;;  %v3590_v6 = vld [vmem:[#allocation25 + $0x240] sm:$0xff]  ;;  %v7823_v53 = vcombine.low %v3623_v54, %v3627_v55 }
 0x4d8   :  { %6808 = vmatprep.subr.bf16.mxu1 %v7736_v7  ;;  %v3594_v7 = vld [vmem:[#allocation25 + $0x260] sm:$0xff] }
 0x4d9   :  { %v7789_v12 = vcombine.low %v3590_v6, %v3594_v7 }
 0x4da   :  { %6637 = vmatpush1.bf16.msra.mxu0 %v7733_v49  ;;  %v7790_v49 = vcombine.high %v3590_v6, %v3594_v7  ;;  %v3639_v6 = vld [vmem:[#allocation25 + $0x3c8] sm:$0xff] }
 0x4db   :  { %6809 = vmatpush1.bf16.msra.mxu1 %v7735_v1  ;;  %6638 = vmatprep.subr.bf16.mxu0 %v7742_v9  ;;  %v7792_v1 = vcombine.high %v3591_v21, %v3595_v8  ;;  %v3598_v9 = vld [vmem:[#allocation25 + $0x280] sm:$0xff]  ;;  %v3643_v7 = vld [vmem:[#allocation25 + $0x3e8] sm:$0xff] }
 0x4dc   :  { %6810 = vmatprep.subr.bf16.mxu1 %v7744_v4  ;;  %v3602_v4 = vld [vmem:[#allocation25 + $0x2a0] sm:$0xff] }
 0x4dd   :  { %v7797_v27 = vcombine.low %v3598_v9, %v3602_v4 }
 0x4de   :  { %6639 = vmatpush1.bf16.msra.mxu0 %v7741_v14  ;;  %v7798_v14 = vcombine.high %v3598_v9, %v3602_v4  ;;  %v7846_v9 = vcombine.high %v9347_v16, %v9349_v17  ;;  %v7848_v4 = vcombine.high %v9351_v5, %v9355_v20  ;;  %v3671_v16 = vld [vmem:[#allocation25 + $0x4c8] sm:$0xff] }
 0x4df   :  { %6811 = vmatpush1.bf16.msra.mxu1 %v7743_v15  ;;  %6640 = vmatprep.subr.bf16.mxu0 %v7750_v43  ;;  %v7800_v15 = vcombine.high %v3599_v10, %v3603_v11  ;;  %v3606_v43 = vld [vmem:[#allocation25 + $0x2c0] sm:$0xff]  ;;  %v3675_v17 = vld [vmem:[#allocation25 + $0x4e8] sm:$0xff] }
 0x4e0   :  { %6812 = vmatprep.subr.bf16.mxu1 %v7752_v26  ;;  %v3610_v26 = vld [vmem:[#allocation25 + $0x2e0] sm:$0xff] }
 0x4e1   :  { %v7805_v50 = vcombine.low %v3606_v43, %v3610_v26 }
 0x4e2   :  { %6641 = vmatpush1.bf16.msra.mxu0 %v7749_v35  ;;  %v7806_v35 = vcombine.high %v3606_v43, %v3610_v26 }
 0x4e3   :  { %6813 = vmatpush1.bf16.msra.mxu1 %v7751_v37  ;;  %6642 = vmatprep.subr.bf16.mxu0 %v7758_v28  ;;  %v7808_v37 = vcombine.high %v3607_v32, %v3611_v33  ;;  %v3614_v28 = vld [vmem:[#allocation25 + $0x300] sm:$0xff] }
 0x4e4   :  { %6814 = vmatprep.subr.bf16.mxu1 %v7760_v29  ;;  %v3618_v29 = vld [vmem:[#allocation25 + $0x320] sm:$0xff] }
 0x4e5   :  { %v7813_v56 = vcombine.low %v3614_v28, %v3618_v29 }
 0x4e6   :  { %6643 = vmatpush1.bf16.msra.mxu0 %v7757_v45  ;;  %v7814_v45 = vcombine.high %v3614_v28, %v3618_v29 }
 0x4e7   :  { %6815 = vmatpush1.bf16.msra.mxu1 %v7759_v47  ;;  %6644 = vmatprep.subr.bf16.mxu0 %v7766_v51  ;;  %v7816_v47 = vcombine.high %v3615_v31, %v3619_v39  ;;  %v3622_v51 = vld [vmem:[#allocation25 + $0x340] sm:$0xff] }
 0x4e8   :  { %6816 = vmatprep.subr.bf16.mxu1 %v7768_v52  ;;  %v3626_v52 = vld [vmem:[#allocation25 + $0x360] sm:$0xff] }
 0x4e9   :  { %v7821_v3 = vcombine.low %v3622_v51, %v3626_v52 }
 0x4ea   :  { %6645 = vmatpush1.bf16.msra.mxu0 %v7765_v58  ;;  %v7822_v58 = vcombine.high %v3622_v51, %v3626_v52 }
 0x4eb   :  { %6817 = vmatpush1.bf16.msra.mxu1 %v7767_v59  ;;  %6646 = vmatprep.subr.bf16.mxu0 %v7774_v60  ;;  %v7824_v59 = vcombine.high %v3623_v54, %v3627_v55  ;;  %v3630_v60 = vld [vmem:[#allocation25 + $0x380] sm:$0xff] }
 0x4ec   :  { %6818 = vmatprep.subr.bf16.mxu1 %v7776_v63  ;;  %v3631_v63 = vld [vmem:[#allocation25 + $0x388] sm:$0xff]  ;;  %v7829_v21 = vcombine.low %v3630_v60, %v3634_v61 }
 0x4ed   :  { %v7831_v8 = vcombine.low %v3631_v63, %v3635_v2 }
 0x4ee   :  { %6647 = vmatpush1.bf16.msra.mxu0 %v7773_v18  ;;  %v7830_v18 = vcombine.high %v3630_v60, %v3634_v61 }
 0x4ef   :  { %6819 = vmatpush1.bf16.msra.mxu1 %v7775_v0  ;;  %6648 = vmatprep.subr.bf16.mxu0 %v7782_v22  ;;  %v7832_v0 = vcombine.high %v3631_v63, %v3635_v2  ;;  %v3638_v22 = vld [vmem:[#allocation25 + $0x3c0] sm:$0xff] }
 0x4f0   :  { %6820 = vmatprep.subr.bf16.mxu1 %v7784_v24  ;;  %v3642_v24 = vld [vmem:[#allocation25 + $0x3e0] sm:$0xff] }
 0x4f2   :  { %6649 = vmatpush1.bf16.msra.mxu0 %v7781_v25  ;;  %v7838_v25 = vcombine.high %v3638_v22, %v3642_v24 }
 0x4f3   :  { %6821 = vmatpush1.bf16.msra.mxu1 %v7783_v48  ;;  %6650 = vmatprep.subr.bf16.mxu0 %v7790_v49  ;;  %v7840_v48 = vcombine.high %v3639_v6, %v3643_v7  ;;  %v7837_v49 = vcombine.low %v3638_v22, %v3642_v24 }
 0x4f4   :  { %6822 = vmatprep.subr.bf16.mxu1 %v7792_v1  ;;  %v7839_v1 = vcombine.low %v3639_v6, %v3643_v7 }
 0x4f6   :  { %6651 = vmatpush1.bf16.msra.mxu0 %v7789_v12 }
 0x4f7   :  { %6823 = vmatpush1.bf16.msra.mxu1 %v7791_v13  ;;  %6652 = vmatprep.subr.bf16.mxu0 %v7798_v14 }
 0x4f8   :  { %6824 = vmatprep.subr.bf16.mxu1 %v7800_v15 }
 0x4fa   :  { %6653 = vmatpush1.bf16.msra.mxu0 %v7797_v27 }
 0x4fb   :  { %6825 = vmatpush1.bf16.msra.mxu1 %v7799_v30  ;;  %6654 = vmatprep.subr.bf16.mxu0 %v7806_v35 }
 0x4fc   :  { %6826 = vmatprep.subr.bf16.mxu1 %v7808_v37 }
 0x4fe   :  { %6655 = vmatpush1.bf16.msra.mxu0 %v7805_v50 }
 0x4ff   :  { %6827 = vmatpush1.bf16.msra.mxu1 %v7807_v40  ;;  %6656 = vmatprep.subr.bf16.mxu0 %v7814_v45 }
 0x500   :  { %6828 = vmatprep.subr.bf16.mxu1 %v7816_v47 }
 0x502   :  { %6657 = vmatpush1.bf16.msra.mxu0 %v7813_v56 }
 0x503   :  { %6829 = vmatpush1.bf16.msra.mxu1 %v7815_v57  ;;  %6658 = vmatprep.subr.bf16.mxu0 %v7822_v58 }
 0x504   :  { %6830 = vmatprep.subr.bf16.mxu1 %v7824_v59 }
 0x506   :  { %6659 = vmatpush1.bf16.msra.mxu0 %v7821_v3 }
 0x507   :  { %6831 = vmatpush1.bf16.msra.mxu1 %v7823_v53  ;;  %6660 = vmatprep.subr.bf16.mxu0 %v7830_v18 }
 0x508   :  { %6832 = vmatprep.subr.bf16.mxu1 %v7832_v0 }
 0x50a   :  { %6661 = vmatpush1.bf16.msra.mxu0 %v7829_v21 }
 0x50b   :  { %6833 = vmatpush1.bf16.msra.mxu1 %v7831_v8  ;;  %6662 = vmatprep.subr.bf16.mxu0 %v7838_v25 }
 0x50c   :  { %6834 = vmatprep.subr.bf16.mxu1 %v7840_v48 }
 0x50e   :  { %6663 = vmatpush1.bf16.msra.mxu0 %v7837_v49 }
 0x50f   :  { %6835 = vmatpush1.bf16.msra.mxu1 %v7839_v1  ;;  %6675 = vmatprep.subr.bf16.mxu0 %v7846_v9 }
 0x510   :  { %6847 = vmatprep.subr.bf16.mxu1 %v7848_v4 }
 0x524   :  { %v2839_v10 = vpop.f32.mrb[8].mxu0  ;;  %v2925_v11 = vpop.f32.mrb[8].mxu1 }
 0x525   :  { %v2841_v12 = vpop.f32.mrb[9].mxu0  ;;  %v2927_v13 = vpop.f32.mrb[9].mxu1  ;;  %v3106_v43 = vmul.f32 %v9181_v41, %v2839_v10  ;;  %v3108_v26 = vmul.f32 %v9181_v41, %v2925_v11 }
 0x526   :  { %v2843_v14 = vpop.f32.mrb[10].mxu0  ;;  %v2929_v15 = vpop.f32.mrb[10].mxu1  ;;  %v3107_v35 = vmul.f32 %v9181_v41, %v2841_v12  ;;  %v3109_v37 = vmul.f32 %v9181_v41, %v2927_v13 }
 0x527   :  { %v3114_v32 = vmul.f32 %v9184_v42, %v2843_v14  ;;  %v3116_v33 = vmul.f32 %v9184_v42, %v2929_v15  ;;  %v2845_v27 = vpop.f32.mrb[11].mxu0  ;;  %v2931_v30 = vpop.f32.mrb[11].mxu1 }
 0x528   :  { %v3115_v28 = vmul.f32 %v9184_v42, %v2845_v27  ;;  %v3117_v29 = vmul.f32 %v9184_v42, %v2931_v30 }
 0x529   :  { %v3122_v31 = vadd.f32 %v3114_v32, %v3106_v43  ;;  %v3136_v39 = vadd.f32 %v3116_v33, %v3108_v26 }
 0x52a   :  { %v3129_v50 = vadd.f32 %v3115_v28, %v3107_v35  ;;  %v3143_v40 = vadd.f32 %v3117_v29, %v3109_v37 }
 0x52b   :  { %v3123_v45 = vrot.slane %v3122_v31, 4  ;;  %v3137_v47 = vrot.slane %v3136_v39, 4 }
 0x52c   :  { %v3130_v51 = vrot.slane %v3129_v50, 4  ;;  %v3144_v52 = vrot.slane %v3143_v40, 4 }
 0x52d   :  { %v3124_v54 = vadd.f32 %v3123_v45, %v3122_v31  ;;  %v3138_v55 = vadd.f32 %v3137_v47, %v3136_v39 }
 0x52e   :  { %v3131_v56 = vadd.f32 %v3130_v51, %v3129_v50  ;;  %v3145_v57 = vadd.f32 %v3144_v52, %v3143_v40 }
 0x52f   :  { %v3125_v58 = vrot.slane %v3124_v54, 2  ;;  %v3139_v59 = vrot.slane %v3138_v55, 2 }
 0x530   :  { %v3132_v60 = vrot.slane %v3131_v56, 2  ;;  %v3146_v61 = vrot.slane %v3145_v57, 2 }
 0x531   :  { %v3126_v63 = vadd.f32 %v3125_v58, %v3124_v54  ;;  %v3140_v2 = vadd.f32 %v3139_v59, %v3138_v55 }
 0x532   :  { %v3133_v3 = vadd.f32 %v3132_v60, %v3131_v56  ;;  %v3147_v53 = vadd.f32 %v3146_v61, %v3145_v57 }
 0x533   :  { %v3127_v18 = vrot.slane %v3126_v63, 1  ;;  %v3141_v0 = vrot.slane %v3140_v2, 1 }
 0x534   :  { %v3134_v22 = vrot.slane %v3133_v3, 1  ;;  %v3148_v24 = vrot.slane %v3147_v53, 1 }
 0x535   :  { %v3128_v6 = vadd.f32 %v3127_v18, %v3126_v63  ;;  %v3142_v7 = vadd.f32 %v3141_v0, %v3140_v2 }
 0x536   :  { %v3135_v21 = vadd.f32 %v3134_v22, %v3133_v3  ;;  %v3149_v8 = vadd.f32 %v3148_v24, %v3147_v53 }
 0x537   :  { %v3178_v25 = vmul.f32 %v3128_v6, %v9190_v62  ;;  %v3180_v48 = vmul.f32 %v3142_v7, %v9190_v62 }
 0x538   :  { %v3179_v49 = vmul.f32 %v3135_v21, %v9190_v62  ;;  %v3181_v1 = vmul.f32 %v3149_v8, %v9190_v62 }
 0x539   :  { %v9375_v9 = vsub.f32 %v2839_v10, %v3178_v25  ;;  %v9377_v4 = vsub.f32 %v2843_v14, %v3178_v25  ;;  %v9379_v43 = vsub.f32 %v2925_v11, %v3180_v48  ;;  %v9381_v26 = vsub.f32 %v2929_v15, %v3180_v48 }
 0x53a   :  { %v9383_v32 = vsub.f32 %v2841_v12, %v3179_v49  ;;  %v9385_v33 = vsub.f32 %v2845_v27, %v3179_v49  ;;  %v9387_v35 = vsub.f32 %v2927_v13, %v3181_v1  ;;  %v9389_v37 = vsub.f32 %v2931_v30, %v3181_v1 }
 0x53b   :  { %v3202_v28 = vmul.f32 %v9375_v9, %v9375_v9  ;;  %v3210_v10 = vmul.f32 %v9377_v4, %v9377_v4  ;;  %v3204_v11 = vmul.f32 %v9379_v43, %v9379_v43  ;;  %v3212_v14 = vmul.f32 %v9381_v26, %v9381_v26 }
 0x53c   :  { %v3203_v12 = vmul.f32 %v9383_v32, %v9383_v32  ;;  %v3211_v13 = vmul.f32 %v9385_v33, %v9385_v33  ;;  %v3205_v15 = vmul.f32 %v9387_v35, %v9387_v35  ;;  %v3213_v27 = vmul.f32 %v9389_v37, %v9389_v37 }
 0x53d   :  { %v3218_v30 = vmul.f32 %v9181_v41, %v3202_v28  ;;  %v3226_v29 = vmul.f32 %v9184_v42, %v3210_v10  ;;  %v3220_v31 = vmul.f32 %v9181_v41, %v3204_v11  ;;  %v3228_v39 = vmul.f32 %v9184_v42, %v3212_v14 }
 0x53e   :  { %v3219_v50 = vmul.f32 %v9181_v41, %v3203_v12  ;;  %v3227_v40 = vmul.f32 %v9184_v42, %v3211_v13  ;;  %v3221_v45 = vmul.f32 %v9181_v41, %v3205_v15  ;;  %v3229_v47 = vmul.f32 %v9184_v42, %v3213_v27 }
 0x53f   :  { %v3234_v51 = vadd.f32 %v3226_v29, %v3218_v30  ;;  %v3248_v52 = vadd.f32 %v3228_v39, %v3220_v31  ;;  %v3330_v31 = vld [vmem:[#allocation22] sm:$0xff]  ;;  %v3388_v39 = vld [vmem:[#allocation23] sm:$0xff] }
 0x540   :  { %v3241_v54 = vadd.f32 %v3227_v40, %v3219_v50  ;;  %v3255_v55 = vadd.f32 %v3229_v47, %v3221_v45  ;;  %v3335_v50 = vrot.slane %v3330_v31, %v9201_v34  ;;  %v3393_v45 = vrot.slane %v3388_v39, %v9201_v34 }
 0x541   :  { %v3235_v56 = vrot.slane %v3234_v51, 4  ;;  %v3249_v57 = vrot.slane %v3248_v52, 4  ;;  %v3343_v47 = vrot.slane %v3330_v31, %v9283_v44 }
 0x542   :  { %v3242_v58 = vrot.slane %v3241_v54, 4  ;;  %v3256_v59 = vrot.slane %v3255_v55, 4 }
 0x543   :  { %v3236_v60 = vadd.f32 %v3235_v56, %v3234_v51  ;;  %v3250_v61 = vadd.f32 %v3249_v57, %v3248_v52  ;;  %v3339_v51 = vrot.slane %v3330_v31, %v9204_v36  ;;  %v3401_v56 = vrot.slane %v3388_v39, %v9283_v44 }
 0x544   :  { %v3243_v63 = vadd.f32 %v3242_v58, %v3241_v54  ;;  %v3257_v2 = vadd.f32 %v3256_v59, %v3255_v55  ;;  %v3347_v57 = vrot.slane %v3330_v31, %v9286_v46  ;;  %v3659_v31 = vld [vmem:[#allocation25 + $0x468] sm:$0xff] }
 0x545   :  { %v3237_v3 = vrot.slane %v3236_v60, 2  ;;  %v3251_v53 = vrot.slane %v3250_v61, 2 }
 0x546   :  { %v3244_v18 = vrot.slane %v3243_v63, 2  ;;  %v3258_v0 = vrot.slane %v3257_v2, 2 }
 0x547   :  { %v3238_v22 = vadd.f32 %v3237_v3, %v3236_v60  ;;  %v3252_v24 = vadd.f32 %v3251_v53, %v3250_v61  ;;  %v3397_v61 = vrot.slane %v3388_v39, %v9204_v36 }
 0x548   :  { %v3245_v6 = vadd.f32 %v3244_v18, %v3243_v63  ;;  %v3259_v7 = vadd.f32 %v3258_v0, %v3257_v2  ;;  %v3405_v63 = vrot.slane %v3388_v39, %v9286_v46 }
 0x549   :  { %v3239_v21 = vrot.slane %v3238_v22, 1  ;;  %v3253_v8 = vrot.slane %v3252_v24, 1 }
 0x54a   :  { %v3246_v25 = vrot.slane %v3245_v6, 1  ;;  %v3260_v48 = vrot.slane %v3259_v7, 1 }
 0x54b   :  { %v3240_v49 = vadd.f32 %v3239_v21, %v3238_v22  ;;  %v3254_v1 = vadd.f32 %v3253_v8, %v3252_v24 }
 0x54c   :  { %v3247_v28 = vadd.f32 %v3246_v25, %v3245_v6  ;;  %v3261_v10 = vadd.f32 %v3260_v48, %v3259_v7 }
 0x54d   :  { %v3290_v11 = vmul.f32 %v3240_v49, %v9190_v62  ;;  %v3292_v14 = vmul.f32 %v3254_v1, %v9190_v62 }
 0x54e   :  { %v3291_v12 = vmul.f32 %v3247_v28, %v9190_v62  ;;  %v3293_v13 = vmul.f32 %v3261_v10, %v9190_v62 }
 0x54f   :  { %v3298_v15 = vadd.f32 0.8, %v3290_v11  ;;  %v3300_v27 = vadd.f32 0.8, %v3292_v14 }
 0x550   :  { %v3299_v30 = vadd.f32 0.8, %v3291_v12  ;;  %v3301_v29 = vadd.f32 0.8, %v3293_v13  ;;  %v3654_v12 = vld [vmem:[#allocation25 + $0x440] sm:$0xff] }
 0x551   :  { %8481 = vrsqrt.f32 %v3298_v15 }
 0x552   :  { %8483 = vrsqrt.f32 %v3300_v27 }
 0x553   :  { %8485 = vrsqrt.f32 %v3299_v30  ;;  %v3658_v30 = vld [vmem:[#allocation25 + $0x460] sm:$0xff] }
 0x554   :  { %8487 = vrsqrt.f32 %v3301_v29  ;;  %v3655_v29 = vld [vmem:[#allocation25 + $0x448] sm:$0xff] }
 0x55b   :  { %v8482_v40 = vpop.eup %8481 }
 0x55c   :  { %v8484_v52 = vpop.eup %8483  ;;  %v3314_v54 = vmul.f32 %v8482_v40, %v9375_v9  ;;  %v3322_v55 = vmul.f32 %v8482_v40, %v9377_v4 }
 0x55d   :  { %v8486_v58 = vpop.eup %8485  ;;  %v3316_v59 = vmul.f32 %v8484_v52, %v9379_v43  ;;  %v3324_v60 = vmul.f32 %v8484_v52, %v9381_v26  ;;  %v3662_v52 = vld [vmem:[#allocation25 + $0x480] sm:$0xff] }
 0x55e   :  { %v8488_v2 = vpop.eup %8487  ;;  %v3372_v3 = vmul.f32 %v3335_v50, %v3314_v54  ;;  %v3380_v53 = vmul.f32 %v3335_v50, %v3322_v55  ;;  %v3315_v9 = vmul.f32 %v8486_v58, %v9383_v32  ;;  %v3323_v4 = vmul.f32 %v8486_v58, %v9385_v33  ;;  %v3666_v54 = vld [vmem:[#allocation25 + $0x4a0] sm:$0xff]  ;;  %v3663_v58 = vld [vmem:[#allocation25 + $0x488] sm:$0xff] }
 0x55f   :  { %v3374_v18 = vmul.f32 %v3343_v47, %v3316_v59  ;;  %v3382_v0 = vmul.f32 %v3343_v47, %v3324_v60  ;;  %v3317_v22 = vmul.f32 %v8488_v2, %v9387_v35  ;;  %v3325_v24 = vmul.f32 %v8488_v2, %v9389_v37  ;;  %v3667_v59 = vld [vmem:[#allocation25 + $0x4a8] sm:$0xff] }
 0x560   :  { %v3430_v43 = vadd.f32 %v3393_v45, %v3372_v3  ;;  %v3438_v6 = vadd.f32 %v3393_v45, %v3380_v53  ;;  %v3373_v26 = vmul.f32 %v3339_v51, %v3315_v9  ;;  %v3381_v7 = vmul.f32 %v3339_v51, %v3323_v4  ;;  %v3670_v53 = vld [vmem:[#allocation25 + $0x4c0] sm:$0xff] }
 0x561   :  { %v3432_v21 = vadd.f32 %v3401_v56, %v3374_v18  ;;  %v3375_v8 = vmul.f32 %v3347_v57, %v3317_v22  ;;  %v3383_v25 = vmul.f32 %v3347_v57, %v3325_v24  ;;  %v3440_v49 = vadd.f32 %v3401_v56, %v3382_v0  ;;  %v3674_v18 = vld [vmem:[#allocation25 + $0x4e0] sm:$0xff] }
 0x562   :  { %v3470_v48 = vmul.f32 0.2, %v3438_v6  ;;  %v3431_v1 = vadd.f32 %v3397_v61, %v3373_v26  ;;  %v3439_v28 = vadd.f32 %v3397_v61, %v3381_v7  ;;  %vm3446_vm2 = vcmp.gt.f32.partialorder %v3430_v43, 0.0  ;;  %v3678_v22 = vld [vmem:[#allocation25 + $0x500] sm:$0xff] }
 0x563   :  { %v3433_v32 = vadd.f32 %v3405_v63, %v3375_v8  ;;  %v3441_v10 = vadd.f32 %v3405_v63, %v3383_v25  ;;  %vm3454_vm3 = vcmp.gt.f32.partialorder %v3438_v6, 0.0  ;;  %v3462_v11 = vmul.f32 0.2, %v3430_v43  ;;  %v3682_v24 = vld [vmem:[#allocation25 + $0x520] sm:$0xff] }
 0x564   :  { %v3471_v33 = vmul.f32 0.2, %v3439_v28  ;;  %vm3447_vm4 = vcmp.gt.f32.partialorder %v3431_v1, 0.0  ;;  %vm3455_vm5 = vcmp.gt.f32.partialorder %v3439_v28, 0.0  ;;  %v3463_v35 = vmul.f32 0.2, %v3431_v1 }
 0x565   :  { %v3473_v37 = vmul.f32 0.2, %v3441_v10  ;;  %v3486_v14 = vsel %vm3454_vm3, %v3438_v6, %v3470_v48  ;;  %vm3449_vm6 = vcmp.gt.f32.partialorder %v3433_v32, 0.0  ;;  %vm3457_vm7 = vcmp.gt.f32.partialorder %v3441_v10, 0.0  ;;  %v3683_v6 = vld [vmem:[#allocation25 + $0x528] sm:$0xff]  ;;  %v3686_v25 = vld [vmem:[#allocation25 + $0x540] sm:$0xff] }
 0x566   :  { %v3479_v13 = vsel %vm3447_vm4, %v3431_v1, %v3463_v35  ;;  %v3487_v15 = vsel %vm3455_vm5, %v3439_v28, %v3471_v33  ;;  %v3465_v27 = vmul.f32 0.2, %v3433_v32  ;;  %v3478_v50 = vsel %vm3446_vm2, %v3430_v43, %v3462_v11  ;;  %v3679_v43 = vld [vmem:[#allocation25 + $0x508] sm:$0xff]  ;;  %v3690_v48 = vld [vmem:[#allocation25 + $0x560] sm:$0xff] }
 0x567   :  { %v9435_v39 = vpack.c.bf16 %v3487_v15, %v3479_v13  ;;  %v3489_v40 = vsel %vm3457_vm7, %v3441_v10, %v3473_v37  ;;  %v3472_v45 = vmul.f32 0.2, %v3440_v49  ;;  %v9438_v47 = vpack.c.bf16 %v3486_v14, %v3478_v50  ;;  %v3691_v1 = vld [vmem:[#allocation25 + $0x568] sm:$0xff]  ;;  %v3694_v35 = vld [vmem:[#allocation25 + $0x580] sm:$0xff] }
 0x568   :  { %v3481_v51 = vsel %vm3449_vm6, %v3433_v32, %v3465_v27  ;;  %v7854_v56 = vcombine.high %v3654_v12, %v3658_v30  ;;  %v7856_v57 = vcombine.high %v3655_v29, %v3659_v31  ;;  %vm3448_vm8 = vcmp.gt.f32.partialorder %v3432_v21, 0.0  ;;  %v3698_v37 = vld [vmem:[#allocation25 + $0x5a0] sm:$0xff]  ;;  %v3695_v11 = vld [vmem:[#allocation25 + $0x588] sm:$0xff] }
 0x569   :  { %6664 = vmatprep.mubr.bf16.mxu0 %v9435_v39  ;;  %6836 = vmatprep.mubr.bf16.mxu1 %v9435_v39  ;;  %v9442_v55 = vpack.c.bf16 %v3489_v40, %v3481_v51  ;;  %vm3456_vm9 = vcmp.gt.f32.partialorder %v3440_v49, 0.0  ;;  %v3464_v60 = vmul.f32 0.2, %v3432_v21  ;;  %v7853_v61 = vcombine.low %v3654_v12, %v3658_v30  ;;  %v3699_v14 = vld [vmem:[#allocation25 + $0x5a8] sm:$0xff]  ;;  %v3702_v30 = vld [vmem:[#allocation25 + $0x5c0] sm:$0xff] }
 0x56a   :  { %6665 = vmatmul.mubr.bf16.vlgmr.msra.gmra.mrb[16].mxu0 %v9438_v47  ;;  %6837 = vmatmul.mubr.bf16.vlgmr.msra.gmra.mrb[16].mxu1 %v9438_v47  ;;  %v7855_v63 = vcombine.low %v3655_v29, %v3659_v31  ;;  %v7862_v2 = vcombine.high %v3662_v52, %v3666_v54  ;;  %v7864_v3 = vcombine.high %v3663_v58, %v3667_v59  ;;  %v3706_v29 = vld [vmem:[#allocation25 + $0x5e0] sm:$0xff]  ;;  %v3703_v31 = vld [vmem:[#allocation25 + $0x5c8] sm:$0xff] }
 0x56b   :  { %6676 = vmatpush1.bf16.msra.mxu0 %v7845_v19  ;;  %6848 = vmatpush1.bf16.msra.mxu1 %v7847_v23  ;;  %v3480_v9 = vsel %vm3448_vm8, %v3432_v21, %v3464_v60  ;;  %v3488_v4 = vsel %vm3456_vm9, %v3440_v49, %v3472_v45  ;;  %v7861_v5 = vcombine.low %v3662_v52, %v3666_v54  ;;  %v3687_v49 = vld [vmem:[#allocation25 + $0x548] sm:$0xff]  ;;  %v3710_v54 = vld [vmem:[#allocation25 + $0x600] sm:$0xff] }
 0x56c   :  { %6707 = vmatprep.mubr.bf16.mxu0 %v9442_v55  ;;  %6879 = vmatprep.mubr.bf16.mxu1 %v9442_v55  ;;  %v9454_v19 = vpack.c.bf16 %v3488_v4, %v3480_v9  ;;  %v7863_v20 = vcombine.low %v3663_v58, %v3667_v59  ;;  %v7870_v23 = vcombine.high %v3670_v53, %v3674_v18  ;;  %v3707_v50 = vld [vmem:[#allocation25 + $0x5e8] sm:$0xff] }
 0x56d   :  { %6677 = vmatprep.subr.bf16.mxu0 %v7854_v56  ;;  %6849 = vmatprep.subr.bf16.mxu1 %v7856_v57  ;;  %v7872_v0 = vcombine.high %v3671_v16, %v3675_v17  ;;  %v7869_v26 = vcombine.low %v3670_v53, %v3674_v18  ;;  %v7871_v7 = vcombine.low %v3671_v16, %v3675_v17  ;;  %v3714_v56 = vld [vmem:[#allocation25 + $0x620] sm:$0xff]  ;;  %v3711_v57 = vld [vmem:[#allocation25 + $0x608] sm:$0xff] }
 0x56e   :  { %v7878_v21 = vcombine.high %v3678_v22, %v3682_v24  ;;  %v7880_v8 = vcombine.high %v3679_v43, %v3683_v6  ;;  %v7877_v28 = vcombine.low %v3678_v22, %v3682_v24  ;;  %v7879_v32 = vcombine.low %v3679_v43, %v3683_v6  ;;  %v3715_v58 = vld [vmem:[#allocation25 + $0x628] sm:$0xff] }
 0x56f   :  { %6678 = vmatpush1.bf16.msra.mxu0 %v7853_v61  ;;  %6850 = vmatpush1.bf16.msra.mxu1 %v7855_v63  ;;  %v7886_v10 = vcombine.high %v3686_v25, %v3690_v48  ;;  %v7888_v33 = vcombine.high %v3687_v49, %v3691_v1  ;;  %v7885_v12 = vcombine.low %v3686_v25, %v3690_v48  ;;  %v3719_v53 = vld [vmem:[#allocation25 + $0x648] sm:$0xff] }
 0x570   :  { %6679 = vmatprep.subr.bf16.mxu0 %v7862_v2  ;;  %6851 = vmatprep.subr.bf16.mxu1 %v7864_v3  ;;  %v7887_v13 = vcombine.low %v3687_v49, %v3691_v1  ;;  %v7894_v15 = vcombine.high %v3694_v35, %v3698_v37  ;;  %v7896_v27 = vcombine.high %v3695_v11, %v3699_v14  ;;  %v3718_v2 = vld [vmem:[#allocation25 + $0x640] sm:$0xff]  ;;  %v3723_v9 = vld [vmem:[#allocation25 + $0x668] sm:$0xff] }
 0x571   :  { %v7893_v40 = vcombine.low %v3694_v35, %v3698_v37  ;;  %v7895_v45 = vcombine.low %v3695_v11, %v3699_v14  ;;  %v7902_v51 = vcombine.high %v3702_v30, %v3706_v29  ;;  %v7904_v52 = vcombine.high %v3703_v31, %v3707_v50  ;;  %v3722_v3 = vld [vmem:[#allocation25 + $0x660] sm:$0xff] }
 0x572   :  { %v7901_v59 = vcombine.low %v3702_v30, %v3706_v29  ;;  %v7903_v60 = vcombine.low %v3703_v31, %v3707_v50  ;;  %v7910_v61 = vcombine.high %v3710_v54, %v3714_v56  ;;  %v7912_v63 = vcombine.high %v3711_v57, %v3715_v58 }
 0x573   :  { %6680 = vmatpush1.bf16.msra.mxu0 %v7861_v5  ;;  %6852 = vmatpush1.bf16.msra.mxu1 %v7863_v20  ;;  %v7909_v4 = vcombine.low %v3710_v54, %v3714_v56  ;;  %v7911_v18 = vcombine.low %v3711_v57, %v3715_v58  ;;  %v7918_v16 = vcombine.high %v3718_v2, %v3722_v3  ;;  %v3726_v5 = vld [vmem:[#allocation25 + $0x680] sm:$0xff] }
 0x574   :  { %6681 = vmatprep.subr.bf16.mxu0 %v7870_v23  ;;  %6853 = vmatprep.subr.bf16.mxu1 %v7872_v0  ;;  %v7920_v17 = vcombine.high %v3719_v53, %v3723_v9  ;;  %v3730_v20 = vld [vmem:[#allocation25 + $0x6a0] sm:$0xff]  ;;  %v3727_v23 = vld [vmem:[#allocation25 + $0x688] sm:$0xff]  ;;  %v7917_v22 = vcombine.low %v3718_v2, %v3722_v3  ;;  %v7919_v24 = vcombine.low %v3719_v53, %v3723_v9 }
 0x575   :  { %v3731_v0 = vld [vmem:[#allocation25 + $0x6a8] sm:$0xff]  ;;  %v7926_v43 = vcombine.high %v3726_v5, %v3730_v20  ;;  %v7925_v25 = vcombine.low %v3726_v5, %v3730_v20  ;;  %v9456_v5 = vld [vmem:[#allocation25 + $0x840] sm:$0xff] }
 0x576   :  { %v7928_v6 = vcombine.high %v3727_v23, %v3731_v0  ;;  %v7927_v48 = vcombine.low %v3727_v23, %v3731_v0  ;;  %v3786_v0 = vld [vmem:[#allocation25 + $0x860] sm:$0xff] }
 0x577   :  { %6682 = vmatpush1.bf16.msra.mxu0 %v7869_v26  ;;  %6854 = vmatpush1.bf16.msra.mxu1 %v7871_v7  ;;  %v3734_v26 = vld [vmem:[#allocation25 + $0x6c0] sm:$0xff] }
 0x578   :  { %6683 = vmatprep.subr.bf16.mxu0 %v7878_v21  ;;  %6855 = vmatprep.subr.bf16.mxu1 %v7880_v8  ;;  %v3738_v7 = vld [vmem:[#allocation25 + $0x6e0] sm:$0xff]  ;;  %v3735_v21 = vld [vmem:[#allocation25 + $0x6c8] sm:$0xff] }
 0x579   :  { %v3739_v8 = vld [vmem:[#allocation25 + $0x6e8] sm:$0xff]  ;;  %v7934_v49 = vcombine.high %v3734_v26, %v3738_v7  ;;  %v7933_v35 = vcombine.low %v3734_v26, %v3738_v7 }
 0x57a   :  { %v7936_v1 = vcombine.high %v3735_v21, %v3739_v8  ;;  %v7935_v37 = vcombine.low %v3735_v21, %v3739_v8 }
 0x57b   :  { %6684 = vmatpush1.bf16.msra.mxu0 %v7877_v28  ;;  %6856 = vmatpush1.bf16.msra.mxu1 %v7879_v32  ;;  %v3742_v28 = vld [vmem:[#allocation25 + $0x700] sm:$0xff] }
 0x57c   :  { %6685 = vmatprep.subr.bf16.mxu0 %v7886_v10  ;;  %6857 = vmatprep.subr.bf16.mxu1 %v7888_v33  ;;  %v3746_v32 = vld [vmem:[#allocation25 + $0x720] sm:$0xff]  ;;  %v3743_v10 = vld [vmem:[#allocation25 + $0x708] sm:$0xff] }
 0x57d   :  { %v3747_v33 = vld [vmem:[#allocation25 + $0x728] sm:$0xff]  ;;  %v7942_v11 = vcombine.high %v3742_v28, %v3746_v32  ;;  %v7941_v30 = vcombine.low %v3742_v28, %v3746_v32 }
 0x57e   :  { %v7944_v14 = vcombine.high %v3743_v10, %v3747_v33  ;;  %v7943_v29 = vcombine.low %v3743_v10, %v3747_v33 }
 0x57f   :  { %6686 = vmatpush1.bf16.msra.mxu0 %v7885_v12  ;;  %6858 = vmatpush1.bf16.msra.mxu1 %v7887_v13  ;;  %v3750_v12 = vld [vmem:[#allocation25 + $0x740] sm:$0xff] }
 0x580   :  { %6687 = vmatprep.subr.bf16.mxu0 %v7894_v15  ;;  %6859 = vmatprep.subr.bf16.mxu1 %v7896_v27  ;;  %v3754_v13 = vld [vmem:[#allocation25 + $0x760] sm:$0xff]  ;;  %v3751_v15 = vld [vmem:[#allocation25 + $0x748] sm:$0xff] }
 0x581   :  { %v3755_v27 = vld [vmem:[#allocation25 + $0x768] sm:$0xff]  ;;  %v7950_v31 = vcombine.high %v3750_v12, %v3754_v13  ;;  %v7949_v54 = vcombine.low %v3750_v12, %v3754_v13 }
 0x582   :  { %v7952_v50 = vcombine.high %v3751_v15, %v3755_v27  ;;  %v7951_v56 = vcombine.low %v3751_v15, %v3755_v27  ;;  %v3790_v15 = vld [vmem:[#allocation25 + $0x880] sm:$0xff] }
 0x583   :  { %6688 = vmatpush1.bf16.msra.mxu0 %v7893_v40  ;;  %6860 = vmatpush1.bf16.msra.mxu1 %v7895_v45  ;;  %v3758_v40 = vld [vmem:[#allocation25 + $0x780] sm:$0xff] }
 0x584   :  { %6689 = vmatprep.subr.bf16.mxu0 %v7902_v51  ;;  %6861 = vmatprep.subr.bf16.mxu1 %v7904_v52  ;;  %v3762_v45 = vld [vmem:[#allocation25 + $0x7a0] sm:$0xff]  ;;  %v3759_v51 = vld [vmem:[#allocation25 + $0x788] sm:$0xff] }
 0x585   :  { %v3763_v52 = vld [vmem:[#allocation25 + $0x7a8] sm:$0xff]  ;;  %v7958_v57 = vcombine.high %v3758_v40, %v3762_v45  ;;  %v7957_v2 = vcombine.low %v3758_v40, %v3762_v45 }
 0x586   :  { %v7960_v58 = vcombine.high %v3759_v51, %v3763_v52  ;;  %v7959_v3 = vcombine.low %v3759_v51, %v3763_v52  ;;  %v3795_v40 = vld [vmem:[#allocation25 + $0x8a8] sm:$0xff] }
 0x587   :  { %6690 = vmatpush1.bf16.msra.mxu0 %v7901_v59  ;;  %6862 = vmatpush1.bf16.msra.mxu1 %v7903_v60  ;;  %v3766_v59 = vld [vmem:[#allocation25 + $0x7c0] sm:$0xff] }
 0x588   :  { %6691 = vmatprep.subr.bf16.mxu0 %v7910_v61  ;;  %6863 = vmatprep.subr.bf16.mxu1 %v7912_v63  ;;  %v3770_v60 = vld [vmem:[#allocation25 + $0x7e0] sm:$0xff]  ;;  %v3767_v61 = vld [vmem:[#allocation25 + $0x7c8] sm:$0xff] }
 0x589   :  { %v3771_v63 = vld [vmem:[#allocation25 + $0x7e8] sm:$0xff]  ;;  %v7966_v53 = vcombine.high %v3766_v59, %v3770_v60  ;;  %v7965_v20 = vcombine.low %v3766_v59, %v3770_v60 }
 0x58a   :  { %v7968_v9 = vcombine.high %v3767_v61, %v3771_v63  ;;  %v7967_v23 = vcombine.low %v3767_v61, %v3771_v63  ;;  %v3798_v63 = vld [vmem:[#allocation25 + $0x8c0] sm:$0xff] }
 0x58b   :  { %6692 = vmatpush1.bf16.msra.mxu0 %v7909_v4  ;;  %6864 = vmatpush1.bf16.msra.mxu1 %v7911_v18  ;;  %v3774_v4 = vld [vmem:[#allocation25 + $0x800] sm:$0xff] }
 0x58c   :  { %6693 = vmatprep.subr.bf16.mxu0 %v7918_v16  ;;  %6865 = vmatprep.subr.bf16.mxu1 %v7920_v17  ;;  %v3778_v18 = vld [vmem:[#allocation25 + $0x820] sm:$0xff]  ;;  %v3775_v16 = vld [vmem:[#allocation25 + $0x808] sm:$0xff] }
 0x58d   :  { %v3779_v17 = vld [vmem:[#allocation25 + $0x828] sm:$0xff] }
 0x58e   :  { %v7976_v26 = vcombine.high %v3775_v16, %v3779_v17 }
 0x58f   :  { %6694 = vmatpush1.bf16.msra.mxu0 %v7917_v22  ;;  %6866 = vmatpush1.bf16.msra.mxu1 %v7919_v24  ;;  %v3783_v22 = vld [vmem:[#allocation25 + $0x848] sm:$0xff] }
 0x590   :  { %6695 = vmatprep.subr.bf16.mxu0 %v7926_v43  ;;  %6867 = vmatprep.subr.bf16.mxu1 %v7928_v6  ;;  %v3787_v24 = vld [vmem:[#allocation25 + $0x868] sm:$0xff]  ;;  %v7974_v6 = vcombine.high %v3774_v4, %v3778_v18 }
 0x591   :  { %v7984_v28 = vcombine.high %v3783_v22, %v3787_v24 }
 0x593   :  { %6696 = vmatpush1.bf16.msra.mxu0 %v7925_v25  ;;  %6868 = vmatpush1.bf16.msra.mxu1 %v7927_v48  ;;  %v7973_v48 = vcombine.low %v3774_v4, %v3778_v18  ;;  %v3803_v4 = vld [vmem:[#allocation25 + $0x8e8] sm:$0xff] }
 0x594   :  { %6697 = vmatprep.subr.bf16.mxu0 %v7934_v49  ;;  %6869 = vmatprep.subr.bf16.mxu1 %v7936_v1  ;;  %v7975_v49 = vcombine.low %v3775_v16, %v3779_v17  ;;  %v7982_v1 = vcombine.high %v9456_v5, %v3786_v0 }
 0x597   :  { %6698 = vmatpush1.bf16.msra.mxu0 %v7933_v35  ;;  %6870 = vmatpush1.bf16.msra.mxu1 %v7935_v37 }
 0x598   :  { %6699 = vmatprep.subr.bf16.mxu0 %v7942_v11  ;;  %6871 = vmatprep.subr.bf16.mxu1 %v7944_v14 }
 0x59b   :  { %6700 = vmatpush1.bf16.msra.mxu0 %v7941_v30  ;;  %6872 = vmatpush1.bf16.msra.mxu1 %v7943_v29 }
 0x59c   :  { %6701 = vmatprep.subr.bf16.mxu0 %v7950_v31  ;;  %6873 = vmatprep.subr.bf16.mxu1 %v7952_v50  ;;  %v3794_v31 = vld [vmem:[#allocation25 + $0x8a0] sm:$0xff]  ;;  %v3791_v50 = vld [vmem:[#allocation25 + $0x888] sm:$0xff] }
 0x59d   :  { %v7990_v60 = vcombine.high %v3790_v15, %v3794_v31  ;;  %v7992_v61 = vcombine.high %v3791_v50, %v3795_v40 }
 0x59f   :  { %6702 = vmatpush1.bf16.msra.mxu0 %v7949_v54  ;;  %6874 = vmatpush1.bf16.msra.mxu1 %v7951_v56  ;;  %v7981_v56 = vcombine.low %v9456_v5, %v3786_v0  ;;  %v7989_v5 = vcombine.low %v3790_v15, %v3794_v31  ;;  %v9496_v15 = vld [vmem:[#allocation25 + $0x960] sm:$0xff] }
 0x5a0   :  { %6703 = vmatprep.subr.bf16.mxu0 %v7958_v57  ;;  %6875 = vmatprep.subr.bf16.mxu1 %v7960_v58  ;;  %v7983_v57 = vcombine.low %v3783_v22, %v3787_v24 }
 0x5a3   :  { %6704 = vmatpush1.bf16.msra.mxu0 %v7957_v2  ;;  %6876 = vmatpush1.bf16.msra.mxu1 %v7959_v3 }
 0x5a4   :  { %v9458_v43 = vpop.f32.mrb[12].mxu0  ;;  %6705 = vmatprep.subr.bf16.mxu0 %v7966_v53  ;;  %6877 = vmatprep.subr.bf16.mxu1 %v7968_v9  ;;  %v3802_v53 = vld [vmem:[#allocation25 + $0x8e0] sm:$0xff]  ;;  %v3799_v9 = vld [vmem:[#allocation25 + $0x8c8] sm:$0xff] }
 0x5a5   :  { %v9460_v7 = vpop.f32.mrb[12].mxu1  ;;  %v9462_v21 = vpop.f32.mrb[13].mxu0  ;;  %v3110_v32 = vmul.f32 %v9181_v41, %v9458_v43  ;;  %v7998_v24 = vcombine.high %v3798_v63, %v3802_v53 }
 0x5a6   :  { %v9464_v8 = vpop.f32.mrb[13].mxu1  ;;  %v9466_v25 = vpop.f32.mrb[14].mxu0  ;;  %v3112_v10 = vmul.f32 %v9181_v41, %v9460_v7  ;;  %v3111_v11 = vmul.f32 %v9181_v41, %v9462_v21 }
 0x5a7   :  { %6706 = vmatpush1.bf16.msra.mxu0 %v7965_v20  ;;  %6878 = vmatpush1.bf16.msra.mxu1 %v7967_v23  ;;  %v3118_v33 = vmul.f32 %v9184_v42, %v9466_v25  ;;  %v9475_v35 = vpop.f32.mrb[14].mxu1  ;;  %v9477_v37 = vpop.f32.mrb[15].mxu0  ;;  %v3113_v27 = vmul.f32 %v9181_v41, %v9464_v8  ;;  %v7991_v23 = vcombine.low %v3791_v50, %v3795_v40  ;;  %v9498_v50 = vld [vmem:[#allocation25 + $0x948] sm:$0xff] }
 0x5a8   :  { %v3120_v14 = vmul.f32 %v9184_v42, %v9475_v35  ;;  %v3119_v12 = vmul.f32 %v9184_v42, %v9477_v37  ;;  %v9485_v13 = vpop.f32.mrb[15].mxu1  ;;  %6718 = vmatprep.subr.bf16.mxu0 %v7974_v6  ;;  %6890 = vmatprep.subr.bf16.mxu1 %v7976_v26  ;;  %v8000_v6 = vcombine.high %v3799_v9, %v3803_v4  ;;  %v3806_v26 = vld [vmem:[#allocation25 + $0x900] sm:$0xff]  ;;  %v9500_v40 = vld [vmem:[#allocation25 + $0x968] sm:$0xff] }
 0x5a9   :  { %v3150_v30 = vadd.f32 %v3118_v33, %v3110_v32  ;;  %v3121_v29 = vmul.f32 %v9184_v42, %v9485_v13  ;;  %v3811_v32 = vld [vmem:[#allocation25 + $0x928] sm:$0xff] }
 0x5aa   :  { %v3164_v45 = vadd.f32 %v3120_v14, %v3112_v10  ;;  %v3157_v51 = vadd.f32 %v3119_v12, %v3111_v11  ;;  %6708 = vmatmul.mubr.bf16.vlgmr.msra.gmra.mrb[16].mxu0 %v9454_v19  ;;  %6880 = vmatmul.mubr.bf16.vlgmr.msra.gmra.mrb[16].mxu1 %v9454_v19  ;;  %v7997_v11 = vcombine.low %v3798_v63, %v3802_v53  ;;  %v9494_v12 = vld [vmem:[#allocation25 + $0x940] sm:$0xff] }
 0x5ab   :  { %v3151_v52 = vrot.slane %v3150_v30, 4  ;;  %v3171_v54 = vadd.f32 %v3121_v29, %v3113_v27  ;;  %6719 = vmatpush1.bf16.msra.mxu0 %v7973_v48  ;;  %6891 = vmatpush1.bf16.msra.mxu1 %v7975_v49  ;;  %v3810_v48 = vld [vmem:[#allocation25 + $0x920] sm:$0xff]  ;;  %v7999_v14 = vcombine.low %v3799_v9, %v3803_v4  ;;  %v8016_v53 = vcombine.high %v9498_v50, %v9500_v40  ;;  %v9514_v9 = vld [vmem:[#allocation25 + $0x988] sm:$0xff] }
 0x5ac   :  { %v3165_v58 = vrot.slane %v3164_v45, 4  ;;  %v3158_v59 = vrot.slane %v3157_v51, 4  ;;  %6720 = vmatprep.subr.bf16.mxu0 %v7982_v1  ;;  %6892 = vmatprep.subr.bf16.mxu1 %v7984_v28  ;;  %v3807_v28 = vld [vmem:[#allocation25 + $0x908] sm:$0xff]  ;;  %v8005_v29 = vcombine.low %v3806_v26, %v3810_v48  ;;  %v8006_v31 = vcombine.high %v3806_v26, %v3810_v48 }
 0x5ad   :  { %v3152_v2 = vadd.f32 %v3151_v52, %v3150_v30  ;;  %v3172_v3 = vrot.slane %v3171_v54, 4  ;;  %v8007_v52 = vcombine.low %v3807_v28, %v3811_v32  ;;  %v9516_v4 = vld [vmem:[#allocation25 + $0x9a8] sm:$0xff] }
 0x5ae   :  { %v3166_v18 = vadd.f32 %v3165_v58, %v3164_v45  ;;  %v3159_v16 = vadd.f32 %v3158_v59, %v3157_v51 }
 0x5af   :  { %v3153_v17 = vrot.slane %v3152_v2, 2  ;;  %v3173_v20 = vadd.f32 %v3172_v3, %v3171_v54  ;;  %6721 = vmatpush1.bf16.msra.mxu0 %v7981_v56  ;;  %6893 = vmatpush1.bf16.msra.mxu1 %v7983_v57  ;;  %v8008_v54 = vcombine.high %v3807_v28, %v3811_v32  ;;  %v9502_v56 = vld [vmem:[#allocation25 + $0x980] sm:$0xff]  ;;  %v8015_v3 = vcombine.low %v9498_v50, %v9500_v40 }
 0x5b0   :  { %v3167_v0 = vrot.slane %v3166_v18, 2  ;;  %v3160_v22 = vrot.slane %v3159_v16, 2  ;;  %6722 = vmatprep.subr.bf16.mxu0 %v7990_v60  ;;  %6894 = vmatprep.subr.bf16.mxu1 %v7992_v61  ;;  %v9504_v57 = vld [vmem:[#allocation25 + $0x9a0] sm:$0xff]  ;;  %v8013_v60 = vcombine.low %v9494_v12, %v9496_v15  ;;  %v8014_v61 = vcombine.high %v9494_v12, %v9496_v15 }
 0x5b1   :  { %v3154_v49 = vadd.f32 %v3153_v17, %v3152_v2  ;;  %v3174_v1 = vrot.slane %v3173_v20, 2  ;;  %v8022_v17 = vcombine.high %v9502_v56, %v9504_v57 }
 0x5b2   :  { %v3168_v10 = vadd.f32 %v3167_v0, %v3166_v18  ;;  %v3161_v33 = vadd.f32 %v3160_v22, %v3159_v16 }
 0x5b3   :  { %v3155_v27 = vrot.slane %v3154_v49, 1  ;;  %v3175_v30 = vadd.f32 %v3174_v1, %v3173_v20  ;;  %6723 = vmatpush1.bf16.msra.mxu0 %v7989_v5  ;;  %6895 = vmatpush1.bf16.msra.mxu1 %v7991_v23  ;;  %v8021_v23 = vcombine.low %v9502_v56, %v9504_v57 }
 0x5b4   :  { %v3169_v45 = vrot.slane %v3168_v10, 1  ;;  %v3162_v51 = vrot.slane %v3161_v33, 1  ;;  %6724 = vmatprep.subr.bf16.mxu0 %v7998_v24  ;;  %6896 = vmatprep.subr.bf16.mxu1 %v8000_v6  ;;  %v8024_v6 = vcombine.high %v9514_v9, %v9516_v4 }
 0x5b5   :  { %v3156_v58 = vadd.f32 %v3155_v27, %v3154_v49  ;;  %v3176_v59 = vrot.slane %v3175_v30, 1 }
 0x5b6   :  { %v3170_v63 = vadd.f32 %v3169_v45, %v3168_v10  ;;  %v3163_v2 = vadd.f32 %v3162_v51, %v3161_v33  ;;  %v8023_v51 = vcombine.low %v9514_v9, %v9516_v4 }
 0x5b7   :  { %v3182_v18 = vmul.f32 %v3156_v58, %v9190_v62  ;;  %v3177_v16 = vadd.f32 %v3176_v59, %v3175_v30  ;;  %6725 = vmatpush1.bf16.msra.mxu0 %v7997_v11  ;;  %6897 = vmatpush1.bf16.msra.mxu1 %v7999_v14  ;;  %v3830_v11 = vld [vmem:[#allocation25 + $0x9c0] sm:$0xff] }
 0x5b8   :  { %v3184_v20 = vmul.f32 %v3170_v63, %v9190_v62  ;;  %v3183_v5 = vmul.f32 %v3163_v2, %v9190_v62  ;;  %6726 = vmatprep.subr.bf16.mxu0 %v8006_v31  ;;  %6898 = vmatprep.subr.bf16.mxu1 %v8008_v54  ;;  %v3834_v14 = vld [vmem:[#allocation25 + $0x9e0] sm:$0xff]  ;;  %v3835_v31 = vld [vmem:[#allocation25 + $0x9e8] sm:$0xff] }
 0x5b9   :  { %v9526_v0 = vsub.f32 %v9458_v43, %v3182_v18  ;;  %v9529_v22 = vsub.f32 %v9466_v25, %v3182_v18  ;;  %v3185_v24 = vmul.f32 %v3177_v16, %v9190_v62  ;;  %v8030_v56 = vcombine.high %v3830_v11, %v3834_v14  ;;  %v3842_v63 = vld [vmem:[#allocation25 + $0xa20] sm:$0xff]  ;;  %v3843_v18 = vld [vmem:[#allocation25 + $0xa28] sm:$0xff] }
 0x5ba   :  { %v9535_v26 = vsub.f32 %v9460_v7, %v3184_v20  ;;  %v9538_v48 = vsub.f32 %v9475_v35, %v3184_v20  ;;  %v9541_v49 = vsub.f32 %v9462_v21, %v3183_v5  ;;  %v9544_v43 = vsub.f32 %v9477_v37, %v3183_v5 }
 0x5bb   :  { %v3206_v25 = vmul.f32 %v9526_v0, %v9526_v0  ;;  %v3214_v1 = vmul.f32 %v9529_v22, %v9529_v22  ;;  %v9551_v28 = vsub.f32 %v9464_v8, %v3185_v24  ;;  %v9554_v7 = vsub.f32 %v9485_v13, %v3185_v24  ;;  %6727 = vmatpush1.bf16.msra.mxu0 %v8005_v29  ;;  %v3831_v29 = vld [vmem:[#allocation25 + $0x9c8] sm:$0xff] }
 0x5bc   :  { %v3208_v21 = vmul.f32 %v9535_v26, %v9535_v26  ;;  %v3216_v35 = vmul.f32 %v9538_v48, %v9538_v48  ;;  %v3207_v37 = vmul.f32 %v9541_v49, %v9541_v49  ;;  %v3215_v32 = vmul.f32 %v9544_v43, %v9544_v43  ;;  %6899 = vmatpush1.bf16.msra.mxu1 %v8007_v52 }
 0x5bd   :  { %v3222_v8 = vmul.f32 %v9181_v41, %v3206_v25  ;;  %v3230_v10 = vmul.f32 %v9184_v42, %v3214_v1  ;;  %v3209_v13 = vmul.f32 %v9551_v28, %v9551_v28  ;;  %v3217_v33 = vmul.f32 %v9554_v7, %v9554_v7  ;;  %6728 = vmatprep.subr.bf16.mxu0 %v8014_v61  ;;  %v3838_v61 = vld [vmem:[#allocation25 + $0xa00] sm:$0xff] }
 0x5be   :  { %v3224_v12 = vmul.f32 %v9181_v41, %v3208_v21  ;;  %v3232_v15 = vmul.f32 %v9184_v42, %v3216_v35  ;;  %v3223_v27 = vmul.f32 %v9181_v41, %v3207_v37  ;;  %v3231_v30 = vmul.f32 %v9184_v42, %v3215_v32  ;;  %6900 = vmatprep.subr.bf16.mxu1 %v8016_v53  ;;  %v3850_v25 = vld [vmem:[#allocation25 + $0xa60] sm:$0xff]  ;;  %v3847_v35 = vld [vmem:[#allocation25 + $0xa48] sm:$0xff] }
 0x5bf   :  { %v3262_v50 = vadd.f32 %v3230_v10, %v3222_v8  ;;  %v3225_v40 = vmul.f32 %v9181_v41, %v3209_v13  ;;  %v3233_v45 = vmul.f32 %v9184_v42, %v3217_v33  ;;  %6729 = vmatpush1.bf16.msra.mxu0 %v8013_v60  ;;  %v8032_v59 = vcombine.high %v3831_v29, %v3835_v31  ;;  %v3839_v41 = vld [vmem:[#allocation25 + $0xa08] sm:$0xff] }
 0x5c0   :  { %v3276_v52 = vadd.f32 %v3232_v15, %v3224_v12  ;;  %v3269_v54 = vadd.f32 %v3231_v30, %v3223_v27  ;;  %6901 = vmatpush1.bf16.msra.mxu1 %v8015_v3  ;;  %6730 = vmatprep.subr.bf16.mxu0 %v8022_v17  ;;  %v8029_v16 = vcombine.low %v3830_v11, %v3834_v14  ;;  %v3851_v37 = vld [vmem:[#allocation25 + $0xa68] sm:$0xff]  ;;  %v3854_v27 = vld [vmem:[#allocation25 + $0xa80] sm:$0xff] }
 0x5c1   :  { %v3263_v57 = vrot.slane %v3262_v50, 4  ;;  %v3283_v58 = vadd.f32 %v3233_v45, %v3225_v40  ;;  %6902 = vmatprep.subr.bf16.mxu1 %v8024_v6  ;;  %v8031_v9 = vcombine.low %v3831_v29, %v3835_v31  ;;  %v8038_v3 = vcombine.high %v3838_v61, %v3842_v63  ;;  %v3846_v6 = vld [vmem:[#allocation25 + $0xa40] sm:$0xff]  ;;  %v3859_v40 = vld [vmem:[#allocation25 + $0xaa8] sm:$0xff] }
 0x5c2   :  { %v3277_v2 = vrot.slane %v3276_v52, 4  ;;  %v3270_v53 = vrot.slane %v3269_v54, 4  ;;  %v8040_v24 = vcombine.high %v3839_v41, %v3843_v18  ;;  %v8039_v10 = vcombine.low %v3839_v41, %v3843_v18  ;;  %v3858_v30 = vld [vmem:[#allocation25 + $0xaa0] sm:$0xff] }
 0x5c3   :  { %v3264_v42 = vadd.f32 %v3263_v57, %v3262_v50  ;;  %v3284_v60 = vrot.slane %v3283_v58, 4  ;;  %6731 = vmatpush1.bf16.msra.mxu0 %v8021_v23  ;;  %v8037_v23 = vcombine.low %v3838_v61, %v3842_v63  ;;  %v8046_v11 = vcombine.high %v3846_v6, %v3850_v25  ;;  %v3855_v50 = vld [vmem:[#allocation25 + $0xa88] sm:$0xff] }
 0x5c4   :  { %v3278_v4 = vadd.f32 %v3277_v2, %v3276_v52  ;;  %v3271_v20 = vadd.f32 %v3270_v53, %v3269_v54  ;;  %6903 = vmatpush1.bf16.msra.mxu1 %v8023_v51  ;;  %6732 = vmatprep.subr.bf16.mxu0 %v8030_v56  ;;  %v8048_v15 = vcombine.high %v3847_v35, %v3851_v37  ;;  %v3862_v2 = vld [vmem:[#allocation25 + $0xac0] sm:$0xff] }
 0x5c5   :  { %v3265_v17 = vrot.slane %v3264_v42, 2  ;;  %v3285_v5 = vadd.f32 %v3284_v60, %v3283_v58  ;;  %6904 = vmatprep.subr.bf16.mxu1 %v8032_v59  ;;  %v8045_v52 = vcombine.low %v3846_v6, %v3850_v25  ;;  %v8047_v54 = vcombine.low %v3847_v35, %v3851_v37  ;;  %v3866_v53 = vld [vmem:[#allocation25 + $0xae0] sm:$0xff]  ;;  %v3867_v60 = vld [vmem:[#allocation25 + $0xae8] sm:$0xff] }
 0x5c6   :  { %v3279_v1 = vrot.slane %v3278_v4, 2  ;;  %v3272_v21 = vrot.slane %v3271_v20, 2  ;;  %v8054_v58 = vcombine.high %v3854_v27, %v3858_v30  ;;  %v8056_v63 = vcombine.high %v3855_v50, %v3859_v40  ;;  %v3870_v25 = vld [vmem:[#allocation25 + $0xb00] sm:$0xff]  ;;  %v9588_v35 = vld [vmem:[#allocation25 + $0xb08] sm:$0xff] }
 0x5c7   :  { %v3266_v32 = vadd.f32 %v3265_v17, %v3264_v42  ;;  %v3286_v8 = vrot.slane %v3285_v5, 2  ;;  %6733 = vmatpush1.bf16.msra.mxu0 %v8029_v16  ;;  %v3863_v42 = vld [vmem:[#allocation25 + $0xac8] sm:$0xff]  ;;  %v8055_v17 = vcombine.low %v3855_v50, %v3859_v40 }
 0x5c8   :  { %v3280_v13 = vadd.f32 %v3279_v1, %v3278_v4  ;;  %v3273_v33 = vadd.f32 %v3272_v21, %v3271_v20  ;;  %6905 = vmatpush1.bf16.msra.mxu1 %v8031_v9  ;;  %6734 = vmatprep.subr.bf16.mxu0 %v8038_v3  ;;  %v8053_v4 = vcombine.low %v3854_v27, %v3858_v30  ;;  %v3874_v1 = vld [vmem:[#allocation25 + $0xb20] sm:$0xff]  ;;  %v9583_v21 = vsub.s32 4, %v9173_v38  ;;  %v9590_v37 = vld [vmem:[#allocation25 + $0xb28] sm:$0xff]  ;;  %v8529_v27 = vld [vmem:[#allocation22] sm:$0xff] }
 0x5c9   :  { %v3267_v14 = vrot.slane %v3266_v32, 1  ;;  %v3287_v12 = vadd.f32 %v3286_v8, %v3285_v5  ;;  %6906 = vmatprep.subr.bf16.mxu1 %v8040_v24  ;;  %v8062_v5 = vcombine.high %v3862_v2, %v3866_v53  ;;  %v8064_v6 = vcombine.high %v3863_v42, %v3867_v60 }
 0x5ca   :  { %v3281_v29 = vrot.slane %v3280_v13, 1  ;;  %v3274_v31 = vrot.slane %v3273_v33, 1  ;;  %v9596_v8 = vsub.s32 7, %v9173_v38  ;;  %v3351_v30 = vrot.slane %v8529_v27, %v9583_v21 }
 0x5cb   :  { %v3268_v45 = vadd.f32 %v3267_v14, %v3266_v32  ;;  %v3288_v51 = vrot.slane %v3287_v12, 1  ;;  %6735 = vmatpush1.bf16.msra.mxu0 %v8037_v23  ;;  %v9593_v32 = vsub.s32 5, %v9173_v38  ;;  %v8061_v23 = vcombine.low %v3862_v2, %v3866_v53 }
 0x5cc   :  { %v3282_v56 = vadd.f32 %v3281_v29, %v3280_v13  ;;  %v3275_v57 = vadd.f32 %v3274_v31, %v3273_v33  ;;  %6907 = vmatpush1.bf16.msra.mxu1 %v8039_v10  ;;  %6736 = vmatprep.subr.bf16.mxu0 %v8046_v11  ;;  %v8063_v10 = vcombine.low %v3863_v42, %v3867_v60  ;;  %v9598_v33 = vld [vmem:[#allocation25 + $0xb40] sm:$0xff]  ;;  %v8530_v29 = vld [vmem:[#allocation23] sm:$0xff] }
 0x5cd   :  { %v3294_v59 = vmul.f32 %v3268_v45, %v9190_v62  ;;  %v3289_v61 = vadd.f32 %v3288_v51, %v3287_v12  ;;  %6908 = vmatprep.subr.bf16.mxu1 %v8048_v15  ;;  %v8070_v13 = vcombine.high %v3870_v25, %v3874_v1  ;;  %v9600_v11 = vld [vmem:[#allocation25 + $0xb60] sm:$0xff]  ;;  %v8072_v14 = vcombine.high %v9588_v35, %v9590_v37  ;;  %v9604_v12 = vld [vmem:[#allocation25 + $0xb48] sm:$0xff] }
 0x5ce   :  { %v3296_v41 = vmul.f32 %v3282_v56, %v9190_v62  ;;  %v3295_v18 = vmul.f32 %v3275_v57, %v9190_v62  ;;  %v9606_v15 = vld [vmem:[#allocation25 + $0xb68] sm:$0xff]  ;;  %v3409_v31 = vrot.slane %v8530_v29, %v9583_v21  ;;  %v9616_v45 = vld [vmem:[#allocation25 + $0xba0] sm:$0xff]  ;;  %v9624_v56 = vrot.slane %v8530_v29, %v9593_v32 }
 0x5cf   :  { %v3302_v16 = vadd.f32 0.8, %v3294_v59  ;;  %v3297_v9 = vmul.f32 %v3289_v61, %v9190_v62  ;;  %6737 = vmatpush1.bf16.msra.mxu0 %v8045_v52  ;;  %v9586_v62 = vsub.s32 6, %v9173_v38  ;;  %v9608_v38 = vld [vmem:[#allocation25 + $0xb80] sm:$0xff]  ;;  %v9618_v51 = vld [vmem:[#allocation25 + $0xb88] sm:$0xff]  ;;  %v3363_v57 = vrot.slane %v8529_v27, %v9596_v8 }
 0x5d0   :  { %v3304_v20 = vadd.f32 0.8, %v3296_v41  ;;  %v3303_v3 = vadd.f32 0.8, %v3295_v18  ;;  %6909 = vmatpush1.bf16.msra.mxu1 %v8047_v54  ;;  %6738 = vmatprep.subr.bf16.mxu0 %v8054_v58  ;;  %v9620_v52 = vld [vmem:[#allocation25 + $0xba8] sm:$0xff]  ;;  %v3355_v54 = vrot.slane %v8529_v27, %v9593_v32  ;;  %v8069_v58 = vcombine.low %v3870_v25, %v3874_v1  ;;  %v9627_v59 = vld [vmem:[#allocation25 + $0xbc0] sm:$0xff] }
 0x5d1   :  { %8489 = vrsqrt.f32 %v3302_v16  ;;  %v3305_v24 = vadd.f32 0.8, %v3297_v9  ;;  %6910 = vmatprep.subr.bf16.mxu1 %v8056_v63  ;;  %v3359_v50 = vrot.slane %v8529_v27, %v9586_v62  ;;  %v9614_v40 = vrot.slane %v8530_v29, %v9586_v62  ;;  %v9629_v61 = vld [vmem:[#allocation25 + $0xbe0] sm:$0xff]  ;;  %v9631_v63 = vld [vmem:[#allocation25 + $0xbc8] sm:$0xff] }
 0x5d2   :  { %8491 = vrsqrt.f32 %v3304_v20  ;;  %v9634_v2 = vrot.slane %v8530_v29, %v9596_v8  ;;  %v8071_v53 = vcombine.low %v9588_v35, %v9590_v37  ;;  %v8078_v41 = vcombine.high %v9598_v33, %v9600_v11  ;;  %v9640_v18 = vld [vmem:[#allocation25 + $0xbe8] sm:$0xff]  ;;  %v9642_v42 = vld [vmem:[#allocation25 + $0xc00] sm:$0xff] }
 0x5d3   :  { %8493 = vrsqrt.f32 %v3303_v3  ;;  %6739 = vmatpush1.bf16.msra.mxu0 %v8053_v4  ;;  %v9644_v60 = vld [vmem:[#allocation25 + $0xc20] sm:$0xff]  ;;  %v8077_v16 = vcombine.low %v9598_v33, %v9600_v11  ;;  %v8079_v9 = vcombine.low %v9604_v12, %v9606_v15  ;;  %v8080_v4 = vcombine.high %v9604_v12, %v9606_v15  ;;  %v9664_v25 = vld [vmem:[#allocation25 + $0xc28] sm:$0xff] }
 0x5d4   :  { %8495 = vrsqrt.f32 %v3305_v24  ;;  %6911 = vmatpush1.bf16.msra.mxu1 %v8055_v17  ;;  %6740 = vmatprep.subr.bf16.mxu0 %v8062_v5  ;;  %v8085_v20 = vcombine.low %v9608_v38, %v9616_v45  ;;  %v8086_v3 = vcombine.high %v9608_v38, %v9616_v45  ;;  %v8087_v17 = vcombine.low %v9618_v51, %v9620_v52 }
 0x5d5   :  { %6912 = vmatprep.subr.bf16.mxu1 %v8064_v6  ;;  %v8088_v5 = vcombine.high %v9618_v51, %v9620_v52  ;;  %v8093_v24 = vcombine.low %v9627_v59, %v9629_v61  ;;  %v9662_v6 = vld [vmem:[#allocation25 + $0xc08] sm:$0xff]  ;;  %v8094_v35 = vcombine.high %v9627_v59, %v9629_v61  ;;  %v8095_v37 = vcombine.low %v9631_v63, %v9640_v18 }
 0x5d6   :  { %v8104_v29 = vcombine.high %v9662_v6, %v9664_v25 }
 0x5d7   :  { %6741 = vmatpush1.bf16.msra.mxu0 %v8061_v23  ;;  %v8096_v23 = vcombine.high %v9631_v63, %v9640_v18  ;;  %v3919_v18 = vld [vmem:[#allocation25 + $0xc88] sm:$0xff] }
 0x5d8   :  { %6913 = vmatpush1.bf16.msra.mxu1 %v8063_v10  ;;  %6742 = vmatprep.subr.bf16.mxu0 %v8070_v13  ;;  %v8101_v10 = vcombine.low %v9642_v42, %v9644_v60 }
 0x5d9   :  { %6914 = vmatprep.subr.bf16.mxu1 %v8072_v14  ;;  %v8102_v14 = vcombine.high %v9642_v42, %v9644_v60  ;;  %v3930_v42 = vld [vmem:[#allocation25 + $0xce0] sm:$0xff]  ;;  %v3927_v60 = vld [vmem:[#allocation25 + $0xcc8] sm:$0xff] }
 0x5db   :  { %v8490_v1 = vpop.eup %8489  ;;  %6743 = vmatpush1.bf16.msra.mxu0 %v8069_v58 }
 0x5dc   :  { %v8492_v13 = vpop.eup %8491  ;;  %v3318_v33 = vmul.f32 %v8490_v1, %v9526_v0  ;;  %v3326_v11 = vmul.f32 %v8490_v1, %v9529_v22  ;;  %6915 = vmatpush1.bf16.msra.mxu1 %v8071_v53  ;;  %6744 = vmatprep.subr.bf16.mxu0 %v8078_v41 }
 0x5dd   :  { %v8494_v12 = vpop.eup %8493  ;;  %v3320_v15 = vmul.f32 %v8492_v13, %v9535_v26  ;;  %v3328_v38 = vmul.f32 %v8492_v13, %v9538_v48  ;;  %6916 = vmatprep.subr.bf16.mxu1 %v8080_v4 }
 0x5de   :  { %v8496_v0 = vpop.eup %8495  ;;  %v3376_v45 = vmul.f32 %v3351_v30, %v3318_v33  ;;  %v3384_v22 = vmul.f32 %v3351_v30, %v3326_v11  ;;  %v3319_v51 = vmul.f32 %v8494_v12, %v9541_v49  ;;  %v3327_v52 = vmul.f32 %v8494_v12, %v9544_v43  ;;  %v3910_v12 = vld [vmem:[#allocation25 + $0xc40] sm:$0xff] }
 0x5df   :  { %v3378_v58 = vmul.f32 %v3359_v50, %v3320_v15  ;;  %v3386_v53 = vmul.f32 %v3359_v50, %v3328_v38  ;;  %v3321_v26 = vmul.f32 %v8496_v0, %v9551_v28  ;;  %v3329_v48 = vmul.f32 %v8496_v0, %v9554_v7  ;;  %6745 = vmatpush1.bf16.msra.mxu0 %v8077_v16  ;;  %v3914_v15 = vld [vmem:[#allocation25 + $0xc60] sm:$0xff] }
 0x5e0   :  { %v3434_v41 = vadd.f32 %v3409_v31, %v3376_v45  ;;  %v3442_v4 = vadd.f32 %v3409_v31, %v3384_v22  ;;  %v3377_v1 = vmul.f32 %v3355_v54, %v3319_v51  ;;  %v3385_v13 = vmul.f32 %v3355_v54, %v3327_v52  ;;  %6917 = vmatpush1.bf16.msra.mxu1 %v8079_v9  ;;  %v3918_v45 = vld [vmem:[#allocation25 + $0xc80] sm:$0xff] }
 0x5e1   :  { %v3436_v27 = vadd.f32 %v9614_v40, %v3378_v58  ;;  %v3444_v30 = vadd.f32 %v9614_v40, %v3386_v53  ;;  %v3379_v33 = vmul.f32 %v3363_v57, %v3321_v26  ;;  %v3387_v49 = vmul.f32 %v3363_v57, %v3329_v48  ;;  %6746 = vmatprep.subr.bf16.mxu0 %v8086_v3  ;;  %v3922_v22 = vld [vmem:[#allocation25 + $0xca0] sm:$0xff] }
 0x5e2   :  { %v3474_v43 = vmul.f32 0.2, %v3442_v4  ;;  %v3435_v50 = vadd.f32 %v9624_v56, %v3377_v1  ;;  %v3443_v28 = vadd.f32 %v9624_v56, %v3385_v13  ;;  %6918 = vmatprep.subr.bf16.mxu1 %v8088_v5  ;;  %vm3450_vm10 = vcmp.gt.f32.partialorder %v3434_v41, 0.0  ;;  %v3926_v48 = vld [vmem:[#allocation25 + $0xcc0] sm:$0xff] }
 0x5e3   :  { %v3476_v7 = vmul.f32 0.2, %v3444_v30  ;;  %v3437_v31 = vadd.f32 %v9634_v2, %v3379_v33  ;;  %v3445_v54 = vadd.f32 %v9634_v2, %v3387_v49  ;;  %6747 = vmatpush1.bf16.msra.mxu0 %v8085_v20  ;;  %vm3458_vm11 = vcmp.gt.f32.partialorder %v3442_v4, 0.0  ;;  %v3934_v1 = vld [vmem:[#allocation25 + $0xd00] sm:$0xff]  ;;  %v3939_v33 = vld [vmem:[#allocation25 + $0xd28] sm:$0xff] }
 0x5e4   :  { %v3475_v16 = vmul.f32 0.2, %v3443_v28  ;;  %6919 = vmatpush1.bf16.msra.mxu1 %v8087_v17  ;;  %6748 = vmatprep.subr.bf16.mxu0 %v8094_v35  ;;  %vm3451_vm12 = vcmp.gt.f32.partialorder %v3435_v50, 0.0  ;;  %vm3459_vm13 = vcmp.gt.f32.partialorder %v3443_v28, 0.0  ;;  %v3467_v40 = vmul.f32 0.2, %v3435_v50 }
 0x5e5   :  { %v3477_v57 = vmul.f32 0.2, %v3445_v54  ;;  %6920 = vmatprep.subr.bf16.mxu1 %v8096_v23  ;;  %v3466_v9 = vmul.f32 0.2, %v3434_v41  ;;  %v3490_v3 = vsel %vm3458_vm11, %v3442_v4, %v3474_v43  ;;  %vm3453_vm14 = vcmp.gt.f32.partialorder %v3437_v31, 0.0  ;;  %v3911_v35 = vld [vmem:[#allocation25 + $0xc48] sm:$0xff] }
 0x5e6   :  { %v3483_v56 = vsel %vm3451_vm12, %v3435_v50, %v3467_v40  ;;  %v3491_v5 = vsel %vm3459_vm13, %v3443_v28, %v3475_v16  ;;  %vm3461_vm15 = vcmp.gt.f32.partialorder %v3445_v54, 0.0  ;;  %v3469_v11 = vmul.f32 0.2, %v3437_v31  ;;  %v3915_v23 = vld [vmem:[#allocation25 + $0xc68] sm:$0xff]  ;;  %v3938_v13 = vld [vmem:[#allocation25 + $0xd20] sm:$0xff] }
 0x5e7   :  { %6749 = vmatpush1.bf16.msra.mxu0 %v8093_v24  ;;  %v9697_v2 = vpack.c.bf16 %v3491_v5, %v3483_v56  ;;  %v3482_v20 = vsel %vm3450_vm10, %v3434_v41, %v3466_v9  ;;  %v3493_v17 = vsel %vm3461_vm15, %v3445_v54, %v3477_v57  ;;  %vm3452_vm0 = vcmp.gt.f32.partialorder %v3436_v27, 0.0  ;;  %v3943_v54 = vld [vmem:[#allocation25 + $0xd48] sm:$0xff]  ;;  %v3950_v56 = vld [vmem:[#allocation25 + $0xd80] sm:$0xff] }
 0x5e8   :  { %6921 = vmatpush1.bf16.msra.mxu1 %v8095_v37  ;;  %6761 = vmatprep.subr.bf16.mxu0 %v8102_v14  ;;  %v9703_v38 = vpack.c.bf16 %v3490_v3, %v3482_v20  ;;  %v3485_v0 = vsel %vm3453_vm14, %v3437_v31, %v3469_v11  ;;  %vm3460_vm1 = vcmp.gt.f32.partialorder %v3444_v30, 0.0  ;;  %v3468_v59 = vmul.f32 0.2, %v3436_v27  ;;  %v3923_v37 = vld [vmem:[#allocation25 + $0xca8] sm:$0xff]  ;;  %v3946_v31 = vld [vmem:[#allocation25 + $0xd60] sm:$0xff] }
 0x5e9   :  { %6750 = vmatprep.mubr.bf16.mxu0 %v9697_v2  ;;  %6922 = vmatprep.mubr.bf16.mxu1 %v9697_v2  ;;  %v9708_v61 = vpack.c.bf16 %v3493_v17, %v3485_v0  ;;  %v8110_v24 = vcombine.high %v3910_v12, %v3914_v15  ;;  %v3492_v51 = vsel %vm3460_vm1, %v3444_v30, %v3476_v7  ;;  %v3935_v30 = vld [vmem:[#allocation25 + $0xd08] sm:$0xff]  ;;  %v3942_v7 = vld [vmem:[#allocation25 + $0xd40] sm:$0xff] }
 0x5ea   :  { %6933 = vmatprep.subr.bf16.mxu1 %v8104_v29  ;;  %6751 = vmatmul.mubr.bf16.vlgmr.msra.gmra.mrb[16].mxu0 %v9703_v38  ;;  %v8112_v63 = vcombine.high %v3911_v35, %v3915_v23  ;;  %v3484_v14 = vsel %vm3452_vm0, %v3436_v27, %v3468_v59  ;;  %v8109_v52 = vcombine.low %v3910_v12, %v3914_v15  ;;  %v3947_v16 = vld [vmem:[#allocation25 + $0xd68] sm:$0xff]  ;;  %v3954_v5 = vld [vmem:[#allocation25 + $0xda0] sm:$0xff] }
 0x5eb   :  { %6762 = vmatpush1.bf16.msra.mxu0 %v8101_v10  ;;  %6923 = vmatmul.mubr.bf16.vlgmr.msra.gmra.mrb[16].mxu1 %v9703_v38  ;;  %v9719_v58 = vpack.c.bf16 %v3492_v51, %v3484_v14  ;;  %v9793_v53 = vcombine.low %v9662_v6, %v9664_v25  ;;  %v8111_v29 = vcombine.low %v3911_v35, %v3915_v23  ;;  %v3931_v10 = vld [vmem:[#allocation25 + $0xce8] sm:$0xff]  ;;  %v3958_v23 = vld [vmem:[#allocation25 + $0xdc0] sm:$0xff] }
 0x5ec   :  { %6793 = vmatprep.mubr.bf16.mxu0 %v9708_v61  ;;  %v8118_v26 = vcombine.high %v3918_v45, %v3922_v22  ;;  %6965 = vmatprep.mubr.bf16.mxu1 %v9708_v61  ;;  %v8120_v27 = vcombine.high %v3919_v18, %v3923_v37  ;;  %v8117_v41 = vcombine.low %v3918_v45, %v3922_v22  ;;  %v3951_v11 = vld [vmem:[#allocation25 + $0xd88] sm:$0xff]  ;;  %v3962_v0 = vld [vmem:[#allocation25 + $0xde0] sm:$0xff] }
 0x5ed   :  { %6934 = vmatpush1.bf16.msra.mxu1 %v9793_v53  ;;  %6763 = vmatprep.subr.bf16.mxu0 %v8110_v24  ;;  %v8119_v4 = vcombine.low %v3919_v18, %v3923_v37  ;;  %v8126_v6 = vcombine.high %v3926_v48, %v3930_v42  ;;  %v8128_v25 = vcombine.high %v3927_v60, %v3931_v10  ;;  %v3955_v12 = vld [vmem:[#allocation25 + $0xda8] sm:$0xff]  ;;  %v3966_v18 = vld [vmem:[#allocation25 + $0xe00] sm:$0xff] }
 0x5ee   :  { %6935 = vmatprep.subr.bf16.mxu1 %v8112_v63  ;;  %v8125_v49 = vcombine.low %v3926_v48, %v3930_v42  ;;  %v8127_v43 = vcombine.low %v3927_v60, %v3931_v10  ;;  %v8134_v50 = vcombine.high %v3934_v1, %v3938_v13  ;;  %v8136_v28 = vcombine.high %v3935_v30, %v3939_v33  ;;  %v3959_v59 = vld [vmem:[#allocation25 + $0xdc8] sm:$0xff]  ;;  %v3970_v37 = vld [vmem:[#allocation25 + $0xe20] sm:$0xff] }
 0x5ef   :  { %6764 = vmatpush1.bf16.msra.mxu0 %v8109_v52  ;;  %v8133_v40 = vcombine.low %v3934_v1, %v3938_v13  ;;  %v8135_v57 = vcombine.low %v3935_v30, %v3939_v33  ;;  %v8142_v9 = vcombine.high %v3942_v7, %v3946_v31  ;;  %v8144_v3 = vcombine.high %v3943_v54, %v3947_v16  ;;  %v3963_v24 = vld [vmem:[#allocation25 + $0xde8] sm:$0xff]  ;;  %v3974_v48 = vld [vmem:[#allocation25 + $0xe40] sm:$0xff] }
 0x5f0   :  { %6765 = vmatprep.subr.bf16.mxu0 %v8118_v26  ;;  %v8141_v15 = vcombine.low %v3942_v7, %v3946_v31  ;;  %v8143_v20 = vcombine.low %v3943_v54, %v3947_v16  ;;  %v8150_v17 = vcombine.high %v3950_v56, %v3954_v5  ;;  %v8152_v35 = vcombine.high %v3951_v11, %v3955_v12  ;;  %v3967_v14 = vld [vmem:[#allocation25 + $0xe08] sm:$0xff]  ;;  %v3978_v42 = vld [vmem:[#allocation25 + $0xe60] sm:$0xff] }
 0x5f1   :  { %6936 = vmatpush1.bf16.msra.mxu1 %v8111_v29  ;;  %v8149_v45 = vcombine.low %v3950_v56, %v3954_v5  ;;  %v8151_v22 = vcombine.low %v3951_v11, %v3955_v12  ;;  %v8158_v51 = vcombine.high %v3958_v23, %v3962_v0  ;;  %v8160_v63 = vcombine.high %v3959_v59, %v3963_v24  ;;  %v3971_v52 = vld [vmem:[#allocation25 + $0xe28] sm:$0xff]  ;;  %v3982_v1 = vld [vmem:[#allocation25 + $0xe80] sm:$0xff] }
 0x5f2   :  { %6937 = vmatprep.subr.bf16.mxu1 %v8120_v27  ;;  %v8157_v53 = vcombine.low %v3958_v23, %v3962_v0  ;;  %v8159_v29 = vcombine.low %v3959_v59, %v3963_v24  ;;  %v8166_v26 = vcombine.high %v3966_v18, %v3970_v37  ;;  %v8168_v27 = vcombine.high %v3967_v14, %v3971_v52  ;;  %v3975_v60 = vld [vmem:[#allocation25 + $0xe48] sm:$0xff]  ;;  %v3986_v13 = vld [vmem:[#allocation25 + $0xea0] sm:$0xff] }
 0x5f3   :  { %6766 = vmatpush1.bf16.msra.mxu0 %v8117_v41  ;;  %v3979_v10 = vld [vmem:[#allocation25 + $0xe68] sm:$0xff]  ;;  %v8165_v41 = vcombine.low %v3966_v18, %v3970_v37  ;;  %v3990_v7 = vld [vmem:[#allocation25 + $0xec0] sm:$0xff] }
 0x5f4   :  { %6767 = vmatprep.subr.bf16.mxu0 %v8126_v6  ;;  %v8174_v6 = vcombine.high %v3974_v48, %v3978_v42  ;;  %v3983_v30 = vld [vmem:[#allocation25 + $0xe88] sm:$0xff]  ;;  %v3994_v31 = vld [vmem:[#allocation25 + $0xee0] sm:$0xff] }
 0x5f5   :  { %6938 = vmatpush1.bf16.msra.mxu1 %v8119_v4  ;;  %v8167_v4 = vcombine.low %v3967_v14, %v3971_v52  ;;  %v3987_v33 = vld [vmem:[#allocation25 + $0xea8] sm:$0xff]  ;;  %v3998_v56 = vld [vmem:[#allocation25 + $0xf00] sm:$0xff] }
 0x5f6   :  { %6939 = vmatprep.subr.bf16.mxu1 %v8128_v25  ;;  %v8176_v25 = vcombine.high %v3975_v60, %v3979_v10  ;;  %v3991_v54 = vld [vmem:[#allocation25 + $0xec8] sm:$0xff]  ;;  %v4002_v5 = vld [vmem:[#allocation25 + $0xf20] sm:$0xff] }
 0x5f7   :  { %6768 = vmatpush1.bf16.msra.mxu0 %v8125_v49  ;;  %v8173_v49 = vcombine.low %v3974_v48, %v3978_v42  ;;  %v3995_v16 = vld [vmem:[#allocation25 + $0xee8] sm:$0xff]  ;;  %v4006_v23 = vld [vmem:[#allocation25 + $0xf40] sm:$0xff] }
 0x5f8   :  { %6769 = vmatprep.subr.bf16.mxu0 %v8134_v50  ;;  %v8182_v50 = vcombine.high %v3982_v1, %v3986_v13  ;;  %v3999_v11 = vld [vmem:[#allocation25 + $0xf08] sm:$0xff]  ;;  %v4010_v0 = vld [vmem:[#allocation25 + $0xf60] sm:$0xff] }
 0x5f9   :  { %6940 = vmatpush1.bf16.msra.mxu1 %v8127_v43  ;;  %v8175_v43 = vcombine.low %v3975_v60, %v3979_v10  ;;  %v4003_v12 = vld [vmem:[#allocation25 + $0xf28] sm:$0xff]  ;;  %v4014_v18 = vld [vmem:[#allocation25 + $0xf80] sm:$0xff] }
 0x5fa   :  { %6941 = vmatprep.subr.bf16.mxu1 %v8136_v28  ;;  %v8184_v28 = vcombine.high %v3983_v30, %v3987_v33  ;;  %v4007_v59 = vld [vmem:[#allocation25 + $0xf48] sm:$0xff]  ;;  %v4018_v37 = vld [vmem:[#allocation25 + $0xfa0] sm:$0xff] }
 0x5fb   :  { %6770 = vmatpush1.bf16.msra.mxu0 %v8133_v40  ;;  %v8181_v40 = vcombine.low %v3982_v1, %v3986_v13  ;;  %v4011_v24 = vld [vmem:[#allocation25 + $0xf68] sm:$0xff]  ;;  %v4022_v48 = vld [vmem:[#allocation25 + $0xfc0] sm:$0xff]  ;;  %v3520_v1 = vld [vmem:[#allocation25 + $0x10] sm:$0xff] }
 0x5fc   :  { %6771 = vmatprep.subr.bf16.mxu0 %v8142_v9  ;;  %v8190_v9 = vcombine.high %v3990_v7, %v3994_v31  ;;  %v4015_v14 = vld [vmem:[#allocation25 + $0xf88] sm:$0xff]  ;;  %v4026_v42 = vld [vmem:[#allocation25 + $0xfe0] sm:$0xff]  ;;  %v3524_v13 = vld [vmem:[#allocation25 + $0x30] sm:$0xff] }
 0x5fd   :  { %6942 = vmatpush1.bf16.msra.mxu1 %v8135_v57  ;;  %v8183_v57 = vcombine.low %v3983_v30, %v3987_v33  ;;  %v4019_v52 = vld [vmem:[#allocation25 + $0xfa8] sm:$0xff]  ;;  %v3521_v30 = vld [vmem:[#allocation25 + $0x18] sm:$0xff] }
 0x5fe   :  { %6943 = vmatprep.subr.bf16.mxu1 %v8144_v3  ;;  %v8192_v3 = vcombine.high %v3991_v54, %v3995_v16  ;;  %v4023_v60 = vld [vmem:[#allocation25 + $0xfc8] sm:$0xff]  ;;  %v3525_v33 = vld [vmem:[#allocation25 + $0x38] sm:$0xff] }
 0x5ff   :  { %6772 = vmatpush1.bf16.msra.mxu0 %v8141_v15  ;;  %v8189_v15 = vcombine.low %v3990_v7, %v3994_v31  ;;  %v4027_v10 = vld [vmem:[#allocation25 + $0xfe8] sm:$0xff]  ;;  %v3528_v7 = vld [vmem:[#allocation25 + $0x50] sm:$0xff] }
 0x600   :  { %6773 = vmatprep.subr.bf16.mxu0 %v8150_v17  ;;  %v8198_v17 = vcombine.high %v3998_v56, %v4002_v5  ;;  %v3532_v31 = vld [vmem:[#allocation25 + $0x70] sm:$0xff] }
 0x601   :  { %6944 = vmatpush1.bf16.msra.mxu1 %v8143_v20  ;;  %v8191_v20 = vcombine.low %v3991_v54, %v3995_v16  ;;  %v7721_v54 = vcombine.low %v3520_v1, %v3524_v13  ;;  %v3529_v16 = vld [vmem:[#allocation25 + $0x58] sm:$0xff] }
 0x602   :  { %6945 = vmatprep.subr.bf16.mxu1 %v8152_v35  ;;  %v8200_v35 = vcombine.high %v3999_v11, %v4003_v12 }
 0x603   :  { %6774 = vmatpush1.bf16.msra.mxu0 %v8149_v45  ;;  %v8197_v45 = vcombine.low %v3998_v56, %v4002_v5  ;;  %v3540_v56 = vld [vmem:[#allocation25 + $0xb0] sm:$0xff] }
 0x604   :  { %6775 = vmatprep.subr.bf16.mxu0 %v8158_v51  ;;  %v8206_v51 = vcombine.high %v4006_v23, %v4010_v0 }
 0x605   :  { %6946 = vmatpush1.bf16.msra.mxu1 %v8151_v22  ;;  %v8199_v22 = vcombine.low %v3999_v11, %v4003_v12  ;;  %v3537_v11 = vld [vmem:[#allocation25 + $0x98] sm:$0xff] }
 0x606   :  { %6947 = vmatprep.subr.bf16.mxu1 %v8160_v63  ;;  %v8208_v63 = vcombine.high %v4007_v59, %v4011_v24  ;;  %v3541_v12 = vld [vmem:[#allocation25 + $0xb8] sm:$0xff] }
 0x607   :  { %6776 = vmatpush1.bf16.msra.mxu0 %v8157_v53  ;;  %v8205_v53 = vcombine.low %v4006_v23, %v4010_v0  ;;  %v3544_v23 = vld [vmem:[#allocation25 + $0xd0] sm:$0xff] }
 0x608   :  { %6777 = vmatprep.subr.bf16.mxu0 %v8166_v26  ;;  %v8214_v26 = vcombine.high %v4014_v18, %v4018_v37  ;;  %v3548_v0 = vld [vmem:[#allocation25 + $0xf0] sm:$0xff] }
 0x609   :  { %6948 = vmatpush1.bf16.msra.mxu1 %v8159_v29  ;;  %v8207_v29 = vcombine.low %v4007_v59, %v4011_v24  ;;  %v3545_v59 = vld [vmem:[#allocation25 + $0xd8] sm:$0xff] }
 0x60a   :  { %6949 = vmatprep.subr.bf16.mxu1 %v8168_v27  ;;  %v8216_v27 = vcombine.high %v4015_v14, %v4019_v52  ;;  %v3549_v24 = vld [vmem:[#allocation25 + $0xf8] sm:$0xff] }
 0x60b   :  { %6778 = vmatpush1.bf16.msra.mxu0 %v8165_v41  ;;  %v8213_v41 = vcombine.low %v4014_v18, %v4018_v37  ;;  %v3552_v18 = vld [vmem:[#allocation25 + $0x110] sm:$0xff] }
 0x60c   :  { %6779 = vmatprep.subr.bf16.mxu0 %v8174_v6  ;;  %v8222_v6 = vcombine.high %v4022_v48, %v4026_v42  ;;  %v3556_v37 = vld [vmem:[#allocation25 + $0x130] sm:$0xff] }
 0x60d   :  { %6950 = vmatpush1.bf16.msra.mxu1 %v8167_v4  ;;  %v8215_v4 = vcombine.low %v4015_v14, %v4019_v52  ;;  %v3553_v14 = vld [vmem:[#allocation25 + $0x118] sm:$0xff] }
 0x60e   :  { %6951 = vmatprep.subr.bf16.mxu1 %v8176_v25  ;;  %v8224_v25 = vcombine.high %v4023_v60, %v4027_v10  ;;  %v3557_v52 = vld [vmem:[#allocation25 + $0x138] sm:$0xff] }
 0x60f   :  { %6780 = vmatpush1.bf16.msra.mxu0 %v8173_v49  ;;  %v8221_v49 = vcombine.low %v4022_v48, %v4026_v42  ;;  %v3564_v48 = vld [vmem:[#allocation25 + $0x170] sm:$0xff]  ;;  %v3561_v42 = vld [vmem:[#allocation25 + $0x158] sm:$0xff] }
 0x610   :  { %6781 = vmatprep.subr.bf16.mxu0 %v8182_v50  ;;  %v7722_v50 = vcombine.high %v3520_v1, %v3524_v13  ;;  %v3572_v1 = vld [vmem:[#allocation25 + $0x1b0] sm:$0xff]  ;;  %v3569_v13 = vld [vmem:[#allocation25 + $0x198] sm:$0xff] }
 0x611   :  { %6952 = vmatpush1.bf16.msra.mxu1 %v8175_v43  ;;  %v8223_v43 = vcombine.low %v4023_v60, %v4027_v10  ;;  %v3565_v60 = vld [vmem:[#allocation25 + $0x178] sm:$0xff]  ;;  %v7753_v10 = vcombine.low %v3552_v18, %v3556_v37 }
 0x612   :  { %6953 = vmatprep.subr.bf16.mxu1 %v8184_v28  ;;  %v7724_v28 = vcombine.high %v3521_v30, %v3525_v33 }
 0x613   :  { %6782 = vmatpush1.bf16.msra.mxu0 %v8181_v40  ;;  %v3533_v40 = vld [vmem:[#allocation25 + $0x78] sm:$0xff] }
 0x614   :  { %6783 = vmatprep.subr.bf16.mxu0 %v8190_v9  ;;  %v7730_v9 = vcombine.high %v3528_v7, %v3532_v31  ;;  %v7732_v5 = vcombine.high %v3529_v16, %v3533_v40 }
 0x615   :  { %6954 = vmatpush1.bf16.msra.mxu1 %v8183_v57  ;;  %v7723_v57 = vcombine.low %v3521_v30, %v3525_v33  ;;  %v3573_v30 = vld [vmem:[#allocation25 + $0x1b8] sm:$0xff] }
 0x616   :  { %6955 = vmatprep.subr.bf16.mxu1 %v8192_v3  ;;  %v3536_v3 = vld [vmem:[#allocation25 + $0x90] sm:$0xff] }
 0x617   :  { %6784 = vmatpush1.bf16.msra.mxu0 %v8189_v15  ;;  %v7729_v15 = vcombine.low %v3528_v7, %v3532_v31  ;;  %v3580_v7 = vld [vmem:[#allocation25 + $0x1f0] sm:$0xff]  ;;  %v3577_v31 = vld [vmem:[#allocation25 + $0x1d8] sm:$0xff] }
 0x618   :  { %6785 = vmatprep.subr.bf16.mxu0 %v8198_v17  ;;  %v7738_v17 = vcombine.high %v3536_v3, %v3540_v56 }
 0x619   :  { %6956 = vmatpush1.bf16.msra.mxu1 %v8191_v20  ;;  %v7731_v20 = vcombine.low %v3529_v16, %v3533_v40  ;;  %v7771_v40 = vcombine.low %v3569_v13, %v3573_v30 }
 0x61a   :  { %6957 = vmatprep.subr.bf16.mxu1 %v8200_v35  ;;  %v7740_v35 = vcombine.high %v3537_v11, %v3541_v12 }
 0x61b   :  { %6786 = vmatpush1.bf16.msra.mxu0 %v8197_v45  ;;  %v7737_v45 = vcombine.low %v3536_v3, %v3540_v56  ;;  %v3584_v3 = vld [vmem:[#allocation25 + $0x210] sm:$0xff] }
 0x61c   :  { %6787 = vmatprep.subr.bf16.mxu0 %v8206_v51  ;;  %v7746_v51 = vcombine.high %v3544_v23, %v3548_v0  ;;  %v3588_v56 = vld [vmem:[#allocation25 + $0x230] sm:$0xff] }
 0x61d   :  { %6958 = vmatpush1.bf16.msra.mxu1 %v8199_v22  ;;  %v7739_v22 = vcombine.low %v3537_v11, %v3541_v12  ;;  %v3589_v11 = vld [vmem:[#allocation25 + $0x238] sm:$0xff] }
 0x61e   :  { %6959 = vmatprep.subr.bf16.mxu1 %v8208_v63  ;;  %v7748_v63 = vcombine.high %v3545_v59, %v3549_v24 }
 0x61f   :  { %6788 = vmatpush1.bf16.msra.mxu0 %v8205_v53  ;;  %v7747_v53 = vcombine.low %v3545_v59, %v3549_v24  ;;  %v3597_v59 = vld [vmem:[#allocation25 + $0x278] sm:$0xff]  ;;  %v7785_v24 = vcombine.low %v3584_v3, %v3588_v56 }
 0x620   :  { %6789 = vmatprep.subr.bf16.mxu0 %v8214_v26  ;;  %v7756_v26 = vcombine.high %v3553_v14, %v3557_v52 }
 0x621   :  { %6960 = vmatpush1.bf16.msra.mxu1 %v8207_v29  ;;  %v7754_v29 = vcombine.high %v3552_v18, %v3556_v37  ;;  %v3604_v18 = vld [vmem:[#allocation25 + $0x2b0] sm:$0xff]  ;;  %v3601_v37 = vld [vmem:[#allocation25 + $0x298] sm:$0xff] }
 0x622   :  { %6961 = vmatprep.subr.bf16.mxu1 %v8216_v27  ;;  %v3560_v27 = vld [vmem:[#allocation25 + $0x150] sm:$0xff] }
 0x623   :  { %6790 = vmatpush1.bf16.msra.mxu0 %v8213_v41  ;;  %v7755_v41 = vcombine.low %v3553_v14, %v3557_v52  ;;  %v7761_v33 = vcombine.low %v3560_v27, %v3564_v48  ;;  %v3605_v14 = vld [vmem:[#allocation25 + $0x2b8] sm:$0xff] }
 0x624   :  { %6791 = vmatprep.subr.bf16.mxu0 %v8222_v6  ;;  %v7764_v6 = vcombine.high %v3561_v42, %v3565_v60 }
 0x625   :  { %6962 = vmatpush1.bf16.msra.mxu1 %v8215_v4  ;;  %v7762_v4 = vcombine.high %v3560_v27, %v3564_v48  ;;  %v3612_v27 = vld [vmem:[#allocation25 + $0x2f0] sm:$0xff]  ;;  %v3609_v48 = vld [vmem:[#allocation25 + $0x2d8] sm:$0xff] }
 0x626   :  { %6963 = vmatprep.subr.bf16.mxu1 %v8224_v25  ;;  %v3568_v25 = vld [vmem:[#allocation25 + $0x190] sm:$0xff] }
 0x627   :  { %6792 = vmatpush1.bf16.msra.mxu0 %v8221_v49  ;;  %v7763_v49 = vcombine.low %v3561_v42, %v3565_v60  ;;  %v7769_v16 = vcombine.low %v3568_v25, %v3572_v1  ;;  %v3613_v42 = vld [vmem:[#allocation25 + $0x2f8] sm:$0xff] }
 0x628   :  { %6976 = vmatprep.subr.bf16.mxu0 %v7722_v50  ;;  %v7772_v50 = vcombine.high %v3569_v13, %v3573_v30  ;;  %v3621_v13 = vld [vmem:[#allocation25 + $0x338] sm:$0xff] }
 0x629   :  { %6964 = vmatpush1.bf16.msra.mxu1 %v8223_v43  ;;  %v7770_v43 = vcombine.high %v3568_v25, %v3572_v1  ;;  %v3620_v25 = vld [vmem:[#allocation25 + $0x330] sm:$0xff]  ;;  %v3617_v1 = vld [vmem:[#allocation25 + $0x318] sm:$0xff] }
 0x62a   :  { %7148 = vmatprep.subr.bf16.mxu1 %v7724_v28  ;;  %6794 = vmatmul.mubr.bf16.vlgmr.msra.gmra.mrb[16].mxu0 %v9719_v58  ;;  %v3576_v28 = vld [vmem:[#allocation25 + $0x1d0] sm:$0xff] }
 0x62b   :  { %6977 = vmatpush1.bf16.msra.mxu0 %v7721_v54  ;;  %7008 = vmatprep.mubr.bf16.mxu0 %v9435_v39  ;;  %v3581_v54 = vld [vmem:[#allocation25 + $0x1f8] sm:$0xff]  ;;  %v7777_v12 = vcombine.low %v3576_v28, %v3580_v7 }
 0x62c   :  { %6966 = vmatmul.mubr.bf16.vlgmr.msra.gmra.mrb[16].mxu1 %v9719_v58  ;;  %6978 = vmatprep.subr.bf16.mxu0 %v7730_v9  ;;  %v7780_v9 = vcombine.high %v3577_v31, %v3581_v54 }
 0x62d   :  { %7149 = vmatpush1.bf16.msra.mxu1 %v7723_v57  ;;  %7180 = vmatprep.mubr.bf16.mxu1 %v9435_v39  ;;  %v7745_v39 = vcombine.low %v3544_v23, %v3548_v0  ;;  %v7778_v57 = vcombine.high %v3576_v28, %v3580_v7  ;;  %v3596_v23 = vld [vmem:[#allocation25 + $0x270] sm:$0xff]  ;;  %v3593_v0 = vld [vmem:[#allocation25 + $0x258] sm:$0xff] }
 0x62e   :  { %7150 = vmatprep.subr.bf16.mxu1 %v7732_v5  ;;  %v3585_v5 = vld [vmem:[#allocation25 + $0x218] sm:$0xff]  ;;  %v3628_v28 = vld [vmem:[#allocation25 + $0x370] sm:$0xff] }
 0x62f   :  { %6979 = vmatpush1.bf16.msra.mxu0 %v7729_v15  ;;  %v7779_v15 = vcombine.low %v3577_v31, %v3581_v54  ;;  %v3625_v7 = vld [vmem:[#allocation25 + $0x358] sm:$0xff] }
 0x630   :  { %6980 = vmatprep.subr.bf16.mxu0 %v7738_v17  ;;  %v7788_v17 = vcombine.high %v3585_v5, %v3589_v11  ;;  %v3629_v31 = vld [vmem:[#allocation25 + $0x378] sm:$0xff] }
 0x631   :  { %7151 = vmatpush1.bf16.msra.mxu1 %v7731_v20  ;;  %v7786_v20 = vcombine.high %v3584_v3, %v3588_v56  ;;  %v3636_v3 = vld [vmem:[#allocation25 + $0x3b0] sm:$0xff]  ;;  %v3633_v56 = vld [vmem:[#allocation25 + $0x398] sm:$0xff] }
 0x632   :  { %7152 = vmatprep.subr.bf16.mxu1 %v7740_v35  ;;  %v3592_v35 = vld [vmem:[#allocation25 + $0x250] sm:$0xff] }
 0x633   :  { %6981 = vmatpush1.bf16.msra.mxu0 %v7737_v45  ;;  %v7787_v45 = vcombine.low %v3585_v5, %v3589_v11  ;;  %v7793_v52 = vcombine.low %v3592_v35, %v3596_v23  ;;  %v3637_v5 = vld [vmem:[#allocation25 + $0x3b8] sm:$0xff] }
 0x634   :  { %6982 = vmatprep.subr.bf16.mxu0 %v7746_v51  ;;  %v7796_v51 = vcombine.high %v3593_v0, %v3597_v59 }
 0x635   :  { %7153 = vmatpush1.bf16.msra.mxu1 %v7739_v22  ;;  %v7794_v22 = vcombine.high %v3592_v35, %v3596_v23  ;;  %v3644_v35 = vld [vmem:[#allocation25 + $0x3f0] sm:$0xff]  ;;  %v3641_v23 = vld [vmem:[#allocation25 + $0x3d8] sm:$0xff] }
 0x636   :  { %7154 = vmatprep.subr.bf16.mxu1 %v7748_v63  ;;  %v3600_v63 = vld [vmem:[#allocation25 + $0x290] sm:$0xff] }
 0x637   :  { %6983 = vmatpush1.bf16.msra.mxu0 %v7745_v39  ;;  %v7795_v39 = vcombine.low %v3593_v0, %v3597_v59  ;;  %v7801_v60 = vcombine.low %v3600_v63, %v3604_v18  ;;  %v3645_v0 = vld [vmem:[#allocation25 + $0x3f8] sm:$0xff] }
 0x638   :  { %6984 = vmatprep.subr.bf16.mxu0 %v7754_v29  ;;  %v7804_v29 = vcombine.high %v3601_v37, %v3605_v14 }
 0x639   :  { %7155 = vmatpush1.bf16.msra.mxu1 %v7747_v53  ;;  %v7802_v53 = vcombine.high %v3600_v63, %v3604_v18  ;;  %v3652_v63 = vld [vmem:[#allocation25 + $0x430] sm:$0xff]  ;;  %v3649_v18 = vld [vmem:[#allocation25 + $0x418] sm:$0xff] }
 0x63a   :  { %7156 = vmatprep.subr.bf16.mxu1 %v7756_v26  ;;  %v3608_v26 = vld [vmem:[#allocation25 + $0x2d0] sm:$0xff] }
 0x63b   :  { %6985 = vmatpush1.bf16.msra.mxu0 %v7753_v10  ;;  %v7803_v10 = vcombine.low %v3601_v37, %v3605_v14  ;;  %v7809_v30 = vcombine.low %v3608_v26, %v3612_v27  ;;  %v3653_v37 = vld [vmem:[#allocation25 + $0x438] sm:$0xff] }
 0x63c   :  { %6986 = vmatprep.subr.bf16.mxu0 %v7762_v4  ;;  %v7812_v4 = vcombine.high %v3609_v48, %v3613_v42 }
 0x63d   :  { %7157 = vmatpush1.bf16.msra.mxu1 %v7755_v41  ;;  %v7810_v41 = vcombine.high %v3608_v26, %v3612_v27  ;;  %v3660_v26 = vld [vmem:[#allocation25 + $0x470] sm:$0xff] }
 0x63e   :  { %7158 = vmatprep.subr.bf16.mxu1 %v7764_v6  ;;  %v3616_v6 = vld [vmem:[#allocation25 + $0x310] sm:$0xff] }
 0x63f   :  { %6987 = vmatpush1.bf16.msra.mxu0 %v7761_v33  ;;  %v7811_v33 = vcombine.low %v3609_v48, %v3613_v42  ;;  %v7817_v54 = vcombine.low %v3616_v6, %v3620_v25  ;;  %v3657_v48 = vld [vmem:[#allocation25 + $0x458] sm:$0xff] }
 0x640   :  { %6988 = vmatprep.subr.bf16.mxu0 %v7770_v43  ;;  %v7820_v43 = vcombine.high %v3617_v1, %v3621_v13  ;;  %v3661_v42 = vld [vmem:[#allocation25 + $0x478] sm:$0xff] }
 0x641   :  { %7159 = vmatpush1.bf16.msra.mxu1 %v7763_v49  ;;  %v7818_v49 = vcombine.high %v3616_v6, %v3620_v25  ;;  %v7860_v6 = vcombine.high %v3657_v48, %v3661_v42  ;;  %v3665_v25 = vld [vmem:[#allocation25 + $0x498] sm:$0xff] }
 0x642   :  { %7160 = vmatprep.subr.bf16.mxu1 %v7772_v50  ;;  %v3624_v50 = vld [vmem:[#allocation25 + $0x350] sm:$0xff] }
 0x643   :  { %6989 = vmatpush1.bf16.msra.mxu0 %v7769_v16  ;;  %v7819_v16 = vcombine.low %v3617_v1, %v3621_v13  ;;  %v7825_v11 = vcombine.low %v3624_v50, %v3628_v28  ;;  %v3669_v1 = vld [vmem:[#allocation25 + $0x4b8] sm:$0xff] }
 0x644   :  { %6990 = vmatprep.subr.bf16.mxu0 %v7778_v57  ;;  %v7828_v57 = vcombine.high %v3625_v7, %v3629_v31 }
 0x645   :  { %7161 = vmatpush1.bf16.msra.mxu1 %v7771_v40  ;;  %v7826_v40 = vcombine.high %v3624_v50, %v3628_v28  ;;  %v3676_v50 = vld [vmem:[#allocation25 + $0x4f0] sm:$0xff]  ;;  %v3673_v28 = vld [vmem:[#allocation25 + $0x4d8] sm:$0xff] }
 0x646   :  { %7162 = vmatprep.subr.bf16.mxu1 %v7780_v9  ;;  %v3632_v9 = vld [vmem:[#allocation25 + $0x390] sm:$0xff] }
 0x647   :  { %6991 = vmatpush1.bf16.msra.mxu0 %v7777_v12  ;;  %v7827_v12 = vcombine.low %v3625_v7, %v3629_v31  ;;  %v7833_v59 = vcombine.low %v3632_v9, %v3636_v3  ;;  %v3677_v7 = vld [vmem:[#allocation25 + $0x4f8] sm:$0xff] }
 0x648   :  { %6992 = vmatprep.subr.bf16.mxu0 %v7786_v20  ;;  %v7836_v20 = vcombine.high %v3633_v56, %v3637_v5 }
 0x649   :  { %7163 = vmatpush1.bf16.msra.mxu1 %v7779_v15  ;;  %v7834_v15 = vcombine.high %v3632_v9, %v3636_v3  ;;  %v3681_v9 = vld [vmem:[#allocation25 + $0x518] sm:$0xff] }
 0x64a   :  { %7164 = vmatprep.subr.bf16.mxu1 %v7788_v17  ;;  %v3640_v17 = vld [vmem:[#allocation25 + $0x3d0] sm:$0xff]  ;;  %v3685_v3 = vld [vmem:[#allocation25 + $0x538] sm:$0xff] }
 0x64b   :  { %6993 = vmatpush1.bf16.msra.mxu0 %v7785_v24  ;;  %v7835_v24 = vcombine.low %v3633_v56, %v3637_v5  ;;  %v7841_v14 = vcombine.low %v3640_v17, %v3644_v35  ;;  %v7875_v56 = vcombine.low %v3673_v28, %v3677_v7 }
 0x64c   :  { %6994 = vmatprep.subr.bf16.mxu0 %v7794_v22  ;;  %v7844_v22 = vcombine.high %v3641_v23, %v3645_v0 }
 0x64d   :  { %7165 = vmatpush1.bf16.msra.mxu1 %v7787_v45  ;;  %v7842_v45 = vcombine.high %v3640_v17, %v3644_v35  ;;  %v3693_v17 = vld [vmem:[#allocation25 + $0x578] sm:$0xff] }
 0x64e   :  { %7166 = vmatprep.subr.bf16.mxu1 %v7796_v51  ;;  %v3648_v51 = vld [vmem:[#allocation25 + $0x410] sm:$0xff] }
 0x64f   :  { %6995 = vmatpush1.bf16.msra.mxu0 %v7793_v52  ;;  %v7843_v52 = vcombine.low %v3641_v23, %v3645_v0  ;;  %v7849_v27 = vcombine.low %v3648_v51, %v3652_v63  ;;  %v7883_v23 = vcombine.low %v3681_v9, %v3685_v3 }
 0x650   :  { %6996 = vmatprep.subr.bf16.mxu0 %v7802_v53  ;;  %v7852_v53 = vcombine.high %v3649_v18, %v3653_v37 }
 0x651   :  { %7167 = vmatpush1.bf16.msra.mxu1 %v7795_v39  ;;  %v7850_v39 = vcombine.high %v3648_v51, %v3652_v63  ;;  %v3701_v51 = vld [vmem:[#allocation25 + $0x5b8] sm:$0xff] }
 0x652   :  { %7168 = vmatprep.subr.bf16.mxu1 %v7804_v29  ;;  %v3656_v29 = vld [vmem:[#allocation25 + $0x450] sm:$0xff] }
 0x653   :  { %6997 = vmatpush1.bf16.msra.mxu0 %v7801_v60  ;;  %v7851_v60 = vcombine.low %v3649_v18, %v3653_v37  ;;  %v7857_v13 = vcombine.low %v3656_v29, %v3660_v26 }
 0x654   :  { %6998 = vmatprep.subr.bf16.mxu0 %v7810_v41  ;;  %v3664_v41 = vld [vmem:[#allocation25 + $0x490] sm:$0xff] }
 0x655   :  { %7169 = vmatpush1.bf16.msra.mxu1 %v7803_v10  ;;  %v7858_v10 = vcombine.high %v3656_v29, %v3660_v26  ;;  %v3709_v29 = vld [vmem:[#allocation25 + $0x5f8] sm:$0xff] }
 0x656   :  { %7170 = vmatprep.subr.bf16.mxu1 %v7812_v4  ;;  %v3668_v4 = vld [vmem:[#allocation25 + $0x4b0] sm:$0xff] }
 0x657   :  { %6999 = vmatpush1.bf16.msra.mxu0 %v7809_v30  ;;  %v7859_v30 = vcombine.low %v3657_v48, %v3661_v42  ;;  %v7865_v31 = vcombine.low %v3664_v41, %v3668_v4 }
 0x658   :  { %7000 = vmatprep.subr.bf16.mxu0 %v7818_v49  ;;  %v7868_v49 = vcombine.high %v3665_v25, %v3669_v1 }
 0x659   :  { %7171 = vmatpush1.bf16.msra.mxu1 %v7811_v33  ;;  %v7866_v33 = vcombine.high %v3664_v41, %v3668_v4  ;;  %v3713_v41 = vld [vmem:[#allocation25 + $0x618] sm:$0xff] }
 0x65a   :  { %7172 = vmatprep.subr.bf16.mxu1 %v7820_v43  ;;  %v3672_v43 = vld [vmem:[#allocation25 + $0x4d0] sm:$0xff]  ;;  %v3717_v4 = vld [vmem:[#allocation25 + $0x638] sm:$0xff] }
 0x65b   :  { %7001 = vmatpush1.bf16.msra.mxu0 %v7817_v54  ;;  %v7874_v54 = vcombine.high %v3672_v43, %v3676_v50 }
 0x65c   :  { %7002 = vmatprep.subr.bf16.mxu0 %v7826_v40  ;;  %v3680_v40 = vld [vmem:[#allocation25 + $0x510] sm:$0xff] }
 0x65d   :  { %7173 = vmatpush1.bf16.msra.mxu1 %v7819_v16  ;;  %v7876_v16 = vcombine.high %v3673_v28, %v3677_v7  ;;  %v7915_v28 = vcombine.low %v3713_v41, %v3717_v4 }
 0x65e   :  { %7174 = vmatprep.subr.bf16.mxu1 %v7828_v57  ;;  %v3684_v57 = vld [vmem:[#allocation25 + $0x530] sm:$0xff] }
 0x65f   :  { %7003 = vmatpush1.bf16.msra.mxu0 %v7825_v11  ;;  %v7882_v5 = vcombine.high %v3680_v40, %v3684_v57  ;;  %v7884_v11 = vcombine.high %v3681_v9, %v3685_v3  ;;  %v7881_v35 = vcombine.low %v3680_v40, %v3684_v57  ;;  %v3733_v40 = vld [vmem:[#allocation25 + $0x6b8] sm:$0xff] }
 0x660   :  { %7004 = vmatprep.subr.bf16.mxu0 %v7834_v15  ;;  %v3692_v15 = vld [vmem:[#allocation25 + $0x570] sm:$0xff] }
 0x661   :  { %7175 = vmatpush1.bf16.msra.mxu1 %v7827_v12  ;;  %v3688_v12 = vld [vmem:[#allocation25 + $0x550] sm:$0xff] }
 0x662   :  { %7176 = vmatprep.subr.bf16.mxu1 %v7836_v20  ;;  %v3689_v20 = vld [vmem:[#allocation25 + $0x558] sm:$0xff]  ;;  %v7890_v0 = vcombine.high %v3688_v12, %v3692_v15  ;;  %v7889_v63 = vcombine.low %v3688_v12, %v3692_v15 }
 0x663   :  { %7005 = vmatpush1.bf16.msra.mxu0 %v7833_v59  ;;  %v7892_v59 = vcombine.high %v3689_v20, %v3693_v17  ;;  %v7891_v18 = vcombine.low %v3689_v20, %v3693_v17  ;;  %v3741_v12 = vld [vmem:[#allocation25 + $0x6f8] sm:$0xff] }
 0x664   :  { %7006 = vmatprep.subr.bf16.mxu0 %v7842_v45  ;;  %v3700_v45 = vld [vmem:[#allocation25 + $0x5b0] sm:$0xff] }
 0x665   :  { %7177 = vmatpush1.bf16.msra.mxu1 %v7835_v24  ;;  %v3696_v24 = vld [vmem:[#allocation25 + $0x590] sm:$0xff] }
 0x666   :  { %7178 = vmatprep.subr.bf16.mxu1 %v7844_v22  ;;  %v3697_v22 = vld [vmem:[#allocation25 + $0x598] sm:$0xff]  ;;  %v7898_v37 = vcombine.high %v3696_v24, %v3700_v45  ;;  %v7897_v26 = vcombine.low %v3696_v24, %v3700_v45 }
 0x667   :  { %7007 = vmatpush1.bf16.msra.mxu0 %v7841_v14  ;;  %v7900_v14 = vcombine.high %v3697_v22, %v3701_v51  ;;  %v3749_v24 = vld [vmem:[#allocation25 + $0x738] sm:$0xff] }
 0x668   :  { %7019 = vmatprep.subr.bf16.mxu0 %v7850_v39  ;;  %v3708_v39 = vld [vmem:[#allocation25 + $0x5f0] sm:$0xff] }
 0x669   :  { %7179 = vmatpush1.bf16.msra.mxu1 %v7843_v52  ;;  %v3704_v52 = vld [vmem:[#allocation25 + $0x5d0] sm:$0xff] }
 0x66a   :  { %7191 = vmatprep.subr.bf16.mxu1 %v7852_v53  ;;  %7009 = vmatmul.mubr.bf16.vlgmr.msra.gmra.mrb[20].mxu0 %v9438_v47  ;;  %v3705_v53 = vld [vmem:[#allocation25 + $0x5d8] sm:$0xff]  ;;  %v7906_v48 = vcombine.high %v3704_v52, %v3708_v39 }
 0x66b   :  { %7020 = vmatpush1.bf16.msra.mxu0 %v7849_v27  ;;  %7051 = vmatprep.mubr.bf16.mxu0 %v9442_v55  ;;  %v7899_v27 = vcombine.low %v3697_v22, %v3701_v51  ;;  %v7908_v42 = vcombine.high %v3705_v53, %v3709_v29 }
 0x66c   :  { %7181 = vmatmul.mubr.bf16.vlgmr.msra.gmra.mrb[20].mxu1 %v9438_v47  ;;  %7021 = vmatprep.subr.bf16.mxu0 %v7858_v10  ;;  %v7867_v47 = vcombine.low %v3665_v25, %v3669_v1  ;;  %v3716_v10 = vld [vmem:[#allocation25 + $0x630] sm:$0xff]  ;;  %v7907_v25 = vcombine.low %v3705_v53, %v3709_v29 }
 0x66d   :  { %7192 = vmatpush1.bf16.msra.mxu1 %v7851_v60  ;;  %7223 = vmatprep.mubr.bf16.mxu1 %v9442_v55  ;;  %v7873_v55 = vcombine.low %v3672_v43, %v3676_v50  ;;  %v3712_v60 = vld [vmem:[#allocation25 + $0x610] sm:$0xff]  ;;  %v3725_v43 = vld [vmem:[#allocation25 + $0x678] sm:$0xff] }
 0x66e   :  { %7193 = vmatprep.subr.bf16.mxu1 %v7860_v6  ;;  %v7905_v6 = vcombine.low %v3704_v52, %v3708_v39  ;;  %v7914_v1 = vcombine.high %v3712_v60, %v3716_v10  ;;  %v7913_v50 = vcombine.low %v3712_v60, %v3716_v10  ;;  %v3757_v52 = vld [vmem:[#allocation25 + $0x778] sm:$0xff] }
 0x66f   :  { %7022 = vmatpush1.bf16.msra.mxu0 %v7857_v13  ;;  %v7916_v13 = vcombine.high %v3713_v41, %v3717_v4  ;;  %v3765_v60 = vld [vmem:[#allocation25 + $0x7b8] sm:$0xff] }
 0x670   :  { %7023 = vmatprep.subr.bf16.mxu0 %v7866_v33  ;;  %v3724_v33 = vld [vmem:[#allocation25 + $0x670] sm:$0xff] }
 0x671   :  { %7194 = vmatpush1.bf16.msra.mxu1 %v7859_v30  ;;  %v3720_v30 = vld [vmem:[#allocation25 + $0x650] sm:$0xff] }
 0x672   :  { %7195 = vmatprep.subr.bf16.mxu1 %v7868_v49  ;;  %v3721_v49 = vld [vmem:[#allocation25 + $0x658] sm:$0xff]  ;;  %v7922_v7 = vcombine.high %v3720_v30, %v3724_v33  ;;  %v7921_v57 = vcombine.low %v3720_v30, %v3724_v33 }
 0x673   :  { %7024 = vmatpush1.bf16.msra.mxu0 %v7865_v31  ;;  %v7924_v31 = vcombine.high %v3721_v49, %v3725_v43  ;;  %v7923_v9 = vcombine.low %v3721_v49, %v3725_v43  ;;  %v3773_v30 = vld [vmem:[#allocation25 + $0x7f8] sm:$0xff] }
 0x674   :  { %7025 = vmatprep.subr.bf16.mxu0 %v7874_v54  ;;  %v3732_v54 = vld [vmem:[#allocation25 + $0x6b0] sm:$0xff] }
 0x675   :  { %7196 = vmatpush1.bf16.msra.mxu1 %v7867_v47  ;;  %v3728_v47 = vld [vmem:[#allocation25 + $0x690] sm:$0xff] }
 0x676   :  { %7197 = vmatprep.subr.bf16.mxu1 %v7876_v16  ;;  %v3729_v16 = vld [vmem:[#allocation25 + $0x698] sm:$0xff]  ;;  %v7930_v3 = vcombine.high %v3728_v47, %v3732_v54  ;;  %v7929_v15 = vcombine.low %v3728_v47, %v3732_v54 }
 0x677   :  { %7026 = vmatpush1.bf16.msra.mxu0 %v7873_v55  ;;  %v7932_v55 = vcombine.high %v3729_v16, %v3733_v40  ;;  %v7931_v20 = vcombine.low %v3729_v16, %v3733_v40  ;;  %v3781_v47 = vld [vmem:[#allocation25 + $0x838] sm:$0xff] }
 0x678   :  { %7027 = vmatprep.subr.bf16.mxu0 %v7882_v5  ;;  %v3740_v5 = vld [vmem:[#allocation25 + $0x6f0] sm:$0xff] }
 0x679   :  { %7198 = vmatpush1.bf16.msra.mxu1 %v7875_v56  ;;  %v3736_v56 = vld [vmem:[#allocation25 + $0x6d0] sm:$0xff] }
 0x67a   :  { %7199 = vmatprep.subr.bf16.mxu1 %v7884_v11  ;;  %v3737_v11 = vld [vmem:[#allocation25 + $0x6d8] sm:$0xff]  ;;  %v7938_v17 = vcombine.high %v3736_v56, %v3740_v5  ;;  %v7937_v45 = vcombine.low %v3736_v56, %v3740_v5 }
 0x67b   :  { %7028 = vmatpush1.bf16.msra.mxu0 %v7881_v35  ;;  %v7940_v35 = vcombine.high %v3737_v11, %v3741_v12  ;;  %v7939_v22 = vcombine.low %v3737_v11, %v3741_v12  ;;  %v3785_v56 = vld [vmem:[#allocation25 + $0x858] sm:$0xff] }
 0x67c   :  { %7029 = vmatprep.subr.bf16.mxu0 %v7890_v0  ;;  %v3748_v0 = vld [vmem:[#allocation25 + $0x730] sm:$0xff]  ;;  %v3789_v5 = vld [vmem:[#allocation25 + $0x878] sm:$0xff] }
 0x67d   :  { %7200 = vmatpush1.bf16.msra.mxu1 %v7883_v23  ;;  %v3744_v23 = vld [vmem:[#allocation25 + $0x710] sm:$0xff] }
 0x67e   :  { %7201 = vmatprep.subr.bf16.mxu1 %v7892_v59  ;;  %v3745_v59 = vld [vmem:[#allocation25 + $0x718] sm:$0xff]  ;;  %v7946_v51 = vcombine.high %v3744_v23, %v3748_v0  ;;  %v7945_v39 = vcombine.low %v3744_v23, %v3748_v0 }
 0x67f   :  { %7030 = vmatpush1.bf16.msra.mxu0 %v7889_v63  ;;  %v7948_v63 = vcombine.high %v3745_v59, %v3749_v24  ;;  %v7947_v53 = vcombine.low %v3745_v59, %v3749_v24  ;;  %v3797_v23 = vld [vmem:[#allocation25 + $0x8b8] sm:$0xff]  ;;  %v7987_v59 = vcombine.low %v3785_v56, %v3789_v5 }
 0x680   :  { %7031 = vmatprep.subr.bf16.mxu0 %v7898_v37  ;;  %v3756_v37 = vld [vmem:[#allocation25 + $0x770] sm:$0xff] }
 0x681   :  { %7202 = vmatpush1.bf16.msra.mxu1 %v7891_v18  ;;  %v3752_v18 = vld [vmem:[#allocation25 + $0x750] sm:$0xff] }
 0x682   :  { %7203 = vmatprep.subr.bf16.mxu1 %v7900_v14  ;;  %v3753_v14 = vld [vmem:[#allocation25 + $0x758] sm:$0xff]  ;;  %v7954_v29 = vcombine.high %v3752_v18, %v3756_v37  ;;  %v7953_v10 = vcombine.low %v3752_v18, %v3756_v37 }
 0x683   :  { %7032 = vmatpush1.bf16.msra.mxu0 %v7897_v26  ;;  %v7956_v26 = vcombine.high %v3753_v14, %v3757_v52  ;;  %v7955_v41 = vcombine.low %v3753_v14, %v3757_v52  ;;  %v3805_v18 = vld [vmem:[#allocation25 + $0x8f8] sm:$0xff] }
 0x684   :  { %7033 = vmatprep.subr.bf16.mxu0 %v7906_v48  ;;  %v3764_v48 = vld [vmem:[#allocation25 + $0x7b0] sm:$0xff] }
 0x685   :  { %7204 = vmatpush1.bf16.msra.mxu1 %v7899_v27  ;;  %v3760_v27 = vld [vmem:[#allocation25 + $0x790] sm:$0xff] }
 0x686   :  { %7205 = vmatprep.subr.bf16.mxu1 %v7908_v42  ;;  %v3761_v42 = vld [vmem:[#allocation25 + $0x798] sm:$0xff]  ;;  %v7962_v4 = vcombine.high %v3760_v27, %v3764_v48  ;;  %v7961_v33 = vcombine.low %v3760_v27, %v3764_v48 }
 0x687   :  { %7034 = vmatpush1.bf16.msra.mxu0 %v7905_v6  ;;  %v7964_v6 = vcombine.high %v3761_v42, %v3765_v60  ;;  %v7963_v49 = vcombine.low %v3761_v42, %v3765_v60  ;;  %v3816_v60 = vld [vmem:[#allocation25 + $0x950] sm:$0xff] }
 0x688   :  { %7035 = vmatprep.subr.bf16.mxu0 %v7914_v1  ;;  %v3772_v1 = vld [vmem:[#allocation25 + $0x7f0] sm:$0xff] }
 0x689   :  { %7206 = vmatpush1.bf16.msra.mxu1 %v7907_v25  ;;  %v3768_v25 = vld [vmem:[#allocation25 + $0x7d0] sm:$0xff] }
 0x68a   :  { %7207 = vmatprep.subr.bf16.mxu1 %v7916_v13  ;;  %v3769_v13 = vld [vmem:[#allocation25 + $0x7d8] sm:$0xff]  ;;  %v7970_v43 = vcombine.high %v3768_v25, %v3772_v1  ;;  %v7969_v54 = vcombine.low %v3768_v25, %v3772_v1 }
 0x68b   :  { %7036 = vmatpush1.bf16.msra.mxu0 %v7913_v50  ;;  %v7972_v50 = vcombine.high %v3769_v13, %v3773_v30  ;;  %v7971_v16 = vcombine.low %v3769_v13, %v3773_v30  ;;  %v3824_v30 = vld [vmem:[#allocation25 + $0x990] sm:$0xff] }
 0x68c   :  { %7037 = vmatprep.subr.bf16.mxu0 %v7922_v7  ;;  %v3780_v7 = vld [vmem:[#allocation25 + $0x830] sm:$0xff] }
 0x68d   :  { %7208 = vmatpush1.bf16.msra.mxu1 %v7915_v28  ;;  %v3776_v28 = vld [vmem:[#allocation25 + $0x810] sm:$0xff] }
 0x68e   :  { %7209 = vmatprep.subr.bf16.mxu1 %v7924_v31  ;;  %v3777_v31 = vld [vmem:[#allocation25 + $0x818] sm:$0xff]  ;;  %v7978_v40 = vcombine.high %v3776_v28, %v3780_v7 }
 0x68f   :  { %7038 = vmatpush1.bf16.msra.mxu0 %v7921_v57  ;;  %v7980_v57 = vcombine.high %v3777_v31, %v3781_v47  ;;  %v7979_v11 = vcombine.low %v3777_v31, %v3781_v47  ;;  %v3832_v47 = vld [vmem:[#allocation25 + $0x9d0] sm:$0xff] }
 0x690   :  { %7039 = vmatprep.subr.bf16.mxu0 %v7930_v3  ;;  %v3788_v3 = vld [vmem:[#allocation25 + $0x870] sm:$0xff] }
 0x691   :  { %7210 = vmatpush1.bf16.msra.mxu1 %v7923_v9  ;;  %v3784_v9 = vld [vmem:[#allocation25 + $0x850] sm:$0xff] }
 0x692   :  { %7211 = vmatprep.subr.bf16.mxu1 %v7932_v55  ;;  %v7977_v55 = vcombine.low %v3776_v28, %v3780_v7  ;;  %v7986_v12 = vcombine.high %v3784_v9, %v3788_v3  ;;  %v7985_v0 = vcombine.low %v3784_v9, %v3788_v3 }
 0x693   :  { %7040 = vmatpush1.bf16.msra.mxu0 %v7929_v15  ;;  %v3792_v15 = vld [vmem:[#allocation25 + $0x890] sm:$0xff] }
 0x694   :  { %7041 = vmatprep.subr.bf16.mxu0 %v7938_v17  ;;  %v7988_v17 = vcombine.high %v3785_v56, %v3789_v5  ;;  %v3840_v56 = vld [vmem:[#allocation25 + $0xa10] sm:$0xff] }
 0x695   :  { %7212 = vmatpush1.bf16.msra.mxu1 %v7931_v20  ;;  %v3796_v20 = vld [vmem:[#allocation25 + $0x8b0] sm:$0xff] }
 0x696   :  { %7213 = vmatprep.subr.bf16.mxu1 %v7940_v35  ;;  %v3793_v35 = vld [vmem:[#allocation25 + $0x898] sm:$0xff]  ;;  %v7994_v24 = vcombine.high %v3792_v15, %v3796_v20  ;;  %v7993_v37 = vcombine.low %v3792_v15, %v3796_v20  ;;  %v3844_v5 = vld [vmem:[#allocation25 + $0xa30] sm:$0xff] }
 0x697   :  { %7042 = vmatpush1.bf16.msra.mxu0 %v7937_v45  ;;  %v7996_v45 = vcombine.high %v3793_v35, %v3797_v23 }
 0x698   :  { %7043 = vmatprep.subr.bf16.mxu0 %v7946_v51  ;;  %v3804_v51 = vld [vmem:[#allocation25 + $0x8f0] sm:$0xff] }
 0x699   :  { %7214 = vmatpush1.bf16.msra.mxu1 %v7939_v22  ;;  %v3800_v22 = vld [vmem:[#allocation25 + $0x8d0] sm:$0xff] }
 0x69a   :  { %7215 = vmatprep.subr.bf16.mxu1 %v7948_v63  ;;  %v3801_v63 = vld [vmem:[#allocation25 + $0x8d8] sm:$0xff]  ;;  %v8002_v14 = vcombine.high %v3800_v22, %v3804_v51 }
 0x69b   :  { %7044 = vmatpush1.bf16.msra.mxu0 %v7945_v39  ;;  %v8004_v52 = vcombine.high %v3801_v63, %v3805_v18  ;;  %v3808_v39 = vld [vmem:[#allocation25 + $0x910] sm:$0xff]  ;;  %v8003_v27 = vcombine.low %v3801_v63, %v3805_v18 }
 0x69c   :  { %7045 = vmatprep.subr.bf16.mxu0 %v7954_v29  ;;  %v3809_v29 = vld [vmem:[#allocation25 + $0x918] sm:$0xff]  ;;  %v3856_v18 = vld [vmem:[#allocation25 + $0xa90] sm:$0xff] }
 0x69d   :  { %7216 = vmatpush1.bf16.msra.mxu1 %v7947_v53  ;;  %v3812_v53 = vld [vmem:[#allocation25 + $0x930] sm:$0xff] }
 0x69e   :  { %7217 = vmatprep.subr.bf16.mxu1 %v7956_v26  ;;  %v3813_v26 = vld [vmem:[#allocation25 + $0x938] sm:$0xff]  ;;  %v8010_v48 = vcombine.high %v3808_v39, %v3812_v53 }
 0x69f   :  { %7046 = vmatpush1.bf16.msra.mxu0 %v7953_v10  ;;  %v8012_v42 = vcombine.high %v3809_v29, %v3813_v26  ;;  %v3820_v10 = vld [vmem:[#allocation25 + $0x970] sm:$0xff]  ;;  %v8011_v25 = vcombine.low %v3809_v29, %v3813_v26 }
 0x6a0   :  { %7047 = vmatprep.subr.bf16.mxu0 %v7962_v4  ;;  %v3821_v4 = vld [vmem:[#allocation25 + $0x978] sm:$0xff]  ;;  %v8018_v1 = vcombine.high %v3816_v60, %v3820_v10  ;;  %v3864_v26 = vld [vmem:[#allocation25 + $0xad0] sm:$0xff] }
 0x6a1   :  { %7218 = vmatpush1.bf16.msra.mxu1 %v7955_v41  ;;  %v3817_v41 = vld [vmem:[#allocation25 + $0x958] sm:$0xff] }
 0x6a2   :  { %7219 = vmatprep.subr.bf16.mxu1 %v7964_v6  ;;  %v8009_v6 = vcombine.low %v3808_v39, %v3812_v53  ;;  %v8020_v13 = vcombine.high %v3817_v41, %v3821_v4  ;;  %v8019_v28 = vcombine.low %v3817_v41, %v3821_v4  ;;  %v3872_v4 = vld [vmem:[#allocation25 + $0xb10] sm:$0xff] }
 0x6a3   :  { %7048 = vmatpush1.bf16.msra.mxu0 %v7961_v33  ;;  %v3828_v33 = vld [vmem:[#allocation25 + $0x9b0] sm:$0xff] }
 0x6a4   :  { %7049 = vmatprep.subr.bf16.mxu0 %v7970_v43  ;;  %v3829_v43 = vld [vmem:[#allocation25 + $0x9b8] sm:$0xff]  ;;  %v8026_v7 = vcombine.high %v3824_v30, %v3828_v33 }
 0x6a5   :  { %7220 = vmatpush1.bf16.msra.mxu1 %v7963_v49  ;;  %v3825_v49 = vld [vmem:[#allocation25 + $0x998] sm:$0xff] }
 0x6a6   :  { %7221 = vmatprep.subr.bf16.mxu1 %v7972_v50  ;;  %v8017_v50 = vcombine.low %v3816_v60, %v3820_v10  ;;  %v8028_v31 = vcombine.high %v3825_v49, %v3829_v43  ;;  %v8027_v9 = vcombine.low %v3825_v49, %v3829_v43  ;;  %v3880_v43 = vld [vmem:[#allocation25 + $0xb50] sm:$0xff] }
 0x6a7   :  { %7050 = vmatpush1.bf16.msra.mxu0 %v7969_v54  ;;  %v3836_v54 = vld [vmem:[#allocation25 + $0x9f0] sm:$0xff] }
 0x6a8   :  { %7062 = vmatprep.subr.bf16.mxu0 %v7978_v40  ;;  %v3837_v40 = vld [vmem:[#allocation25 + $0x9f8] sm:$0xff]  ;;  %v8034_v3 = vcombine.high %v3832_v47, %v3836_v54  ;;  %v8033_v15 = vcombine.low %v3832_v47, %v3836_v54 }
 0x6a9   :  { %7222 = vmatpush1.bf16.msra.mxu1 %v7971_v16  ;;  %v3833_v16 = vld [vmem:[#allocation25 + $0x9d8] sm:$0xff] }
 0x6aa   :  { %7234 = vmatprep.subr.bf16.mxu1 %v7980_v57  ;;  %7052 = vmatmul.mubr.bf16.vlgmr.msra.gmra.mrb[20].mxu0 %v9454_v19  ;;  %v8025_v57 = vcombine.low %v3824_v30, %v3828_v33  ;;  %v8035_v20 = vcombine.low %v3833_v16, %v3837_v40 }
 0x6ab   :  { %7063 = vmatpush1.bf16.msra.mxu0 %v7977_v55  ;;  %7094 = vmatprep.mubr.bf16.mxu0 %v9697_v2  ;;  %v8036_v55 = vcombine.high %v3833_v16, %v3837_v40  ;;  %v3888_v40 = vld [vmem:[#allocation25 + $0xb90] sm:$0xff] }
 0x6ac   :  { %7224 = vmatmul.mubr.bf16.vlgmr.msra.gmra.mrb[20].mxu1 %v9454_v19  ;;  %7064 = vmatprep.subr.bf16.mxu0 %v7986_v12  ;;  %v7995_v19 = vcombine.low %v3793_v35, %v3797_v23  ;;  %v3845_v12 = vld [vmem:[#allocation25 + $0xa38] sm:$0xff]  ;;  %v3848_v23 = vld [vmem:[#allocation25 + $0xa50] sm:$0xff] }
 0x6ad   :  { %7235 = vmatpush1.bf16.msra.mxu1 %v7979_v11  ;;  %7266 = vmatprep.mubr.bf16.mxu1 %v9697_v2  ;;  %v8001_v2 = vcombine.low %v3800_v22, %v3804_v51  ;;  %v3841_v11 = vld [vmem:[#allocation25 + $0xa18] sm:$0xff] }
 0x6ae   :  { %7236 = vmatprep.subr.bf16.mxu1 %v7988_v17  ;;  %v8042_v17 = vcombine.high %v3840_v56, %v3844_v5  ;;  %v8044_v35 = vcombine.high %v3841_v11, %v3845_v12  ;;  %v8043_v22 = vcombine.low %v3841_v11, %v3845_v12  ;;  %v3896_v12 = vld [vmem:[#allocation25 + $0xbd0] sm:$0xff] }
 0x6af   :  { %7065 = vmatpush1.bf16.msra.mxu0 %v7985_v0  ;;  %v3852_v0 = vld [vmem:[#allocation25 + $0xa70] sm:$0xff] }
 0x6b0   :  { %7066 = vmatprep.subr.bf16.mxu0 %v7994_v24  ;;  %v3853_v24 = vld [vmem:[#allocation25 + $0xa78] sm:$0xff]  ;;  %v8050_v51 = vcombine.high %v3848_v23, %v3852_v0 }
 0x6b1   :  { %7237 = vmatpush1.bf16.msra.mxu1 %v7987_v59  ;;  %v3849_v59 = vld [vmem:[#allocation25 + $0xa58] sm:$0xff] }
 0x6b2   :  { %7238 = vmatprep.subr.bf16.mxu1 %v7996_v45  ;;  %v8041_v45 = vcombine.low %v3840_v56, %v3844_v5  ;;  %v8052_v63 = vcombine.high %v3849_v59, %v3853_v24  ;;  %v8051_v39 = vcombine.low %v3849_v59, %v3853_v24  ;;  %v3904_v24 = vld [vmem:[#allocation25 + $0xc10] sm:$0xff] }
 0x6b3   :  { %7067 = vmatpush1.bf16.msra.mxu0 %v7993_v37  ;;  %v3860_v37 = vld [vmem:[#allocation25 + $0xab0] sm:$0xff] }
 0x6b4   :  { %7068 = vmatprep.subr.bf16.mxu0 %v8002_v14  ;;  %v3861_v14 = vld [vmem:[#allocation25 + $0xab8] sm:$0xff]  ;;  %v8058_v53 = vcombine.high %v3856_v18, %v3860_v37 }
 0x6b5   :  { %7239 = vmatpush1.bf16.msra.mxu1 %v7995_v19  ;;  %v3857_v19 = vld [vmem:[#allocation25 + $0xa98] sm:$0xff] }
 0x6b6   :  { %7240 = vmatprep.subr.bf16.mxu1 %v8004_v52  ;;  %v8049_v52 = vcombine.low %v3848_v23, %v3852_v0  ;;  %v8060_v29 = vcombine.high %v3857_v19, %v3861_v14  ;;  %v8059_v60 = vcombine.low %v3857_v19, %v3861_v14  ;;  %v3912_v14 = vld [vmem:[#allocation25 + $0xc50] sm:$0xff] }
 0x6b7   :  { %7069 = vmatpush1.bf16.msra.mxu0 %v8001_v2  ;;  %v3868_v2 = vld [vmem:[#allocation25 + $0xaf0] sm:$0xff] }
 0x6b8   :  { %7070 = vmatprep.subr.bf16.mxu0 %v8010_v48  ;;  %v3869_v48 = vld [vmem:[#allocation25 + $0xaf8] sm:$0xff]  ;;  %v8066_v10 = vcombine.high %v3864_v26, %v3868_v2 }
 0x6b9   :  { %7241 = vmatpush1.bf16.msra.mxu1 %v8003_v27  ;;  %v3865_v27 = vld [vmem:[#allocation25 + $0xad8] sm:$0xff] }
 0x6ba   :  { %7242 = vmatprep.subr.bf16.mxu1 %v8012_v42  ;;  %v8057_v42 = vcombine.low %v3856_v18, %v3860_v37  ;;  %v8068_v41 = vcombine.high %v3865_v27, %v3869_v48  ;;  %v8067_v30 = vcombine.low %v3865_v27, %v3869_v48  ;;  %v3920_v27 = vld [vmem:[#allocation25 + $0xc90] sm:$0xff] }
 0x6bb   :  { %7071 = vmatpush1.bf16.msra.mxu0 %v8009_v6  ;;  %v3876_v6 = vld [vmem:[#allocation25 + $0xb30] sm:$0xff] }
 0x6bc   :  { %7072 = vmatprep.subr.bf16.mxu0 %v8018_v1  ;;  %v3877_v1 = vld [vmem:[#allocation25 + $0xb38] sm:$0xff]  ;;  %v8074_v33 = vcombine.high %v3872_v4, %v3876_v6  ;;  %v3924_v48 = vld [vmem:[#allocation25 + $0xcb0] sm:$0xff] }
 0x6bd   :  { %7243 = vmatpush1.bf16.msra.mxu1 %v8011_v25  ;;  %v3873_v25 = vld [vmem:[#allocation25 + $0xb18] sm:$0xff] }
 0x6be   :  { %7244 = vmatprep.subr.bf16.mxu1 %v8020_v13  ;;  %v8065_v13 = vcombine.low %v3864_v26, %v3868_v2  ;;  %v8076_v49 = vcombine.high %v3873_v25, %v3877_v1  ;;  %v8075_v47 = vcombine.low %v3873_v25, %v3877_v1  ;;  %v3928_v1 = vld [vmem:[#allocation25 + $0xcd0] sm:$0xff] }
 0x6bf   :  { %7073 = vmatpush1.bf16.msra.mxu0 %v8017_v50  ;;  %v3884_v50 = vld [vmem:[#allocation25 + $0xb70] sm:$0xff] }
 0x6c0   :  { %7074 = vmatprep.subr.bf16.mxu0 %v8026_v7  ;;  %v3885_v7 = vld [vmem:[#allocation25 + $0xb78] sm:$0xff]  ;;  %v8082_v54 = vcombine.high %v3880_v43, %v3884_v50 }
 0x6c1   :  { %7245 = vmatpush1.bf16.msra.mxu1 %v8019_v28  ;;  %v3881_v28 = vld [vmem:[#allocation25 + $0xb58] sm:$0xff] }
 0x6c2   :  { %7246 = vmatprep.subr.bf16.mxu1 %v8028_v31  ;;  %v8073_v31 = vcombine.low %v3872_v4, %v3876_v6  ;;  %v8084_v16 = vcombine.high %v3881_v28, %v3885_v7  ;;  %v8083_v56 = vcombine.low %v3881_v28, %v3885_v7  ;;  %v8122_v6 = vcombine.high %v3920_v27, %v3924_v48  ;;  %v3936_v28 = vld [vmem:[#allocation25 + $0xd10] sm:$0xff] }
 0x6c3   :  { %7075 = vmatpush1.bf16.msra.mxu0 %v8025_v57  ;;  %v3892_v57 = vld [vmem:[#allocation25 + $0xbb0] sm:$0xff] }
 0x6c4   :  { %7076 = vmatprep.subr.bf16.mxu0 %v8034_v3  ;;  %v3893_v3 = vld [vmem:[#allocation25 + $0xbb8] sm:$0xff]  ;;  %v8090_v5 = vcombine.high %v3888_v40, %v3892_v57  ;;  %v3940_v7 = vld [vmem:[#allocation25 + $0xd30] sm:$0xff] }
 0x6c5   :  { %7247 = vmatpush1.bf16.msra.mxu1 %v8027_v9  ;;  %v3889_v9 = vld [vmem:[#allocation25 + $0xb98] sm:$0xff] }
 0x6c6   :  { %7248 = vmatprep.subr.bf16.mxu1 %v8036_v55  ;;  %v8081_v55 = vcombine.low %v3880_v43, %v3884_v50  ;;  %v8092_v11 = vcombine.high %v3889_v9, %v3893_v3  ;;  %v8091_v23 = vcombine.low %v3889_v9, %v3893_v3  ;;  %v3948_v9 = vld [vmem:[#allocation25 + $0xd70] sm:$0xff]  ;;  %v3945_v3 = vld [vmem:[#allocation25 + $0xd58] sm:$0xff] }
 0x6c7   :  { %7077 = vmatpush1.bf16.msra.mxu0 %v8033_v15  ;;  %v3900_v15 = vld [vmem:[#allocation25 + $0xbf0] sm:$0xff] }
 0x6c8   :  { %7078 = vmatprep.subr.bf16.mxu0 %v8042_v17  ;;  %v3901_v17 = vld [vmem:[#allocation25 + $0xbf8] sm:$0xff]  ;;  %v8098_v0 = vcombine.high %v3896_v12, %v3900_v15 }
 0x6c9   :  { %7249 = vmatpush1.bf16.msra.mxu1 %v8035_v20  ;;  %v3897_v20 = vld [vmem:[#allocation25 + $0xbd8] sm:$0xff] }
 0x6ca   :  { %7250 = vmatprep.subr.bf16.mxu1 %v8044_v35  ;;  %v8089_v35 = vcombine.low %v3888_v40, %v3892_v57  ;;  %v8100_v59 = vcombine.high %v3897_v20, %v3901_v17  ;;  %v8099_v18 = vcombine.low %v3897_v20, %v3901_v17  ;;  %v3944_v57 = vld [vmem:[#allocation25 + $0xd50] sm:$0xff] }
 0x6cb   :  { %7079 = vmatpush1.bf16.msra.mxu0 %v8041_v45  ;;  %v3908_v45 = vld [vmem:[#allocation25 + $0xc30] sm:$0xff] }
 0x6cc   :  { %7080 = vmatprep.subr.bf16.mxu0 %v8050_v51  ;;  %v3909_v51 = vld [vmem:[#allocation25 + $0xc38] sm:$0xff]  ;;  %v8106_v37 = vcombine.high %v3904_v24, %v3908_v45  ;;  %v3952_v20 = vld [vmem:[#allocation25 + $0xd90] sm:$0xff] }
 0x6cd   :  { %7251 = vmatpush1.bf16.msra.mxu1 %v8043_v22  ;;  %v3905_v22 = vld [vmem:[#allocation25 + $0xc18] sm:$0xff]  ;;  %v3956_v17 = vld [vmem:[#allocation25 + $0xdb0] sm:$0xff] }
 0x6ce   :  { %7252 = vmatprep.subr.bf16.mxu1 %v8052_v63  ;;  %v8097_v63 = vcombine.low %v3896_v12, %v3900_v15  ;;  %v8108_v19 = vcombine.high %v3905_v22, %v3909_v51  ;;  %v8107_v26 = vcombine.low %v3905_v22, %v3909_v51  ;;  %v8146_v12 = vcombine.high %v3944_v57, %v3948_v9 }
 0x6cf   :  { %7081 = vmatpush1.bf16.msra.mxu0 %v8049_v52  ;;  %v3916_v52 = vld [vmem:[#allocation25 + $0xc70] sm:$0xff] }
 0x6d0   :  { %7082 = vmatprep.subr.bf16.mxu0 %v8058_v53  ;;  %v3913_v53 = vld [vmem:[#allocation25 + $0xc58] sm:$0xff]  ;;  %v8114_v2 = vcombine.high %v3912_v14, %v3916_v52 }
 0x6d1   :  { %7253 = vmatpush1.bf16.msra.mxu1 %v8051_v39  ;;  %v8105_v39 = vcombine.low %v3904_v24, %v3908_v45  ;;  %v8145_v45 = vcombine.low %v3944_v57, %v3948_v9 }
 0x6d2   :  { %7254 = vmatprep.subr.bf16.mxu1 %v8060_v29  ;;  %v3917_v29 = vld [vmem:[#allocation25 + $0xc78] sm:$0xff] }
 0x6d3   :  { %7083 = vmatpush1.bf16.msra.mxu0 %v8057_v42  ;;  %v8116_v42 = vcombine.high %v3913_v53, %v3917_v29  ;;  %v8115_v4 = vcombine.low %v3913_v53, %v3917_v29  ;;  %v3965_v53 = vld [vmem:[#allocation25 + $0xdf8] sm:$0xff] }
 0x6d4   :  { %7084 = vmatprep.subr.bf16.mxu0 %v8066_v10  ;;  %v3925_v10 = vld [vmem:[#allocation25 + $0xcb8] sm:$0xff] }
 0x6d5   :  { %7255 = vmatpush1.bf16.msra.mxu1 %v8059_v60  ;;  %v3921_v60 = vld [vmem:[#allocation25 + $0xc98] sm:$0xff] }
 0x6d6   :  { %7256 = vmatprep.subr.bf16.mxu1 %v8068_v41  ;;  %v8113_v41 = vcombine.low %v3912_v14, %v3916_v52  ;;  %v8124_v25 = vcombine.high %v3921_v60, %v3925_v10 }
 0x6d7   :  { %7085 = vmatpush1.bf16.msra.mxu0 %v8065_v13  ;;  %v3932_v13 = vld [vmem:[#allocation25 + $0xcf0] sm:$0xff] }
 0x6d8   :  { %7086 = vmatprep.subr.bf16.mxu0 %v8074_v33  ;;  %v3933_v33 = vld [vmem:[#allocation25 + $0xcf8] sm:$0xff]  ;;  %v8130_v43 = vcombine.high %v3928_v1, %v3932_v13 }
 0x6d9   :  { %7257 = vmatpush1.bf16.msra.mxu1 %v8067_v30  ;;  %v3929_v30 = vld [vmem:[#allocation25 + $0xcd8] sm:$0xff] }
 0x6da   :  { %7258 = vmatprep.subr.bf16.mxu1 %v8076_v49  ;;  %v8121_v49 = vcombine.low %v3920_v27, %v3924_v48  ;;  %v8132_v50 = vcombine.high %v3929_v30, %v3933_v33  ;;  %v8153_v27 = vcombine.low %v3952_v20, %v3956_v17 }
 0x6db   :  { %7087 = vmatpush1.bf16.msra.mxu0 %v8073_v31  ;;  %v3937_v31 = vld [vmem:[#allocation25 + $0xd18] sm:$0xff] }
 0x6dc   :  { %7088 = vmatprep.subr.bf16.mxu0 %v8082_v54  ;;  %v8131_v54 = vcombine.low %v3929_v30, %v3933_v33  ;;  %v3969_v33 = vld [vmem:[#allocation25 + $0xe18] sm:$0xff] }
 0x6dd   :  { %7259 = vmatpush1.bf16.msra.mxu1 %v8075_v47  ;;  %v3941_v47 = vld [vmem:[#allocation25 + $0xd38] sm:$0xff] }
 0x6de   :  { %7260 = vmatprep.subr.bf16.mxu1 %v8084_v16  ;;  %v8138_v16 = vcombine.high %v3936_v28, %v3940_v7  ;;  %v8140_v40 = vcombine.high %v3937_v31, %v3941_v47 }
 0x6df   :  { %7089 = vmatpush1.bf16.msra.mxu0 %v8081_v55  ;;  %v3949_v55 = vld [vmem:[#allocation25 + $0xd78] sm:$0xff] }
 0x6e0   :  { %7090 = vmatprep.subr.bf16.mxu0 %v8090_v5  ;;  %v9742_v5 = vld [vmem:[#allocation26] sm:$0xff]  ;;  %v8148_v15 = vcombine.high %v3945_v3, %v3949_v55  ;;  %v8147_v51 = vcombine.low %v3945_v3, %v3949_v55  ;;  %v3984_v3 = vld [vmem:[#allocation25 + $0xe90] sm:$0xff] }
 0x6e1   :  { %7261 = vmatpush1.bf16.msra.mxu1 %v8083_v56  ;;  %v8137_v56 = vcombine.low %v3936_v28, %v3940_v7  ;;  %v4039_v24 = vrot.slane %v9742_v5, %v9204_v36  ;;  %v4047_v22 = vrot.slane %v9742_v5, %v9286_v46  ;;  %v3988_v55 = vld [vmem:[#allocation25 + $0xeb0] sm:$0xff] }
 0x6e2   :  { %7262 = vmatprep.subr.bf16.mxu1 %v8092_v11  ;;  %v8139_v11 = vcombine.low %v3937_v31, %v3941_v47  ;;  %v3976_v31 = vld [vmem:[#allocation25 + $0xe50] sm:$0xff] }
 0x6e3   :  { %7091 = vmatpush1.bf16.msra.mxu0 %v8089_v35  ;;  %v4035_v35 = vrot.slane %v9742_v5, %v9201_v34  ;;  %v3980_v47 = vld [vmem:[#allocation25 + $0xe70] sm:$0xff] }
 0x6e4   :  { %7092 = vmatprep.subr.bf16.mxu0 %v8098_v0  ;;  %v3957_v0 = vld [vmem:[#allocation25 + $0xdb8] sm:$0xff]  ;;  %v8178_v57 = vcombine.high %v3976_v31, %v3980_v47 }
 0x6e5   :  { %7263 = vmatpush1.bf16.msra.mxu1 %v8091_v23  ;;  %v3953_v23 = vld [vmem:[#allocation25 + $0xd98] sm:$0xff] }
 0x6e6   :  { %7264 = vmatprep.subr.bf16.mxu1 %v8100_v59  ;;  %v4043_v59 = vrot.slane %v9742_v5, %v9283_v44  ;;  %v8156_v34 = vcombine.high %v3953_v23, %v3957_v0  ;;  %v3961_v44 = vld [vmem:[#allocation25 + $0xdd8] sm:$0xff]  ;;  %v8155_v46 = vcombine.low %v3953_v23, %v3957_v0  ;;  %v8186_v23 = vcombine.high %v3984_v3, %v3988_v55 }
 0x6e7   :  { %7093 = vmatpush1.bf16.msra.mxu0 %v8097_v63  ;;  %v8154_v63 = vcombine.high %v3952_v20, %v3956_v17  ;;  %v8177_v20 = vcombine.low %v3976_v31, %v3980_v47  ;;  %v4025_v31 = vld [vmem:[#allocation25 + $0xfd8] sm:$0xff] }
 0x6e8   :  { %7105 = vmatprep.subr.bf16.mxu0 %v8106_v37  ;;  %v3960_v37 = vld [vmem:[#allocation25 + $0xdd0] sm:$0xff]  ;;  %v4029_v47 = vld [vmem:[#allocation25 + $0xff8] sm:$0xff] }
 0x6e9   :  { %7265 = vmatpush1.bf16.msra.mxu1 %v8099_v18 }
 0x6ea   :  { %7277 = vmatprep.subr.bf16.mxu1 %v8108_v19  ;;  %7095 = vmatmul.mubr.bf16.vlgmr.msra.gmra.mrb[20].mxu0 %v9703_v38  ;;  %v3964_v19 = vld [vmem:[#allocation25 + $0xdf0] sm:$0xff] }
 0x6eb   :  { %7106 = vmatpush1.bf16.msra.mxu0 %v8105_v39  ;;  %7137 = vmatprep.mubr.bf16.mxu0 %v9708_v61 }
 0x6ec   :  { %7267 = vmatmul.mubr.bf16.vlgmr.msra.gmra.mrb[20].mxu1 %v9703_v38  ;;  %7107 = vmatprep.subr.bf16.mxu0 %v8114_v2  ;;  %v8123_v38 = vcombine.low %v3921_v60, %v3925_v10 }
 0x6ed   :  { %7278 = vmatpush1.bf16.msra.mxu1 %v8107_v26  ;;  %7309 = vmatprep.mubr.bf16.mxu1 %v9708_v61  ;;  %v8129_v61 = vcombine.low %v3928_v1, %v3932_v13  ;;  %v3968_v1 = vld [vmem:[#allocation25 + $0xe10] sm:$0xff] }
 0x6ee   :  { %7279 = vmatprep.subr.bf16.mxu1 %v8116_v42  ;;  %v3972_v13 = vld [vmem:[#allocation25 + $0xe30] sm:$0xff] }
 0x6ef   :  { %7108 = vmatpush1.bf16.msra.mxu0 %v8113_v41  ;;  %v8162_v41 = vcombine.high %v3960_v37, %v3964_v19  ;;  %v8170_v28 = vcombine.high %v3968_v1, %v3972_v13 }
 0x6f0   :  { %7109 = vmatprep.subr.bf16.mxu0 %v8122_v6 }
 0x6f1   :  { %7280 = vmatpush1.bf16.msra.mxu1 %v8115_v4 }
 0x6f2   :  { %7281 = vmatprep.subr.bf16.mxu1 %v8124_v25  ;;  %v8164_v25 = vcombine.high %v3961_v44, %v3965_v53 }
 0x6f3   :  { %7110 = vmatpush1.bf16.msra.mxu0 %v8121_v49  ;;  %v3973_v49 = vld [vmem:[#allocation25 + $0xe38] sm:$0xff] }
 0x6f4   :  { %7111 = vmatprep.subr.bf16.mxu0 %v8130_v43  ;;  %v8161_v43 = vcombine.low %v3960_v37, %v3964_v19  ;;  %v8172_v7 = vcombine.high %v3969_v33, %v3973_v49 }
 0x6f5   :  { %7282 = vmatpush1.bf16.msra.mxu1 %v8123_v38 }
 0x6f6   :  { %7283 = vmatprep.subr.bf16.mxu1 %v8132_v50  ;;  %v8163_v50 = vcombine.low %v3961_v44, %v3965_v53  ;;  %v4000_v44 = vld [vmem:[#allocation25 + $0xf10] sm:$0xff] }
 0x6f7   :  { %7112 = vmatpush1.bf16.msra.mxu0 %v8129_v61  ;;  %v3977_v61 = vld [vmem:[#allocation25 + $0xe58] sm:$0xff]  ;;  %v4004_v53 = vld [vmem:[#allocation25 + $0xf30] sm:$0xff] }
 0x6f8   :  { %7113 = vmatprep.subr.bf16.mxu0 %v8138_v16  ;;  %v8169_v16 = vcombine.low %v3968_v1, %v3972_v13  ;;  %v4016_v1 = vld [vmem:[#allocation25 + $0xf90] sm:$0xff] }
 0x6f9   :  { %7284 = vmatpush1.bf16.msra.mxu1 %v8131_v54  ;;  %v3981_v54 = vld [vmem:[#allocation25 + $0xe78] sm:$0xff]  ;;  %v4020_v13 = vld [vmem:[#allocation25 + $0xfb0] sm:$0xff] }
 0x6fa   :  { %7285 = vmatprep.subr.bf16.mxu1 %v8140_v40  ;;  %v8171_v40 = vcombine.low %v3969_v33, %v3973_v49  ;;  %v8180_v9 = vcombine.high %v3977_v61, %v3981_v54  ;;  %v4021_v33 = vld [vmem:[#allocation25 + $0xfb8] sm:$0xff] }
 0x6fb   :  { %7114 = vmatpush1.bf16.msra.mxu0 %v8137_v56 }
 0x6fc   :  { %7115 = vmatprep.subr.bf16.mxu0 %v8146_v12  ;;  %v3989_v12 = vld [vmem:[#allocation25 + $0xeb8] sm:$0xff] }
 0x6fd   :  { %7286 = vmatpush1.bf16.msra.mxu1 %v8139_v11  ;;  %v6795_v18 = vpop.f32.mrb[16].mxu0  ;;  %v3985_v11 = vld [vmem:[#allocation25 + $0xe98] sm:$0xff] }
 0x6fe   :  { %7287 = vmatprep.subr.bf16.mxu1 %v8148_v15  ;;  %v8237_v14 = vadd.f32 %v6795_v18, %v4035_v35  ;;  %v6797_v39 = vpop.f32.mrb[17].mxu0  ;;  %v8187_v19 = vcombine.low %v3985_v11, %v3989_v12 }
 0x6ff   :  { %v6967_v52 = vpop.f32.mrb[16].mxu1  ;;  %v8238_v36 = vadd.f32 %v6797_v39, %v4039_v24  ;;  %v6799_v2 = vpop.f32.mrb[18].mxu0  ;;  %7116 = vmatpush1.bf16.msra.mxu0 %v8145_v45  ;;  %v3996_v45 = vld [vmem:[#allocation25 + $0xef0] sm:$0xff] }
 0x700   :  { %v8241_v29 = vadd.f32 %v6967_v52, %v4043_v59  ;;  %v6969_v26 = vpop.f32.mrb[17].mxu1  ;;  %8497 = vtanh.f32 %v8237_v14  ;;  %v8239_v42 = vadd.f32 %v6799_v2, %v4035_v35  ;;  %v6801_v10 = vpop.f32.mrb[19].mxu0  ;;  %7117 = vmatprep.subr.bf16.mxu0 %v8154_v63  ;;  %v8179_v35 = vcombine.low %v3977_v61, %v3981_v54  ;;  %v3997_v63 = vld [vmem:[#allocation25 + $0xef8] sm:$0xff] }
 0x701   :  { %v8242_v48 = vadd.f32 %v6969_v26, %v4047_v22  ;;  %v6971_v60 = vpop.f32.mrb[18].mxu1  ;;  %7288 = vmatpush1.bf16.msra.mxu1 %v8147_v51  ;;  %v8240_v30 = vadd.f32 %v6801_v10, %v4039_v24  ;;  %v3992_v24 = vld [vmem:[#allocation25 + $0xed0] sm:$0xff]  ;;  %v3993_v51 = vld [vmem:[#allocation25 + $0xed8] sm:$0xff]  ;;  %v8217_v61 = vcombine.low %v4016_v1, %v4020_v13 }
 0x702   :  { %8499 = vtanh.f32 %v8241_v29  ;;  %v8243_v4 = vadd.f32 %v6971_v60, %v4043_v59  ;;  %v6973_v6 = vpop.f32.mrb[19].mxu1  ;;  %7289 = vmatprep.subr.bf16.mxu1 %v8156_v34  ;;  %v8188_v59 = vcombine.high %v3985_v11, %v3989_v12  ;;  %v8185_v34 = vcombine.low %v3984_v3, %v3988_v55  ;;  %v4001_v29 = vld [vmem:[#allocation25 + $0xf18] sm:$0xff] }
 0x703   :  { %8501 = vtanh.f32 %v8238_v36  ;;  %v8244_v38 = vadd.f32 %v6973_v6, %v4047_v22  ;;  %7118 = vmatpush1.bf16.msra.mxu0 %v8153_v27  ;;  %v8194_v14 = vcombine.high %v3992_v24, %v3996_v45  ;;  %v8196_v39 = vcombine.high %v3993_v51, %v3997_v63  ;;  %v4005_v36 = vld [vmem:[#allocation25 + $0xf38] sm:$0xff] }
 0x704   :  { %8503 = vtanh.f32 %v8242_v48  ;;  %7119 = vmatprep.subr.bf16.mxu0 %v8162_v41  ;;  %v8193_v26 = vcombine.low %v3992_v24, %v3996_v45  ;;  %v8195_v2 = vcombine.low %v3993_v51, %v3997_v63  ;;  %v8202_v27 = vcombine.high %v4000_v44, %v4004_v53  ;;  %v4008_v48 = vld [vmem:[#allocation25 + $0xf50] sm:$0xff]  ;;  %v4009_v60 = vld [vmem:[#allocation25 + $0xf58] sm:$0xff] }
 0x705   :  { %8505 = vtanh.f32 %v8239_v42  ;;  %7290 = vmatpush1.bf16.msra.mxu1 %v8155_v46  ;;  %v8204_v46 = vcombine.high %v4001_v29, %v4005_v36  ;;  %v4012_v42 = vld [vmem:[#allocation25 + $0xf70] sm:$0xff]  ;;  %v4013_v10 = vld [vmem:[#allocation25 + $0xf78] sm:$0xff]  ;;  %v8201_v41 = vcombine.low %v4000_v44, %v4004_v53  ;;  %v4051_v3 = vrot.slane %v9742_v5, %v9583_v21 }
 0x706   :  { %8507 = vtanh.f32 %v8243_v4  ;;  %7291 = vmatprep.subr.bf16.mxu1 %v8164_v25  ;;  %v8203_v4 = vcombine.low %v4001_v29, %v4005_v36  ;;  %v8210_v6 = vcombine.high %v4008_v48, %v4012_v42  ;;  %v8212_v25 = vcombine.high %v4009_v60, %v4013_v10 }
 0x707   :  { %8509 = vtanh.f32 %v8240_v30  ;;  %7120 = vmatpush1.bf16.msra.mxu0 %v8161_v43  ;;  %v4017_v30 = vld [vmem:[#allocation25 + $0xf98] sm:$0xff]  ;;  %v8209_v49 = vcombine.low %v4008_v48, %v4012_v42  ;;  %v8218_v43 = vcombine.high %v4016_v1, %v4020_v13  ;;  %v4059_v55 = vrot.slane %v9742_v5, %v9586_v62 }
 0x708   :  { %8511 = vtanh.f32 %v8244_v38  ;;  %7121 = vmatprep.subr.bf16.mxu0 %v8170_v28  ;;  %v8211_v38 = vcombine.low %v4009_v60, %v4013_v10  ;;  %v4024_v28 = vld [vmem:[#allocation25 + $0xfd0] sm:$0xff]  ;;  %v8219_v54 = vcombine.low %v4017_v30, %v4021_v33  ;;  %v4063_v11 = vrot.slane %v9742_v5, %v9596_v8 }
 0x709   :  { %7292 = vmatpush1.bf16.msra.mxu1 %v8163_v50  ;;  %v8220_v50 = vcombine.high %v4017_v30, %v4021_v33 }
 0x70a   :  { %7293 = vmatprep.subr.bf16.mxu1 %v8172_v7  ;;  %v8498_v56 = vpop.eup %8497  ;;  %v4028_v7 = vld [vmem:[#allocation25 + $0xff0] sm:$0xff] }
 0x70b   :  { %7336 = vst [vmem:[#allocation28] sm:$0xff] %v8498_v56  ;;  %7122 = vmatpush1.bf16.msra.mxu0 %v8169_v16  ;;  %v8226_v16 = vcombine.high %v4024_v28, %v4028_v7  ;;  %v4055_v56 = vrot.slane %v9742_v5, %v9593_v32 }
 0x70c   :  { %v8500_v15 = vpop.eup %8499  ;;  %7123 = vmatprep.subr.bf16.mxu0 %v8178_v57  ;;  %v8225_v57 = vcombine.low %v4024_v28, %v4028_v7 }
 0x70d   :  { %v8502_v17 = vpop.eup %8501  ;;  %7338 = vst [vmem:[#allocation28 + $0x10] sm:$0xff] %v8500_v15  ;;  %7294 = vmatpush1.bf16.msra.mxu1 %v8171_v40  ;;  %v8228_v40 = vcombine.high %v4025_v31, %v4029_v47 }
 0x70e   :  { %v8504_v0 = vpop.eup %8503  ;;  %7337 = vst [vmem:[#allocation28 + $0x8] sm:$0xff] %v8502_v17  ;;  %7295 = vmatprep.subr.bf16.mxu1 %v8180_v9  ;;  %v8227_v9 = vcombine.low %v4025_v31, %v4029_v47 }
 0x70f   :  { %v8506_v22 = vpop.eup %8505  ;;  %7339 = vst [vmem:[#allocation28 + $0x18] sm:$0xff] %v8504_v0  ;;  %7124 = vmatpush1.bf16.msra.mxu0 %v8177_v20 }
 0x710   :  { %v8508_v18 = vpop.eup %8507  ;;  %7344 = vst [vmem:[#allocation28 + $0x40] sm:$0xff] %v8506_v22  ;;  %7125 = vmatprep.subr.bf16.mxu0 %v8186_v23 }
 0x711   :  { %v8510_v37 = vpop.eup %8509  ;;  %7346 = vst [vmem:[#allocation28 + $0x50] sm:$0xff] %v8508_v18  ;;  %7296 = vmatpush1.bf16.msra.mxu1 %v8179_v35 }
 0x712   :  { %v8512_v52 = vpop.eup %8511  ;;  %7345 = vst [vmem:[#allocation28 + $0x48] sm:$0xff] %v8510_v37  ;;  %7297 = vmatprep.subr.bf16.mxu1 %v8188_v59 }
 0x713   :  { %7347 = vst [vmem:[#allocation28 + $0x58] sm:$0xff] %v8512_v52  ;;  %7126 = vmatpush1.bf16.msra.mxu0 %v8185_v34 }
 0x714   :  { %7127 = vmatprep.subr.bf16.mxu0 %v8194_v14 }
 0x715   :  { %7298 = vmatpush1.bf16.msra.mxu1 %v8187_v19 }
 0x716   :  { %7299 = vmatprep.subr.bf16.mxu1 %v8196_v39 }
 0x717   :  { %7128 = vmatpush1.bf16.msra.mxu0 %v8193_v26 }
 0x718   :  { %7129 = vmatprep.subr.bf16.mxu0 %v8202_v27 }
 0x719   :  { %7300 = vmatpush1.bf16.msra.mxu1 %v8195_v2 }
 0x71a   :  { %7301 = vmatprep.subr.bf16.mxu1 %v8204_v46 }
 0x71b   :  { %7130 = vmatpush1.bf16.msra.mxu0 %v8201_v41 }
 0x71c   :  { %7131 = vmatprep.subr.bf16.mxu0 %v8210_v6 }
 0x71d   :  { %7302 = vmatpush1.bf16.msra.mxu1 %v8203_v4 }
 0x71e   :  { %7303 = vmatprep.subr.bf16.mxu1 %v8212_v25 }
 0x71f   :  { %7132 = vmatpush1.bf16.msra.mxu0 %v8209_v49 }
 0x720   :  { %7133 = vmatprep.subr.bf16.mxu0 %v8218_v43 }
 0x721   :  { %7304 = vmatpush1.bf16.msra.mxu1 %v8211_v38 }
 0x722   :  { %7305 = vmatprep.subr.bf16.mxu1 %v8220_v50 }
 0x723   :  { %7134 = vmatpush1.bf16.msra.mxu0 %v8217_v61 }
 0x724   :  { %7135 = vmatprep.subr.bf16.mxu0 %v8226_v16 }
 0x725   :  { %7306 = vmatpush1.bf16.msra.mxu1 %v8219_v54 }
 0x726   :  { %7307 = vmatprep.subr.bf16.mxu1 %v8228_v40 }
 0x727   :  { %7136 = vmatpush1.bf16.msra.mxu0 %v8225_v57 }
 0x729   :  { %7308 = vmatpush1.bf16.msra.mxu1 %v8227_v9 }
 0x72a   :  { %7138 = vmatmul.mubr.bf16.vlgmr.msra.gmra.mrb[20].mxu0 %v9719_v58 }
 0x72c   :  { %7310 = vmatmul.mubr.bf16.vlgmr.msra.gmra.mrb[20].mxu1 %v9719_v58 }
 0x7fd   :  { %v7139_v12 = vpop.f32.mrb[20].mxu0 }
 0x7fe   :  { %v8245_v15 = vadd.f32 %v7139_v12, %v4051_v3  ;;  %v7141_v17 = vpop.f32.mrb[21].mxu0 }
 0x7ff   :  { %v7311_v20 = vpop.f32.mrb[20].mxu1  ;;  %v8246_v23 = vadd.f32 %v7141_v17, %v4055_v56  ;;  %v7143_v58 = vpop.f32.mrb[22].mxu0 }
 0x800   :  { %v8249_v35 = vadd.f32 %v7311_v20, %v4059_v55  ;;  %v7313_v0 = vpop.f32.mrb[21].mxu1  ;;  %8513 = vtanh.f32 %v8245_v15  ;;  %v8247_v21 = vadd.f32 %v7143_v58, %v4051_v3  ;;  %v7145_v45 = vpop.f32.mrb[23].mxu0 }
 0x801   :  { %v8250_v59 = vadd.f32 %v7313_v0, %v4063_v11  ;;  %v7315_v24 = vpop.f32.mrb[22].mxu1  ;;  %v8248_v32 = vadd.f32 %v7145_v45, %v4055_v56 }
 0x802   :  { %8515 = vtanh.f32 %v8249_v35  ;;  %v8251_v62 = vadd.f32 %v7315_v24, %v4059_v55  ;;  %v7317_v22 = vpop.f32.mrb[23].mxu1 }
 0x803   :  { %8517 = vtanh.f32 %v8246_v23  ;;  %v8252_v8 = vadd.f32 %v7317_v22, %v4063_v11 }
 0x804   :  { %8519 = vtanh.f32 %v8250_v59 }
 0x805   :  { %8521 = vtanh.f32 %v8247_v21 }
 0x806   :  { %8523 = vtanh.f32 %v8251_v62 }
 0x807   :  { %8525 = vtanh.f32 %v8248_v32 }
 0x808   :  { %8527 = vtanh.f32 %v8252_v8 }
 0x80a   :  { %v8514_v5 = vpop.eup %8513 }
 0x80b   :  { %7340 = vst [vmem:[#allocation28 + $0x20] sm:$0xff] %v8514_v5 }
 0x80c   :  { %v8516_v51 = vpop.eup %8515 }
 0x80d   :  { %v8518_v63 = vpop.eup %8517  ;;  %7342 = vst [vmem:[#allocation28 + $0x30] sm:$0xff] %v8516_v51 }
 0x80e   :  { %v8520_v18 = vpop.eup %8519  ;;  %7341 = vst [vmem:[#allocation28 + $0x28] sm:$0xff] %v8518_v63 }
 0x80f   :  { %v8522_v34 = vpop.eup %8521  ;;  %7343 = vst [vmem:[#allocation28 + $0x38] sm:$0xff] %v8520_v18 }
 0x810   :  { %v8524_v37 = vpop.eup %8523  ;;  %7348 = vst [vmem:[#allocation28 + $0x60] sm:$0xff] %v8522_v34 }
 0x811   :  { %v8526_v19 = vpop.eup %8525  ;;  %7350 = vst [vmem:[#allocation28 + $0x70] sm:$0xff] %v8524_v37 }
 0x812   :  { %v8528_v14 = vpop.eup %8527  ;;  %7349 = vst [vmem:[#allocation28 + $0x68] sm:$0xff] %v8526_v19 }
 0x813   :  { %7351 = vst [vmem:[#allocation28 + $0x78] sm:$0xff] %v8528_v14 }
 0x814   :  { %8850 = shalt.err (!%p8847_p4)
}
 0x815   :  { %s9794_s3 = sld [smem:[#allocation38_spill]] }
 0x81b   :  { %s8851_s17 = scalar_lea.hbm %s9794_s3, 2048 }
 0x81c   :  { %p8852_p5 = scmp.ne.s32.totalorder %s9794_s3, %s8851_s17  ;;  %p8855_p6 = scmp.lt.u32.totalorder %s8851_s17, %s9794_s3 }
 0x81e   :  { %p8857_p7 = pnand %p8855_p6, %p8852_p5 }
 0x820   :  { %8860 = shalt.err (!%p8857_p7)
}
 0x821   :  { %s8905_s11 = smov 1024  }
 0x822   :  { %7363 = dma.vmem_to_hbm [thread:$0]  %s7358_s12, 2048, %s9794_s3, [#allocation7], %s8905_s11, %s8905_s11, %s8880_s28  }
 0x823   :  { %8877 = dma.done.wait [#allocation7], 2048  }
 0x824   :  { %8878 = vsyncadd [#allocation7], 4294965248 }
 0x825   :  { %7367 = vsyncpa [#allocation6], 1 }
 0x826   :  { %7368 = vsyncpa [#allocation9], 1 }
 0x827   :  { %7369 = vsyncpa [#allocation12], 1 }
 0x828   :  { %7370 = vsyncpa [#allocation15], 1 }
 0x829   :  { %7371 = vsyncpa [#allocation18], 1 }
 0x82a   :  { %7372 = vsyncpa [#allocation21], 1 }
 0x82b   :  { %7373 = vsyncpa [#allocation24], 1 }
 0x82c   :  { %7374 = vsyncpa [#allocation27], 1 }
 0x82d   :  { %7375 = vsyncpa [#allocation7], 1 }

</bundles_post_ra>
